<compile_context>
chip_gen: v6e
topology: v6e:2x2x1
jax: 0.10.0
libtpu: 0.0.40
codegen_flags: <defaults>
</compile_context>

<pallas_src>
import functools

import jax
import jax.numpy as jnp
import numpy as np
from jax import lax
from jax.experimental import pallas as pl
from jax.experimental.pallas import tpu as pltpu


# ---------------------------------------------------------------------------
# Pallas kernel: whole forward (projections + staggered 2-layer recurrence).
#   x_ref   : (T, B, F)    f32   time-major input
#   c_ref   : (B, C)       f32   conditioning vector
#   wx1_ref : (F, 4Hp)     f32   layer-1 input weights (x columns)
#   wc1_ref : (C, 4Hp)     f32   layer-1 input weights (c columns)
#   b1_ref  : (1, 4Hp)     f32   layer-1 bias (b_ih + b_hh)
#   wf_ref  : (2Hp, 8Hp)   bf16  fused block weights [[Whh1, Wih2], [0, Whh2]]
#   b2_ref  : (1, 4Hp)     f32   layer-2 bias (b_ih + b_hh)
#   out_ref : (B, Hp)      f32   h_end of last layer (padded; wrapper slices)
#   pre_ref : (T+1, B, 4Hp) f32  VMEM scratch: layer-1 pre-gates per time step
# Gate column order inside every 4Hp block: [i, f, o, g], each Hp lanes.
# ---------------------------------------------------------------------------
def _arae_lstm2_kernel(x_ref, c_ref, wx1_ref, wc1_ref, b1_ref, wf_ref, b2_ref,
                       out_ref, pre_ref):
    B, Hp = out_ref.shape
    T = x_ref.shape[0]
    F = x_ref.shape[2]
    C = c_ref.shape[1]
    G = 4 * Hp

    # ---- one-time preamble (off the serial critical path) -------------------
    xv = x_ref[...]                              # (T, B, F)
    cv = c_ref[...]                              # (B, C)
    wx1 = wx1_ref[...]                           # (F, G)
    wc1 = wc1_ref[...]                           # (C, G)
    wf = wf_ref[...]                             # (2Hp, 2G) bf16, hoisted
    b2b = jnp.broadcast_to(b2_ref[...], (B, G))  # hoisted layer-2 bias

    # Time-invariant term c@Wc1 + b1 and the layer-1 input projection x@Wx1,
    # done as broadcast-FMAs (F, C are tiny; runs once, VPU only).
    cb1 = jnp.broadcast_to(b1_ref[...], (B, G))
    for j in range(C):
        cb1 = cb1 + cv[:, j:j + 1] * wc1[j:j + 1, :]
    pre = jnp.broadcast_to(cb1[None, :, :], (T, B, G))
    for j in range(F):
        pre = pre + xv[:, :, j:j + 1] * wx1[j:j + 1, :]
    # Append a phantom step T (its layer-1 result is discarded by the stagger).
    pre_ref[...] = jnp.concatenate(
        [pre, jnp.zeros((1, B, G), jnp.float32)], axis=0)

    def gate_act(gates, c_prev):
        # Packed gate order [i, f, o, g]: one sigmoid over a contiguous 3*Hp
        # slice, one tanh over the last Hp block (fewer EUP pushes per step).
        sg = jax.nn.sigmoid(gates[:, :3 * Hp])
        i, f, o = sg[:, :Hp], sg[:, Hp:2 * Hp], sg[:, 2 * Hp:]
        g = jnp.tanh(gates[:, 3 * Hp:])
        c_new = f * c_prev + i * g
        return o * jnp.tanh(c_new), c_new

    # ---- prologue: layer-1 step 0 (zero init state => no recurrent matmul) --
    z = jnp.zeros((B, Hp), jnp.float32)
    h1, c1 = gate_act(pre_ref[0], z)             # h1(0), c1(0)
    h2, c2 = z, z                                # h2(-1), c2(-1)

    # ---- staggered recurrence: ONE fused bf16 MXU matmul per stage ----------
    # Stage s: layer-1 pre-gates for step s+1 AND layer-2 gates for step s.
    def stage(s, carry):
        h1, c1, h2, c2 = carry
        hc = jnp.concatenate([h1, h2], axis=-1).astype(jnp.bfloat16)   # (B, 2Hp)
        comb = jnp.dot(hc, wf, preferred_element_type=jnp.float32)     # (B, 2G) f32
        h1, c1 = gate_act(comb[:, :G] + pre_ref[s + 1], c1)            # step s+1
        h2, c2 = gate_act(comb[:, G:] + b2b, c2)                       # step s
        return (h1, c1, h2, c2)

    unroll = True if T <= 16 else 8
    _, _, h2, _ = lax.fori_loop(0, T, stage, (h1, c1, h2, c2), unroll=unroll)
    out_ref[...] = h2                            # h2(T-1)


# ---------------------------------------------------------------------------
# Wrapper: one trivial transpose of x, then a single pallas_call.
# ---------------------------------------------------------------------------
@functools.partial(jax.jit, static_argnames=("hidden_dim",))
def arae_encoder_forward(x, c, params, *, hidden_dim):
    """x: (B, T, n_features) f32, c: (B, c_dim) f32 -> (B, hidden_dim) f32."""
    B, T, F = x.shape
    Hp = params["wf"].shape[0] // 2

    x_tm = jnp.transpose(x, (1, 0, 2))           # (T, B, F) time-major

    out_padded = pl.pallas_call(
        _arae_lstm2_kernel,
        out_shape=jax.ShapeDtypeStruct((B, Hp), jnp.float32),
        in_specs=[pl.BlockSpec(memory_space=pltpu.MemorySpace.VMEM)] * 7,
        out_specs=pl.BlockSpec(memory_space=pltpu.MemorySpace.VMEM),
        scratch_shapes=[pltpu.VMEM((T + 1, B, 4 * Hp), jnp.float32)],
    )(x_tm, c, params["wx1"], params["wc1"], params["b1"],
      params["wf"], params["b2"])
    return out_padded[:, :hidden_dim]


# ---------------------------------------------------------------------------
# Parameter init (PyTorch-style uniform(-1/sqrt(H), 1/sqrt(H))) + kernel layout.
# Kernel weights are transposed (in_dim, 4Hp); every gate block is zero-padded
# to Hp = ceil(H/128)*128 lanes and reordered [i, f, o, g]; layer-2 weights are
# fused with Whh1 into the staggered block matrix (bf16).
# ---------------------------------------------------------------------------
def init_params(key, n_features, c_dim, hidden_dim, lane=128):
    F, C, H = n_features, c_dim, hidden_dim
    D = F + C
    Hp = ((H + lane - 1) // lane) * lane
    k = 1.0 / np.sqrt(H)
    keys = jax.random.split(key, 8)
    u = lambda kk, shape: jax.random.uniform(kk, shape, jnp.float32, -k, k)
    # PyTorch shapes: weight_ih_l0 (4H, D), weight_hh_l* (4H, H), biases (4H,)
    w_ih_l0, w_hh_l0 = u(keys[0], (4 * H, D)), u(keys[1], (4 * H, H))
    b_ih_l0, b_hh_l0 = u(keys[2], (4 * H,)), u(keys[3], (4 * H,))
    w_ih_l1, w_hh_l1 = u(keys[4], (4 * H, H)), u(keys[5], (4 * H, H))
    b_ih_l1, b_hh_l1 = u(keys[6], (4 * H,)), u(keys[7], (4 * H,))

    # Unpadded, transposed params for the pure-JAX (strict f32) reference.
    ref = {
        "wih1": w_ih_l0.T, "whh1": w_hh_l0.T, "b1": b_ih_l0 + b_hh_l0,
        "wih2": w_ih_l1.T, "whh2": w_hh_l1.T, "b2": b_ih_l1 + b_hh_l1,
    }

    def pack_gates(w_t):
        """(rows, 4H) PyTorch order [i,f,g,o] -> (rows, 4Hp) order [i,f,o,g],
        each gate zero-padded to Hp lanes."""
        rows = w_t.shape[0]
        w4 = w_t.reshape(rows, 4, H)[:, jnp.array([0, 1, 3, 2]), :]
        return (jnp.zeros((rows, 4, Hp), w_t.dtype).at[:, :, :H].set(w4)
                .reshape(rows, 4 * Hp))

    def pad_rows(w):
        return jnp.zeros((Hp, w.shape[1]), w.dtype).at[:H, :].set(w)

    wih1_t = w_ih_l0.T                                    # (D, 4H)
    wx1 = pack_gates(wih1_t[:F])                          # (F, 4Hp)  x columns
    wc1 = pack_gates(wih1_t[F:])                          # (C, 4Hp)  c columns
    b1 = pack_gates((b_ih_l0 + b_hh_l0)[None, :])         # (1, 4Hp)
    b2 = pack_gates((b_ih_l1 + b_hh_l1)[None, :])         # (1, 4Hp)
    whh1 = pad_rows(pack_gates(w_hh_l0.T))                # (Hp, 4Hp)
    wih2 = pad_rows(pack_gates(w_ih_l1.T))                # (Hp, 4Hp)
    whh2 = pad_rows(pack_gates(w_hh_l1.T))                # (Hp, 4Hp)
    # Staggered fused block matrix: [h1 | h2] @ [[Whh1, Wih2], [0, Whh2]].
    wf = jnp.concatenate(
        [jnp.concatenate([whh1, wih2], axis=1),
         jnp.concatenate([jnp.zeros_like(whh1), whh2], axis=1)], axis=0,
    ).astype(jnp.bfloat16)                                # (2Hp, 8Hp) bf16

    kern = {"wx1": wx1, "wc1": wc1, "b1": b1, "wf": wf, "b2": b2}
    return kern, ref


# ---------------------------------------------------------------------------
# Pure-JAX reference (mirrors nn.LSTM, num_layers=2, batch_first, dropout=0),
# strict f32 matmuls.
# ---------------------------------------------------------------------------
def reference_forward(x, c, rp, hidden_dim):
    B, T, _ = x.shape
    H = hidden_dim
    c_repeat = jnp.broadcast_to(c[:, None, :], (B, T, c.shape[-1]))
    xin = jnp.concatenate([x, c_repeat], axis=2)

    def cell(h, cc, inp, wih, whh, b):
        g = (jnp.dot(inp, wih, precision=lax.Precision.HIGHEST)
             + jnp.dot(h, whh, precision=lax.Precision.HIGHEST) + b)
        i = jax.nn.sigmoid(g[:, :H])
        f = jax.nn.sigmoid(g[:, H:2 * H])
        gg = jnp.tanh(g[:, 2 * H:3 * H])
        o = jax.nn.sigmoid(g[:, 3 * H:])
        cc = f * cc + i * gg
        h = o * jnp.tanh(cc)
        return h, cc

    def step(carry, x_t):
        h1, c1, h2, c2 = carry
        h1, c1 = cell(h1, c1, x_t, rp["wih1"], rp["whh1"], rp["b1"])
        h2, c2 = cell(h2, c2, h1, rp["wih2"], rp["whh2"], rp["b2"])
        return (h1, c1, h2, c2), None

    z = jnp.zeros((B, H), jnp.float32)
    (_, _, h2, _), _ = lax.scan(step, (z, z, z, z), jnp.transpose(xin, (1, 0, 2)))
    return h2


if __name__ == "__main__":
    B, T, n_features, c_dim, hidden_dim = 2, 8, 4, 4, 32

    key = jax.random.PRNGKey(0)
    kx, kc, kp = jax.random.split(key, 3)
    x = jax.random.normal(kx, (B, T, n_features), jnp.float32)
    c = jax.random.normal(kc, (B, c_dim), jnp.float32)
    kernel_params, ref_params = init_params(kp, n_features, c_dim, hidden_dim)

    out = arae_encoder_forward(x, c, kernel_params, hidden_dim=hidden_dim)
    out = jax.block_until_ready(out)
    assert out.shape == (B, hidden_dim)

    ref = jax.block_until_ready(reference_forward(x, c, ref_params, hidden_dim))
    # bf16 MXU operands on the recurrent critical path (perf-review item) =>
    # tolerance relaxed from 1e-4 to 2e-2 vs. the strict-f32 reference.
    np.testing.assert_allclose(np.asarray(out), np.asarray(ref), rtol=2e-2, atol=2e-2)

    print("KERNEL_OK")
</pallas_src>

<mosaic_0001>
module attributes {stable_mosaic.version = 11 : i64} {
  func.func @_arae_lstm2_kernel(%arg0: memref<8x2x4xf32, #tpu.memory_space<vmem>>, %arg1: memref<2x4xf32, #tpu.memory_space<vmem>>, %arg2: memref<4x512xf32, #tpu.memory_space<vmem>>, %arg3: memref<4x512xf32, #tpu.memory_space<vmem>>, %arg4: memref<1x512xf32, #tpu.memory_space<vmem>>, %arg5: memref<256x1024xbf16, #tpu.memory_space<vmem>>, %arg6: memref<1x512xf32, #tpu.memory_space<vmem>>, %arg7: memref<2x128xf32, #tpu.memory_space<vmem>>, %arg8: memref<9x2x512xf32, #tpu.memory_space<vmem>>) attributes {dimension_semantics = [], scalar_prefetch = 0 : i64, scratch_operands = 1 : i64, tpu.core_type = #tpu.core_type<tc>} {
    %c0 = arith.constant 0 : index
    %c0_0 = arith.constant 0 : index
    %c0_1 = arith.constant 0 : index
    %0 = vector.load %arg0[%c0, %c0_0, %c0_1] : memref<8x2x4xf32, #tpu.memory_space<vmem>>, vector<8x2x4xf32>
    %c0_2 = arith.constant 0 : index
    %c0_3 = arith.constant 0 : index
    %1 = vector.load %arg1[%c0_2, %c0_3] : memref<2x4xf32, #tpu.memory_space<vmem>>, vector<2x4xf32>
    %c0_4 = arith.constant 0 : index
    %c0_5 = arith.constant 0 : index
    %2 = vector.load %arg2[%c0_4, %c0_5] : memref<4x512xf32, #tpu.memory_space<vmem>>, vector<4x512xf32>
    %c0_6 = arith.constant 0 : index
    %c0_7 = arith.constant 0 : index
    %3 = vector.load %arg3[%c0_6, %c0_7] : memref<4x512xf32, #tpu.memory_space<vmem>>, vector<4x512xf32>
    %c0_8 = arith.constant 0 : index
    %c0_9 = arith.constant 0 : index
    %4 = vector.load %arg5[%c0_8, %c0_9] : memref<256x1024xbf16, #tpu.memory_space<vmem>>, vector<256x1024xbf16>
    %c0_10 = arith.constant 0 : index
    %c0_11 = arith.constant 0 : index
    %5 = vector.load %arg6[%c0_10, %c0_11] : memref<1x512xf32, #tpu.memory_space<vmem>>, vector<1x512xf32>
    %6 = vector.shape_cast %5 : vector<1x512xf32> to vector<1x512xf32>
    %7 = vector.broadcast %6 : vector<1x512xf32> to vector<2x512xf32>
    %c0_12 = arith.constant 0 : index
    %c0_13 = arith.constant 0 : index
    %8 = vector.load %arg4[%c0_12, %c0_13] : memref<1x512xf32, #tpu.memory_space<vmem>>, vector<1x512xf32>
    %9 = vector.shape_cast %8 : vector<1x512xf32> to vector<1x512xf32>
    %10 = vector.broadcast %9 : vector<1x512xf32> to vector<2x512xf32>
    %11 = vector.extract_strided_slice %1 {offsets = [0, 0], sizes = [2, 1], strides = [1, 1]} : vector<2x4xf32> to vector<2x1xf32>
    %12 = vector.extract_strided_slice %3 {offsets = [0, 0], sizes = [1, 512], strides = [1, 1]} : vector<4x512xf32> to vector<1x512xf32>
    %13 = vector.broadcast %11 : vector<2x1xf32> to vector<2x512xf32>
    %14 = vector.broadcast %12 : vector<1x512xf32> to vector<2x512xf32>
    %15 = arith.mulf %13, %14 : vector<2x512xf32>
    %16 = arith.addf %10, %15 : vector<2x512xf32>
    %17 = vector.extract_strided_slice %1 {offsets = [0, 1], sizes = [2, 1], strides = [1, 1]} : vector<2x4xf32> to vector<2x1xf32>
    %18 = vector.extract_strided_slice %3 {offsets = [1, 0], sizes = [1, 512], strides = [1, 1]} : vector<4x512xf32> to vector<1x512xf32>
    %19 = vector.broadcast %17 : vector<2x1xf32> to vector<2x512xf32>
    %20 = vector.broadcast %18 : vector<1x512xf32> to vector<2x512xf32>
    %21 = arith.mulf %19, %20 : vector<2x512xf32>
    %22 = arith.addf %16, %21 : vector<2x512xf32>
    %23 = vector.extract_strided_slice %1 {offsets = [0, 2], sizes = [2, 1], strides = [1, 1]} : vector<2x4xf32> to vector<2x1xf32>
    %24 = vector.extract_strided_slice %3 {offsets = [2, 0], sizes = [1, 512], strides = [1, 1]} : vector<4x512xf32> to vector<1x512xf32>
    %25 = vector.broadcast %23 : vector<2x1xf32> to vector<2x512xf32>
    %26 = vector.broadcast %24 : vector<1x512xf32> to vector<2x512xf32>
    %27 = arith.mulf %25, %26 : vector<2x512xf32>
    %28 = arith.addf %22, %27 : vector<2x512xf32>
    %29 = vector.extract_strided_slice %1 {offsets = [0, 3], sizes = [2, 1], strides = [1, 1]} : vector<2x4xf32> to vector<2x1xf32>
    %30 = vector.extract_strided_slice %3 {offsets = [3, 0], sizes = [1, 512], strides = [1, 1]} : vector<4x512xf32> to vector<1x512xf32>
    %31 = vector.broadcast %29 : vector<2x1xf32> to vector<2x512xf32>
    %32 = vector.broadcast %30 : vector<1x512xf32> to vector<2x512xf32>
    %33 = arith.mulf %31, %32 : vector<2x512xf32>
    %34 = arith.addf %28, %33 : vector<2x512xf32>
    %35 = vector.shape_cast %34 : vector<2x512xf32> to vector<1x2x512xf32>
    %36 = vector.shape_cast %35 : vector<1x2x512xf32> to vector<1x2x512xf32>
    %37 = vector.broadcast %36 : vector<1x2x512xf32> to vector<8x2x512xf32>
    %38 = vector.extract_strided_slice %0 {offsets = [0, 0, 0], sizes = [8, 2, 1], strides = [1, 1, 1]} : vector<8x2x4xf32> to vector<8x2x1xf32>
    %39 = vector.extract_strided_slice %2 {offsets = [0, 0], sizes = [1, 512], strides = [1, 1]} : vector<4x512xf32> to vector<1x512xf32>
    %40 = vector.shape_cast %39 : vector<1x512xf32> to vector<1x1x512xf32>
    %41 = vector.broadcast %38 : vector<8x2x1xf32> to vector<8x2x512xf32>
    %42 = vector.broadcast %40 : vector<1x1x512xf32> to vector<8x2x512xf32>
    %43 = arith.mulf %41, %42 : vector<8x2x512xf32>
    %44 = arith.addf %37, %43 : vector<8x2x512xf32>
    %45 = vector.extract_strided_slice %0 {offsets = [0, 0, 1], sizes = [8, 2, 1], strides = [1, 1, 1]} : vector<8x2x4xf32> to vector<8x2x1xf32>
    %46 = vector.extract_strided_slice %2 {offsets = [1, 0], sizes = [1, 512], strides = [1, 1]} : vector<4x512xf32> to vector<1x512xf32>
    %47 = vector.shape_cast %46 : vector<1x512xf32> to vector<1x1x512xf32>
    %48 = vector.broadcast %45 : vector<8x2x1xf32> to vector<8x2x512xf32>
    %49 = vector.broadcast %47 : vector<1x1x512xf32> to vector<8x2x512xf32>
    %50 = arith.mulf %48, %49 : vector<8x2x512xf32>
    %51 = arith.addf %44, %50 : vector<8x2x512xf32>
    %52 = vector.extract_strided_slice %0 {offsets = [0, 0, 2], sizes = [8, 2, 1], strides = [1, 1, 1]} : vector<8x2x4xf32> to vector<8x2x1xf32>
    %53 = vector.extract_strided_slice %2 {offsets = [2, 0], sizes = [1, 512], strides = [1, 1]} : vector<4x512xf32> to vector<1x512xf32>
    %54 = vector.shape_cast %53 : vector<1x512xf32> to vector<1x1x512xf32>
    %55 = vector.broadcast %52 : vector<8x2x1xf32> to vector<8x2x512xf32>
    %56 = vector.broadcast %54 : vector<1x1x512xf32> to vector<8x2x512xf32>
    %57 = arith.mulf %55, %56 : vector<8x2x512xf32>
    %58 = arith.addf %51, %57 : vector<8x2x512xf32>
    %59 = vector.extract_strided_slice %0 {offsets = [0, 0, 3], sizes = [8, 2, 1], strides = [1, 1, 1]} : vector<8x2x4xf32> to vector<8x2x1xf32>
    %60 = vector.extract_strided_slice %2 {offsets = [3, 0], sizes = [1, 512], strides = [1, 1]} : vector<4x512xf32> to vector<1x512xf32>
    %61 = vector.shape_cast %60 : vector<1x512xf32> to vector<1x1x512xf32>
    %62 = vector.broadcast %59 : vector<8x2x1xf32> to vector<8x2x512xf32>
    %63 = vector.broadcast %61 : vector<1x1x512xf32> to vector<8x2x512xf32>
    %64 = arith.mulf %62, %63 : vector<8x2x512xf32>
    %65 = arith.addf %58, %64 : vector<8x2x512xf32>
    %cst = arith.constant 0.000000e+00 : f32
    %66 = vector.broadcast %cst : f32 to vector<1x2x512xf32>
    %67 = tpu.concatenate %65, %66 in 0 : vector<8x2x512xf32>, vector<1x2x512xf32> -> vector<9x2x512xf32>
    %c0_14 = arith.constant 0 : index
    %c0_15 = arith.constant 0 : index
    %c0_16 = arith.constant 0 : index
    %68 = vector.load %arg8[%c0_14, %c0_15, %c0_16] : memref<9x2x512xf32, #tpu.memory_space<vmem>>, vector<9x2x512xf32>
    tpu.vector_store %arg8[%c0_14, %c0_15, %c0_16], %67 {strides = array<i32>} : memref<9x2x512xf32, #tpu.memory_space<vmem>>, vector<9x2x512xf32>,
    %cst_17 = arith.constant 0.000000e+00 : f32
    %69 = vector.broadcast %cst_17 : f32 to vector<2x128xf32>
    %c0_18 = arith.constant 0 : index
    %c0_19 = arith.constant 0 : index
    %c0_20 = arith.constant 0 : index
    %70 = vector.load %arg8[%c0_18, %c0_19, %c0_20] : memref<9x2x512xf32, #tpu.memory_space<vmem>>, vector<1x2x512xf32>
    %71 = vector.shape_cast %70 : vector<1x2x512xf32> to vector<2x512xf32>
    %72 = vector.extract_strided_slice %71 {offsets = [0, 0], sizes = [2, 384], strides = [1, 1]} : vector<2x512xf32> to vector<2x384xf32>
    %73 = arith.negf %72 : vector<2x384xf32>
    %74 = math.exp %73 : vector<2x384xf32>
    %cst_21 = arith.constant 1.000000e+00 : f32
    %75 = vector.broadcast %cst_21 : f32 to vector<2x384xf32>
    %76 = arith.addf %75, %74 : vector<2x384xf32>
    %77 = arith.divf %75, %76 : vector<2x384xf32>
    %78 = vector.extract_strided_slice %77 {offsets = [0, 0], sizes = [2, 128], strides = [1, 1]} : vector<2x384xf32> to vector<2x128xf32>
    %79 = vector.extract_strided_slice %77 {offsets = [0, 128], sizes = [2, 128], strides = [1, 1]} : vector<2x384xf32> to vector<2x128xf32>
    %80 = vector.extract_strided_slice %77 {offsets = [0, 256], sizes = [2, 128], strides = [1, 1]} : vector<2x384xf32> to vector<2x128xf32>
    %81 = vector.extract_strided_slice %71 {offsets = [0, 384], sizes = [2, 128], strides = [1, 1]} : vector<2x512xf32> to vector<2x128xf32>
    %82 = math.tanh %81 : vector<2x128xf32>
    %83 = arith.mulf %79, %69 : vector<2x128xf32>
    %84 = arith.mulf %78, %82 : vector<2x128xf32>
    %85 = arith.addf %83, %84 : vector<2x128xf32>
    %86 = math.tanh %85 : vector<2x128xf32>
    %87 = arith.mulf %80, %86 : vector<2x128xf32>
    %c0_i32 = arith.constant 0 : i32
    %88 = tpu.concatenate %87, %69 in 1 : vector<2x128xf32>, vector<2x128xf32> -> vector<2x256xf32>
    %89 = arith.truncf %88 : vector<2x256xf32> to vector<2x256xbf16>
    %cst_22 = arith.constant dense<0.000000e+00> : vector<2x1024xf32>
    %90 = tpu.matmul %89, %4, %cst_22 {dimension_numbers = #tpu.dot_dimension_numbers<[1], [0], [0], [1], [0, 0, 1, 1], [], []>} : vector<2x256xbf16>, vector<256x1024xbf16>, vector<2x1024xf32> -> vector<2x1024xf32>
    %91 = vector.extract_strided_slice %90 {offsets = [0, 0], sizes = [2, 512], strides = [1, 1]} : vector<2x1024xf32> to vector<2x512xf32>
    %c1_i32 = arith.constant 1 : i32
    %92 = arith.addi %c0_i32, %c1_i32 : i32
    %93 = arith.index_cast %92 : i32 to index
    %c0_23 = arith.constant 0 : index
    %c0_24 = arith.constant 0 : index
    %94 = vector.load %arg8[%93, %c0_23, %c0_24] : memref<9x2x512xf32, #tpu.memory_space<vmem>>, vector<1x2x512xf32>
    %95 = vector.shape_cast %94 : vector<1x2x512xf32> to vector<2x512xf32>
    %96 = arith.addf %91, %95 : vector<2x512xf32>
    %97 = vector.extract_strided_slice %96 {offsets = [0, 0], sizes = [2, 384], strides = [1, 1]} : vector<2x512xf32> to vector<2x384xf32>
    %98 = arith.negf %97 : vector<2x384xf32>
    %99 = math.exp %98 : vector<2x384xf32>
    %cst_25 = arith.constant 1.000000e+00 : f32
    %100 = vector.broadcast %cst_25 : f32 to vector<2x384xf32>
    %101 = arith.addf %100, %99 : vector<2x384xf32>
    %102 = arith.divf %100, %101 : vector<2x384xf32>
    %103 = vector.extract_strided_slice %102 {offsets = [0, 0], sizes = [2, 128], strides = [1, 1]} : vector<2x384xf32> to vector<2x128xf32>
    %104 = vector.extract_strided_slice %102 {offsets = [0, 128], sizes = [2, 128], strides = [1, 1]} : vector<2x384xf32> to vector<2x128xf32>
    %105 = vector.extract_strided_slice %102 {offsets = [0, 256], sizes = [2, 128], strides = [1, 1]} : vector<2x384xf32> to vector<2x128xf32>
    %106 = vector.extract_strided_slice %96 {offsets = [0, 384], sizes = [2, 128], strides = [1, 1]} : vector<2x512xf32> to vector<2x128xf32>
    %107 = math.tanh %106 : vector<2x128xf32>
    %108 = arith.mulf %104, %85 : vector<2x128xf32>
    %109 = arith.mulf %103, %107 : vector<2x128xf32>
    %110 = arith.addf %108, %109 : vector<2x128xf32>
    %111 = math.tanh %110 : vector<2x128xf32>
    %112 = arith.mulf %105, %111 : vector<2x128xf32>
    %113 = vector.extract_strided_slice %90 {offsets = [0, 512], sizes = [2, 512], strides = [1, 1]} : vector<2x1024xf32> to vector<2x512xf32>
    %114 = arith.addf %113, %7 : vector<2x512xf32>
    %115 = vector.extract_strided_slice %114 {offsets = [0, 0], sizes = [2, 384], strides = [1, 1]} : vector<2x512xf32> to vector<2x384xf32>
    %116 = arith.negf %115 : vector<2x384xf32>
    %117 = math.exp %116 : vector<2x384xf32>
    %cst_26 = arith.constant 1.000000e+00 : f32
    %118 = vector.broadcast %cst_26 : f32 to vector<2x384xf32>
    %119 = arith.addf %118, %117 : vector<2x384xf32>
    %120 = arith.divf %118, %119 : vector<2x384xf32>
    %121 = vector.extract_strided_slice %120 {offsets = [0, 0], sizes = [2, 128], strides = [1, 1]} : vector<2x384xf32> to vector<2x128xf32>
    %122 = vector.extract_strided_slice %120 {offsets = [0, 128], sizes = [2, 128], strides = [1, 1]} : vector<2x384xf32> to vector<2x128xf32>
    %123 = vector.extract_strided_slice %120 {offsets = [0, 256], sizes = [2, 128], strides = [1, 1]} : vector<2x384xf32> to vector<2x128xf32>
    %124 = vector.extract_strided_slice %114 {offsets = [0, 384], sizes = [2, 128], strides = [1, 1]} : vector<2x512xf32> to vector<2x128xf32>
    %125 = math.tanh %124 : vector<2x128xf32>
    %126 = arith.mulf %122, %69 : vector<2x128xf32>
    %127 = arith.mulf %121, %125 : vector<2x128xf32>
    %128 = arith.addf %126, %127 : vector<2x128xf32>
    %129 = math.tanh %128 : vector<2x128xf32>
    %130 = arith.mulf %123, %129 : vector<2x128xf32>
    %c1_i32_27 = arith.constant 1 : i32
    %131 = tpu.concatenate %112, %130 in 1 : vector<2x128xf32>, vector<2x128xf32> -> vector<2x256xf32>
    %132 = arith.truncf %131 : vector<2x256xf32> to vector<2x256xbf16>
    %cst_28 = arith.constant dense<0.000000e+00> : vector<2x1024xf32>
    %133 = tpu.matmul %132, %4, %cst_28 {dimension_numbers = #tpu.dot_dimension_numbers<[1], [0], [0], [1], [0, 0, 1, 1], [], []>} : vector<2x256xbf16>, vector<256x1024xbf16>, vector<2x1024xf32> -> vector<2x1024xf32>
    %134 = vector.extract_strided_slice %133 {offsets = [0, 0], sizes = [2, 512], strides = [1, 1]} : vector<2x1024xf32> to vector<2x512xf32>
    %c1_i32_29 = arith.constant 1 : i32
    %135 = arith.addi %c1_i32_27, %c1_i32_29 : i32
    %136 = arith.index_cast %135 : i32 to index
    %c0_30 = arith.constant 0 : index
    %c0_31 = arith.constant 0 : index
    %137 = vector.load %arg8[%136, %c0_30, %c0_31] : memref<9x2x512xf32, #tpu.memory_space<vmem>>, vector<1x2x512xf32>
    %138 = vector.shape_cast %137 : vector<1x2x512xf32> to vector<2x512xf32>
    %139 = arith.addf %134, %138 : vector<2x512xf32>
    %140 = vector.extract_strided_slice %139 {offsets = [0, 0], sizes = [2, 384], strides = [1, 1]} : vector<2x512xf32> to vector<2x384xf32>
    %141 = arith.negf %140 : vector<2x384xf32>
    %142 = math.exp %141 : vector<2x384xf32>
    %cst_32 = arith.constant 1.000000e+00 : f32
    %143 = vector.broadcast %cst_32 : f32 to vector<2x384xf32>
    %144 = arith.addf %143, %142 : vector<2x384xf32>
    %145 = arith.divf %143, %144 : vector<2x384xf32>
    %146 = vector.extract_strided_slice %145 {offsets = [0, 0], sizes = [2, 128], strides = [1, 1]} : vector<2x384xf32> to vector<2x128xf32>
    %147 = vector.extract_strided_slice %145 {offsets = [0, 128], sizes = [2, 128], strides = [1, 1]} : vector<2x384xf32> to vector<2x128xf32>
    %148 = vector.extract_strided_slice %145 {offsets = [0, 256], sizes = [2, 128], strides = [1, 1]} : vector<2x384xf32> to vector<2x128xf32>
    %149 = vector.extract_strided_slice %139 {offsets = [0, 384], sizes = [2, 128], strides = [1, 1]} : vector<2x512xf32> to vector<2x128xf32>
    %150 = math.tanh %149 : vector<2x128xf32>
    %151 = arith.mulf %147, %110 : vector<2x128xf32>
    %152 = arith.mulf %146, %150 : vector<2x128xf32>
    %153 = arith.addf %151, %152 : vector<2x128xf32>
    %154 = math.tanh %153 : vector<2x128xf32>
    %155 = arith.mulf %148, %154 : vector<2x128xf32>
    %156 = vector.extract_strided_slice %133 {offsets = [0, 512], sizes = [2, 512], strides = [1, 1]} : vector<2x1024xf32> to vector<2x512xf32>
    %157 = arith.addf %156, %7 : vector<2x512xf32>
    %158 = vector.extract_strided_slice %157 {offsets = [0, 0], sizes = [2, 384], strides = [1, 1]} : vector<2x512xf32> to vector<2x384xf32>
    %159 = arith.negf %158 : vector<2x384xf32>
    %160 = math.exp %159 : vector<2x384xf32>
    %cst_33 = arith.constant 1.000000e+00 : f32
    %161 = vector.broadcast %cst_33 : f32 to vector<2x384xf32>
    %162 = arith.addf %161, %160 : vector<2x384xf32>
    %163 = arith.divf %161, %162 : vector<2x384xf32>
    %164 = vector.extract_strided_slice %163 {offsets = [0, 0], sizes = [2, 128], strides = [1, 1]} : vector<2x384xf32> to vector<2x128xf32>
    %165 = vector.extract_strided_slice %163 {offsets = [0, 128], sizes = [2, 128], strides = [1, 1]} : vector<2x384xf32> to vector<2x128xf32>
    %166 = vector.extract_strided_slice %163 {offsets = [0, 256], sizes = [2, 128], strides = [1, 1]} : vector<2x384xf32> to vector<2x128xf32>
    %167 = vector.extract_strided_slice %157 {offsets = [0, 384], sizes = [2, 128], strides = [1, 1]} : vector<2x512xf32> to vector<2x128xf32>
    %168 = math.tanh %167 : vector<2x128xf32>
    %169 = arith.mulf %165, %128 : vector<2x128xf32>
    %170 = arith.mulf %164, %168 : vector<2x128xf32>
    %171 = arith.addf %169, %170 : vector<2x128xf32>
    %172 = math.tanh %171 : vector<2x128xf32>
    %173 = arith.mulf %166, %172 : vector<2x128xf32>
    %c2_i32 = arith.constant 2 : i32
    %174 = tpu.concatenate %155, %173 in 1 : vector<2x128xf32>, vector<2x128xf32> -> vector<2x256xf32>
    %175 = arith.truncf %174 : vector<2x256xf32> to vector<2x256xbf16>
    %cst_34 = arith.constant dense<0.000000e+00> : vector<2x1024xf32>
    %176 = tpu.matmul %175, %4, %cst_34 {dimension_numbers = #tpu.dot_dimension_numbers<[1], [0], [0], [1], [0, 0, 1, 1], [], []>} : vector<2x256xbf16>, vector<256x1024xbf16>, vector<2x1024xf32> -> vector<2x1024xf32>
    %177 = vector.extract_strided_slice %176 {offsets = [0, 0], sizes = [2, 512], strides = [1, 1]} : vector<2x1024xf32> to vector<2x512xf32>
    %c1_i32_35 = arith.constant 1 : i32
    %178 = arith.addi %c2_i32, %c1_i32_35 : i32
    %179 = arith.index_cast %178 : i32 to index
    %c0_36 = arith.constant 0 : index
    %c0_37 = arith.constant 0 : index
    %180 = vector.load %arg8[%179, %c0_36, %c0_37] : memref<9x2x512xf32, #tpu.memory_space<vmem>>, vector<1x2x512xf32>
    %181 = vector.shape_cast %180 : vector<1x2x512xf32> to vector<2x512xf32>
    %182 = arith.addf %177, %181 : vector<2x512xf32>
    %183 = vector.extract_strided_slice %182 {offsets = [0, 0], sizes = [2, 384], strides = [1, 1]} : vector<2x512xf32> to vector<2x384xf32>
    %184 = arith.negf %183 : vector<2x384xf32>
    %185 = math.exp %184 : vector<2x384xf32>
    %cst_38 = arith.constant 1.000000e+00 : f32
    %186 = vector.broadcast %cst_38 : f32 to vector<2x384xf32>
    %187 = arith.addf %186, %185 : vector<2x384xf32>
    %188 = arith.divf %186, %187 : vector<2x384xf32>
    %189 = vector.extract_strided_slice %188 {offsets = [0, 0], sizes = [2, 128], strides = [1, 1]} : vector<2x384xf32> to vector<2x128xf32>
    %190 = vector.extract_strided_slice %188 {offsets = [0, 128], sizes = [2, 128], strides = [1, 1]} : vector<2x384xf32> to vector<2x128xf32>
    %191 = vector.extract_strided_slice %188 {offsets = [0, 256], sizes = [2, 128], strides = [1, 1]} : vector<2x384xf32> to vector<2x128xf32>
    %192 = vector.extract_strided_slice %182 {offsets = [0, 384], sizes = [2, 128], strides = [1, 1]} : vector<2x512xf32> to vector<2x128xf32>
    %193 = math.tanh %192 : vector<2x128xf32>
    %194 = arith.mulf %190, %153 : vector<2x128xf32>
    %195 = arith.mulf %189, %193 : vector<2x128xf32>
    %196 = arith.addf %194, %195 : vector<2x128xf32>
    %197 = math.tanh %196 : vector<2x128xf32>
    %198 = arith.mulf %191, %197 : vector<2x128xf32>
    %199 = vector.extract_strided_slice %176 {offsets = [0, 512], sizes = [2, 512], strides = [1, 1]} : vector<2x1024xf32> to vector<2x512xf32>
    %200 = arith.addf %199, %7 : vector<2x512xf32>
    %201 = vector.extract_strided_slice %200 {offsets = [0, 0], sizes = [2, 384], strides = [1, 1]} : vector<2x512xf32> to vector<2x384xf32>
    %202 = arith.negf %201 : vector<2x384xf32>
    %203 = math.exp %202 : vector<2x384xf32>
    %cst_39 = arith.constant 1.000000e+00 : f32
    %204 = vector.broadcast %cst_39 : f32 to vector<2x384xf32>
    %205 = arith.addf %204, %203 : vector<2x384xf32>
    %206 = arith.divf %204, %205 : vector<2x384xf32>
    %207 = vector.extract_strided_slice %206 {offsets = [0, 0], sizes = [2, 128], strides = [1, 1]} : vector<2x384xf32> to vector<2x128xf32>
    %208 = vector.extract_strided_slice %206 {offsets = [0, 128], sizes = [2, 128], strides = [1, 1]} : vector<2x384xf32> to vector<2x128xf32>
    %209 = vector.extract_strided_slice %206 {offsets = [0, 256], sizes = [2, 128], strides = [1, 1]} : vector<2x384xf32> to vector<2x128xf32>
    %210 = vector.extract_strided_slice %200 {offsets = [0, 384], sizes = [2, 128], strides = [1, 1]} : vector<2x512xf32> to vector<2x128xf32>
    %211 = math.tanh %210 : vector<2x128xf32>
    %212 = arith.mulf %208, %171 : vector<2x128xf32>
    %213 = arith.mulf %207, %211 : vector<2x128xf32>
    %214 = arith.addf %212, %213 : vector<2x128xf32>
    %215 = math.tanh %214 : vector<2x128xf32>
    %216 = arith.mulf %209, %215 : vector<2x128xf32>
    %c3_i32 = arith.constant 3 : i32
    %217 = tpu.concatenate %198, %216 in 1 : vector<2x128xf32>, vector<2x128xf32> -> vector<2x256xf32>
    %218 = arith.truncf %217 : vector<2x256xf32> to vector<2x256xbf16>
    %cst_40 = arith.constant dense<0.000000e+00> : vector<2x1024xf32>
    %219 = tpu.matmul %218, %4, %cst_40 {dimension_numbers = #tpu.dot_dimension_numbers<[1], [0], [0], [1], [0, 0, 1, 1], [], []>} : vector<2x256xbf16>, vector<256x1024xbf16>, vector<2x1024xf32> -> vector<2x1024xf32>
    %220 = vector.extract_strided_slice %219 {offsets = [0, 0], sizes = [2, 512], strides = [1, 1]} : vector<2x1024xf32> to vector<2x512xf32>
    %c1_i32_41 = arith.constant 1 : i32
    %221 = arith.addi %c3_i32, %c1_i32_41 : i32
    %222 = arith.index_cast %221 : i32 to index
    %c0_42 = arith.constant 0 : index
    %c0_43 = arith.constant 0 : index
    %223 = vector.load %arg8[%222, %c0_42, %c0_43] : memref<9x2x512xf32, #tpu.memory_space<vmem>>, vector<1x2x512xf32>
    %224 = vector.shape_cast %223 : vector<1x2x512xf32> to vector<2x512xf32>
    %225 = arith.addf %220, %224 : vector<2x512xf32>
    %226 = vector.extract_strided_slice %225 {offsets = [0, 0], sizes = [2, 384], strides = [1, 1]} : vector<2x512xf32> to vector<2x384xf32>
    %227 = arith.negf %226 : vector<2x384xf32>
    %228 = math.exp %227 : vector<2x384xf32>
    %cst_44 = arith.constant 1.000000e+00 : f32
    %229 = vector.broadcast %cst_44 : f32 to vector<2x384xf32>
    %230 = arith.addf %229, %228 : vector<2x384xf32>
    %231 = arith.divf %229, %230 : vector<2x384xf32>
    %232 = vector.extract_strided_slice %231 {offsets = [0, 0], sizes = [2, 128], strides = [1, 1]} : vector<2x384xf32> to vector<2x128xf32>
    %233 = vector.extract_strided_slice %231 {offsets = [0, 128], sizes = [2, 128], strides = [1, 1]} : vector<2x384xf32> to vector<2x128xf32>
    %234 = vector.extract_strided_slice %231 {offsets = [0, 256], sizes = [2, 128], strides = [1, 1]} : vector<2x384xf32> to vector<2x128xf32>
    %235 = vector.extract_strided_slice %225 {offsets = [0, 384], sizes = [2, 128], strides = [1, 1]} : vector<2x512xf32> to vector<2x128xf32>
    %236 = math.tanh %235 : vector<2x128xf32>
    %237 = arith.mulf %233, %196 : vector<2x128xf32>
    %238 = arith.mulf %232, %236 : vector<2x128xf32>
    %239 = arith.addf %237, %238 : vector<2x128xf32>
    %240 = math.tanh %239 : vector<2x128xf32>
    %241 = arith.mulf %234, %240 : vector<2x128xf32>
    %242 = vector.extract_strided_slice %219 {offsets = [0, 512], sizes = [2, 512], strides = [1, 1]} : vector<2x1024xf32> to vector<2x512xf32>
    %243 = arith.addf %242, %7 : vector<2x512xf32>
    %244 = vector.extract_strided_slice %243 {offsets = [0, 0], sizes = [2, 384], strides = [1, 1]} : vector<2x512xf32> to vector<2x384xf32>
    %245 = arith.negf %244 : vector<2x384xf32>
    %246 = math.exp %245 : vector<2x384xf32>
    %cst_45 = arith.constant 1.000000e+00 : f32
    %247 = vector.broadcast %cst_45 : f32 to vector<2x384xf32>
    %248 = arith.addf %247, %246 : vector<2x384xf32>
    %249 = arith.divf %247, %248 : vector<2x384xf32>
    %250 = vector.extract_strided_slice %249 {offsets = [0, 0], sizes = [2, 128], strides = [1, 1]} : vector<2x384xf32> to vector<2x128xf32>
    %251 = vector.extract_strided_slice %249 {offsets = [0, 128], sizes = [2, 128], strides = [1, 1]} : vector<2x384xf32> to vector<2x128xf32>
    %252 = vector.extract_strided_slice %249 {offsets = [0, 256], sizes = [2, 128], strides = [1, 1]} : vector<2x384xf32> to vector<2x128xf32>
    %253 = vector.extract_strided_slice %243 {offsets = [0, 384], sizes = [2, 128], strides = [1, 1]} : vector<2x512xf32> to vector<2x128xf32>
    %254 = math.tanh %253 : vector<2x128xf32>
    %255 = arith.mulf %251, %214 : vector<2x128xf32>
    %256 = arith.mulf %250, %254 : vector<2x128xf32>
    %257 = arith.addf %255, %256 : vector<2x128xf32>
    %258 = math.tanh %257 : vector<2x128xf32>
    %259 = arith.mulf %252, %258 : vector<2x128xf32>
    %c4_i32 = arith.constant 4 : i32
    %260 = tpu.concatenate %241, %259 in 1 : vector<2x128xf32>, vector<2x128xf32> -> vector<2x256xf32>
    %261 = arith.truncf %260 : vector<2x256xf32> to vector<2x256xbf16>
    %cst_46 = arith.constant dense<0.000000e+00> : vector<2x1024xf32>
    %262 = tpu.matmul %261, %4, %cst_46 {dimension_numbers = #tpu.dot_dimension_numbers<[1], [0], [0], [1], [0, 0, 1, 1], [], []>} : vector<2x256xbf16>, vector<256x1024xbf16>, vector<2x1024xf32> -> vector<2x1024xf32>
    %263 = vector.extract_strided_slice %262 {offsets = [0, 0], sizes = [2, 512], strides = [1, 1]} : vector<2x1024xf32> to vector<2x512xf32>
    %c1_i32_47 = arith.constant 1 : i32
    %264 = arith.addi %c4_i32, %c1_i32_47 : i32
    %265 = arith.index_cast %264 : i32 to index
    %c0_48 = arith.constant 0 : index
    %c0_49 = arith.constant 0 : index
    %266 = vector.load %arg8[%265, %c0_48, %c0_49] : memref<9x2x512xf32, #tpu.memory_space<vmem>>, vector<1x2x512xf32>
    %267 = vector.shape_cast %266 : vector<1x2x512xf32> to vector<2x512xf32>
    %268 = arith.addf %263, %267 : vector<2x512xf32>
    %269 = vector.extract_strided_slice %268 {offsets = [0, 0], sizes = [2, 384], strides = [1, 1]} : vector<2x512xf32> to vector<2x384xf32>
    %270 = arith.negf %269 : vector<2x384xf32>
    %271 = math.exp %270 : vector<2x384xf32>
    %cst_50 = arith.constant 1.000000e+00 : f32
    %272 = vector.broadcast %cst_50 : f32 to vector<2x384xf32>
    %273 = arith.addf %272, %271 : vector<2x384xf32>
    %274 = arith.divf %272, %273 : vector<2x384xf32>
    %275 = vector.extract_strided_slice %274 {offsets = [0, 0], sizes = [2, 128], strides = [1, 1]} : vector<2x384xf32> to vector<2x128xf32>
    %276 = vector.extract_strided_slice %274 {offsets = [0, 128], sizes = [2, 128], strides = [1, 1]} : vector<2x384xf32> to vector<2x128xf32>
    %277 = vector.extract_strided_slice %274 {offsets = [0, 256], sizes = [2, 128], strides = [1, 1]} : vector<2x384xf32> to vector<2x128xf32>
    %278 = vector.extract_strided_slice %268 {offsets = [0, 384], sizes = [2, 128], strides = [1, 1]} : vector<2x512xf32> to vector<2x128xf32>
    %279 = math.tanh %278 : vector<2x128xf32>
    %280 = arith.mulf %276, %239 : vector<2x128xf32>
    %281 = arith.mulf %275, %279 : vector<2x128xf32>
    %282 = arith.addf %280, %281 : vector<2x128xf32>
    %283 = math.tanh %282 : vector<2x128xf32>
    %284 = arith.mulf %277, %283 : vector<2x128xf32>
    %285 = vector.extract_strided_slice %262 {offsets = [0, 512], sizes = [2, 512], strides = [1, 1]} : vector<2x1024xf32> to vector<2x512xf32>
    %286 = arith.addf %285, %7 : vector<2x512xf32>
    %287 = vector.extract_strided_slice %286 {offsets = [0, 0], sizes = [2, 384], strides = [1, 1]} : vector<2x512xf32> to vector<2x384xf32>
    %288 = arith.negf %287 : vector<2x384xf32>
    %289 = math.exp %288 : vector<2x384xf32>
    %cst_51 = arith.constant 1.000000e+00 : f32
    %290 = vector.broadcast %cst_51 : f32 to vector<2x384xf32>
    %291 = arith.addf %290, %289 : vector<2x384xf32>
    %292 = arith.divf %290, %291 : vector<2x384xf32>
    %293 = vector.extract_strided_slice %292 {offsets = [0, 0], sizes = [2, 128], strides = [1, 1]} : vector<2x384xf32> to vector<2x128xf32>
    %294 = vector.extract_strided_slice %292 {offsets = [0, 128], sizes = [2, 128], strides = [1, 1]} : vector<2x384xf32> to vector<2x128xf32>
    %295 = vector.extract_strided_slice %292 {offsets = [0, 256], sizes = [2, 128], strides = [1, 1]} : vector<2x384xf32> to vector<2x128xf32>
    %296 = vector.extract_strided_slice %286 {offsets = [0, 384], sizes = [2, 128], strides = [1, 1]} : vector<2x512xf32> to vector<2x128xf32>
    %297 = math.tanh %296 : vector<2x128xf32>
    %298 = arith.mulf %294, %257 : vector<2x128xf32>
    %299 = arith.mulf %293, %297 : vector<2x128xf32>
    %300 = arith.addf %298, %299 : vector<2x128xf32>
    %301 = math.tanh %300 : vector<2x128xf32>
    %302 = arith.mulf %295, %301 : vector<2x128xf32>
    %c5_i32 = arith.constant 5 : i32
    %303 = tpu.concatenate %284, %302 in 1 : vector<2x128xf32>, vector<2x128xf32> -> vector<2x256xf32>
    %304 = arith.truncf %303 : vector<2x256xf32> to vector<2x256xbf16>
    %cst_52 = arith.constant dense<0.000000e+00> : vector<2x1024xf32>
    %305 = tpu.matmul %304, %4, %cst_52 {dimension_numbers = #tpu.dot_dimension_numbers<[1], [0], [0], [1], [0, 0, 1, 1], [], []>} : vector<2x256xbf16>, vector<256x1024xbf16>, vector<2x1024xf32> -> vector<2x1024xf32>
    %306 = vector.extract_strided_slice %305 {offsets = [0, 0], sizes = [2, 512], strides = [1, 1]} : vector<2x1024xf32> to vector<2x512xf32>
    %c1_i32_53 = arith.constant 1 : i32
    %307 = arith.addi %c5_i32, %c1_i32_53 : i32
    %308 = arith.index_cast %307 : i32 to index
    %c0_54 = arith.constant 0 : index
    %c0_55 = arith.constant 0 : index
    %309 = vector.load %arg8[%308, %c0_54, %c0_55] : memref<9x2x512xf32, #tpu.memory_space<vmem>>, vector<1x2x512xf32>
    %310 = vector.shape_cast %309 : vector<1x2x512xf32> to vector<2x512xf32>
    %311 = arith.addf %306, %310 : vector<2x512xf32>
    %312 = vector.extract_strided_slice %311 {offsets = [0, 0], sizes = [2, 384], strides = [1, 1]} : vector<2x512xf32> to vector<2x384xf32>
    %313 = arith.negf %312 : vector<2x384xf32>
    %314 = math.exp %313 : vector<2x384xf32>
    %cst_56 = arith.constant 1.000000e+00 : f32
    %315 = vector.broadcast %cst_56 : f32 to vector<2x384xf32>
    %316 = arith.addf %315, %314 : vector<2x384xf32>
    %317 = arith.divf %315, %316 : vector<2x384xf32>
    %318 = vector.extract_strided_slice %317 {offsets = [0, 0], sizes = [2, 128], strides = [1, 1]} : vector<2x384xf32> to vector<2x128xf32>
    %319 = vector.extract_strided_slice %317 {offsets = [0, 128], sizes = [2, 128], strides = [1, 1]} : vector<2x384xf32> to vector<2x128xf32>
    %320 = vector.extract_strided_slice %317 {offsets = [0, 256], sizes = [2, 128], strides = [1, 1]} : vector<2x384xf32> to vector<2x128xf32>
    %321 = vector.extract_strided_slice %311 {offsets = [0, 384], sizes = [2, 128], strides = [1, 1]} : vector<2x512xf32> to vector<2x128xf32>
    %322 = math.tanh %321 : vector<2x128xf32>
    %323 = arith.mulf %319, %282 : vector<2x128xf32>
    %324 = arith.mulf %318, %322 : vector<2x128xf32>
    %325 = arith.addf %323, %324 : vector<2x128xf32>
    %326 = math.tanh %325 : vector<2x128xf32>
    %327 = arith.mulf %320, %326 : vector<2x128xf32>
    %328 = vector.extract_strided_slice %305 {offsets = [0, 512], sizes = [2, 512], strides = [1, 1]} : vector<2x1024xf32> to vector<2x512xf32>
    %329 = arith.addf %328, %7 : vector<2x512xf32>
    %330 = vector.extract_strided_slice %329 {offsets = [0, 0], sizes = [2, 384], strides = [1, 1]} : vector<2x512xf32> to vector<2x384xf32>
    %331 = arith.negf %330 : vector<2x384xf32>
    %332 = math.exp %331 : vector<2x384xf32>
    %cst_57 = arith.constant 1.000000e+00 : f32
    %333 = vector.broadcast %cst_57 : f32 to vector<2x384xf32>
    %334 = arith.addf %333, %332 : vector<2x384xf32>
    %335 = arith.divf %333, %334 : vector<2x384xf32>
    %336 = vector.extract_strided_slice %335 {offsets = [0, 0], sizes = [2, 128], strides = [1, 1]} : vector<2x384xf32> to vector<2x128xf32>
    %337 = vector.extract_strided_slice %335 {offsets = [0, 128], sizes = [2, 128], strides = [1, 1]} : vector<2x384xf32> to vector<2x128xf32>
    %338 = vector.extract_strided_slice %335 {offsets = [0, 256], sizes = [2, 128], strides = [1, 1]} : vector<2x384xf32> to vector<2x128xf32>
    %339 = vector.extract_strided_slice %329 {offsets = [0, 384], sizes = [2, 128], strides = [1, 1]} : vector<2x512xf32> to vector<2x128xf32>
    %340 = math.tanh %339 : vector<2x128xf32>
    %341 = arith.mulf %337, %300 : vector<2x128xf32>
    %342 = arith.mulf %336, %340 : vector<2x128xf32>
    %343 = arith.addf %341, %342 : vector<2x128xf32>
    %344 = math.tanh %343 : vector<2x128xf32>
    %345 = arith.mulf %338, %344 : vector<2x128xf32>
    %c6_i32 = arith.constant 6 : i32
    %346 = tpu.concatenate %327, %345 in 1 : vector<2x128xf32>, vector<2x128xf32> -> vector<2x256xf32>
    %347 = arith.truncf %346 : vector<2x256xf32> to vector<2x256xbf16>
    %cst_58 = arith.constant dense<0.000000e+00> : vector<2x1024xf32>
    %348 = tpu.matmul %347, %4, %cst_58 {dimension_numbers = #tpu.dot_dimension_numbers<[1], [0], [0], [1], [0, 0, 1, 1], [], []>} : vector<2x256xbf16>, vector<256x1024xbf16>, vector<2x1024xf32> -> vector<2x1024xf32>
    %349 = vector.extract_strided_slice %348 {offsets = [0, 0], sizes = [2, 512], strides = [1, 1]} : vector<2x1024xf32> to vector<2x512xf32>
    %c1_i32_59 = arith.constant 1 : i32
    %350 = arith.addi %c6_i32, %c1_i32_59 : i32
    %351 = arith.index_cast %350 : i32 to index
    %c0_60 = arith.constant 0 : index
    %c0_61 = arith.constant 0 : index
    %352 = vector.load %arg8[%351, %c0_60, %c0_61] : memref<9x2x512xf32, #tpu.memory_space<vmem>>, vector<1x2x512xf32>
    %353 = vector.shape_cast %352 : vector<1x2x512xf32> to vector<2x512xf32>
    %354 = arith.addf %349, %353 : vector<2x512xf32>
    %355 = vector.extract_strided_slice %354 {offsets = [0, 0], sizes = [2, 384], strides = [1, 1]} : vector<2x512xf32> to vector<2x384xf32>
    %356 = arith.negf %355 : vector<2x384xf32>
    %357 = math.exp %356 : vector<2x384xf32>
    %cst_62 = arith.constant 1.000000e+00 : f32
    %358 = vector.broadcast %cst_62 : f32 to vector<2x384xf32>
    %359 = arith.addf %358, %357 : vector<2x384xf32>
    %360 = arith.divf %358, %359 : vector<2x384xf32>
    %361 = vector.extract_strided_slice %360 {offsets = [0, 0], sizes = [2, 128], strides = [1, 1]} : vector<2x384xf32> to vector<2x128xf32>
    %362 = vector.extract_strided_slice %360 {offsets = [0, 128], sizes = [2, 128], strides = [1, 1]} : vector<2x384xf32> to vector<2x128xf32>
    %363 = vector.extract_strided_slice %360 {offsets = [0, 256], sizes = [2, 128], strides = [1, 1]} : vector<2x384xf32> to vector<2x128xf32>
    %364 = vector.extract_strided_slice %354 {offsets = [0, 384], sizes = [2, 128], strides = [1, 1]} : vector<2x512xf32> to vector<2x128xf32>
    %365 = math.tanh %364 : vector<2x128xf32>
    %366 = arith.mulf %362, %325 : vector<2x128xf32>
    %367 = arith.mulf %361, %365 : vector<2x128xf32>
    %368 = arith.addf %366, %367 : vector<2x128xf32>
    %369 = math.tanh %368 : vector<2x128xf32>
    %370 = arith.mulf %363, %369 : vector<2x128xf32>
    %371 = vector.extract_strided_slice %348 {offsets = [0, 512], sizes = [2, 512], strides = [1, 1]} : vector<2x1024xf32> to vector<2x512xf32>
    %372 = arith.addf %371, %7 : vector<2x512xf32>
    %373 = vector.extract_strided_slice %372 {offsets = [0, 0], sizes = [2, 384], strides = [1, 1]} : vector<2x512xf32> to vector<2x384xf32>
    %374 = arith.negf %373 : vector<2x384xf32>
    %375 = math.exp %374 : vector<2x384xf32>
    %cst_63 = arith.constant 1.000000e+00 : f32
    %376 = vector.broadcast %cst_63 : f32 to vector<2x384xf32>
    %377 = arith.addf %376, %375 : vector<2x384xf32>
    %378 = arith.divf %376, %377 : vector<2x384xf32>
    %379 = vector.extract_strided_slice %378 {offsets = [0, 0], sizes = [2, 128], strides = [1, 1]} : vector<2x384xf32> to vector<2x128xf32>
    %380 = vector.extract_strided_slice %378 {offsets = [0, 128], sizes = [2, 128], strides = [1, 1]} : vector<2x384xf32> to vector<2x128xf32>
    %381 = vector.extract_strided_slice %378 {offsets = [0, 256], sizes = [2, 128], strides = [1, 1]} : vector<2x384xf32> to vector<2x128xf32>
    %382 = vector.extract_strided_slice %372 {offsets = [0, 384], sizes = [2, 128], strides = [1, 1]} : vector<2x512xf32> to vector<2x128xf32>
    %383 = math.tanh %382 : vector<2x128xf32>
    %384 = arith.mulf %380, %343 : vector<2x128xf32>
    %385 = arith.mulf %379, %383 : vector<2x128xf32>
    %386 = arith.addf %384, %385 : vector<2x128xf32>
    %387 = math.tanh %386 : vector<2x128xf32>
    %388 = arith.mulf %381, %387 : vector<2x128xf32>
    %c7_i32 = arith.constant 7 : i32
    %389 = tpu.concatenate %370, %388 in 1 : vector<2x128xf32>, vector<2x128xf32> -> vector<2x256xf32>
    %390 = arith.truncf %389 : vector<2x256xf32> to vector<2x256xbf16>
    %cst_64 = arith.constant dense<0.000000e+00> : vector<2x1024xf32>
    %391 = tpu.matmul %390, %4, %cst_64 {dimension_numbers = #tpu.dot_dimension_numbers<[1], [0], [0], [1], [0, 0, 1, 1], [], []>} : vector<2x256xbf16>, vector<256x1024xbf16>, vector<2x1024xf32> -> vector<2x1024xf32>
    %392 = vector.extract_strided_slice %391 {offsets = [0, 0], sizes = [2, 512], strides = [1, 1]} : vector<2x1024xf32> to vector<2x512xf32>
    %c1_i32_65 = arith.constant 1 : i32
    %393 = arith.addi %c7_i32, %c1_i32_65 : i32
    %394 = arith.index_cast %393 : i32 to index
    %c0_66 = arith.constant 0 : index
    %c0_67 = arith.constant 0 : index
    %395 = vector.load %arg8[%394, %c0_66, %c0_67] : memref<9x2x512xf32, #tpu.memory_space<vmem>>, vector<1x2x512xf32>
    %396 = vector.shape_cast %395 : vector<1x2x512xf32> to vector<2x512xf32>
    %397 = arith.addf %392, %396 : vector<2x512xf32>
    %398 = vector.extract_strided_slice %397 {offsets = [0, 0], sizes = [2, 384], strides = [1, 1]} : vector<2x512xf32> to vector<2x384xf32>
    %399 = arith.negf %398 : vector<2x384xf32>
    %400 = math.exp %399 : vector<2x384xf32>
    %cst_68 = arith.constant 1.000000e+00 : f32
    %401 = vector.broadcast %cst_68 : f32 to vector<2x384xf32>
    %402 = arith.addf %401, %400 : vector<2x384xf32>
    %403 = arith.divf %401, %402 : vector<2x384xf32>
    %404 = vector.extract_strided_slice %403 {offsets = [0, 0], sizes = [2, 128], strides = [1, 1]} : vector<2x384xf32> to vector<2x128xf32>
    %405 = vector.extract_strided_slice %403 {offsets = [0, 128], sizes = [2, 128], strides = [1, 1]} : vector<2x384xf32> to vector<2x128xf32>
    %406 = vector.extract_strided_slice %403 {offsets = [0, 256], sizes = [2, 128], strides = [1, 1]} : vector<2x384xf32> to vector<2x128xf32>
    %407 = vector.extract_strided_slice %397 {offsets = [0, 384], sizes = [2, 128], strides = [1, 1]} : vector<2x512xf32> to vector<2x128xf32>
    %408 = math.tanh %407 : vector<2x128xf32>
    %409 = arith.mulf %405, %368 : vector<2x128xf32>
    %410 = arith.mulf %404, %408 : vector<2x128xf32>
    %411 = arith.addf %409, %410 : vector<2x128xf32>
    %412 = math.tanh %411 : vector<2x128xf32>
    %413 = arith.mulf %406, %412 : vector<2x128xf32>
    %414 = vector.extract_strided_slice %391 {offsets = [0, 512], sizes = [2, 512], strides = [1, 1]} : vector<2x1024xf32> to vector<2x512xf32>
    %415 = arith.addf %414, %7 : vector<2x512xf32>
    %416 = vector.extract_strided_slice %415 {offsets = [0, 0], sizes = [2, 384], strides = [1, 1]} : vector<2x512xf32> to vector<2x384xf32>
    %417 = arith.negf %416 : vector<2x384xf32>
    %418 = math.exp %417 : vector<2x384xf32>
    %cst_69 = arith.constant 1.000000e+00 : f32
    %419 = vector.broadcast %cst_69 : f32 to vector<2x384xf32>
    %420 = arith.addf %419, %418 : vector<2x384xf32>
    %421 = arith.divf %419, %420 : vector<2x384xf32>
    %422 = vector.extract_strided_slice %421 {offsets = [0, 0], sizes = [2, 128], strides = [1, 1]} : vector<2x384xf32> to vector<2x128xf32>
    %423 = vector.extract_strided_slice %421 {offsets = [0, 128], sizes = [2, 128], strides = [1, 1]} : vector<2x384xf32> to vector<2x128xf32>
    %424 = vector.extract_strided_slice %421 {offsets = [0, 256], sizes = [2, 128], strides = [1, 1]} : vector<2x384xf32> to vector<2x128xf32>
    %425 = vector.extract_strided_slice %415 {offsets = [0, 384], sizes = [2, 128], strides = [1, 1]} : vector<2x512xf32> to vector<2x128xf32>
    %426 = math.tanh %425 : vector<2x128xf32>
    %427 = arith.mulf %423, %386 : vector<2x128xf32>
    %428 = arith.mulf %422, %426 : vector<2x128xf32>
    %429 = arith.addf %427, %428 : vector<2x128xf32>
    %430 = math.tanh %429 : vector<2x128xf32>
    %431 = arith.mulf %424, %430 : vector<2x128xf32>
    %c8_i32 = arith.constant 8 : i32
    %c0_70 = arith.constant 0 : index
    %c0_71 = arith.constant 0 : index
    %432 = vector.load %arg7[%c0_70, %c0_71] : memref<2x128xf32, #tpu.memory_space<vmem>>, vector<2x128xf32>
    tpu.vector_store %arg7[%c0_70, %c0_71], %431 {strides = array<i32>} : memref<2x128xf32, #tpu.memory_space<vmem>>, vector<2x128xf32>,
    return
  }
}

</mosaic_0001>

<bundles_post_ra>
// kernel: arae_encoder_forward.1
= control target key start
LH: loop header
LB: loop body
LE: loop exit
PB: predicated region body
PF: predicated region fallthrough
CT: control target
= control target key end

     0   :  { %12 = vsyncpa [#allocation4], 0  ;;  %s6202_s0 = inlined_call_operand.vmem [shape: f32[8,2,4], index: 0, kind: input, shape index: {}]   ;;  %s6203_s1 = inlined_call_operand.hbm [shape: f32[2,4], index: 1, kind: input, shape index: {}]   ;;  %s6204_s2 = inlined_call_operand.vmem [shape: f32[4,512], index: 2, kind: input, shape index: {}]   ;;  %s6205_s3 = inlined_call_operand.vmem [shape: f32[4,512], index: 3, kind: input, shape index: {}]   ;;  %s6206_s4 = inlined_call_operand.hbm [shape: f32[1,512], index: 4, kind: input, shape index: {}]   ;;  %s6207_s5 = inlined_call_operand.hbm [shape: bf16[256,1024], index: 5, kind: input, shape index: {}]   ;;  %s6208_s6 = inlined_call_operand.hbm [shape: f32[1,512], index: 6, kind: input, shape index: {}]   ;;  %s6209_s7 = inlined_call_operand.hbm [shape: f32[2,128], index: 7, kind: output, shape index: {}]  }
   0x1   :  { %13 = vsyncpa [#allocation7], 0 }
   0x2   :  { %14 = vsyncpa [#allocation10], 0 }
   0x3   :  { %15 = vsyncpa [#allocation5], 0  ;;  %s4289_s24 = smov [#allocation6]   ;;  %s4290_s26 = smov [#allocation3]  }
   0x4   :  { %s38_s25 = sshll.u32 %s4289_s24, 4  ;;  %s24_s27 = sshll.u32 %s4290_s26, 4  ;;  %s39_s25 = int_to_ptr.vmem [resolvable:$true] %s38_s25  ;;  %s25_s27 = int_to_ptr.vmem [resolvable:$true] %s24_s27 }
   0x5   :  { %s4189_s28 = scalar_lea.vmem %s39_s25, 64  ;;  %p4194_p1 = scmp.lt.s32.totalorder %s39_s25, %s39_s25 }
   0x6   :  { %p4190_p0 = scmp.ne.s32.totalorder %s39_s25, %s4189_s28  ;;  %p4195_p2 = scmp.lt.s32.totalorder %s4189_s28, %s4189_s28 }
   0x8   :  { %p4196_p3 = por %p4195_p2, %p4194_p1 }
   0xa   :  { %p4197_p4 = pnand %p4196_p3, %p4190_p0 }
   0xc   :  { %4200 = shalt.err (!%p4197_p4)
}
   0xd   :  { %41 = dma.hbm_to_vmem [thread:$0]  %s6206_s4, 64, %s39_s25, [#allocation7]  }
   0xe   :  { %s4209_s8 = scalar_lea.vmem %s25_s27, 32  ;;  %p4214_p6 = scmp.lt.s32.totalorder %s25_s27, %s25_s27 }
   0xf   :  { %p4210_p5 = scmp.ne.s32.totalorder %s25_s27, %s4209_s8  ;;  %p4215_p7 = scmp.lt.s32.totalorder %s4209_s8, %s4209_s8 }
  0x11   :  { %p4216_p8 = por %p4215_p7, %p4214_p6 }
  0x13   :  { %p4217_p9 = pnand %p4216_p8, %p4210_p5 }
  0x15   :  { %4220 = shalt.err (!%p4217_p9)
}
  0x16   :  { %27 = dma.hbm_to_vmem [thread:$0]  %s6203_s1, 32, %s25_s27, [#allocation4]  }
  0x17   :  { %s4291_s11 = smov [#allocation8]  }
  0x18   :  { %s47_s12 = sshll.u32 %s4291_s11, 4  ;;  %s48_s12 = int_to_ptr.vmem [resolvable:$true] %s47_s12 }
  0x19   :  { %s4229_s13 = scalar_lea.vmem %s48_s12, 16384  ;;  %p4234_p11 = scmp.lt.s32.totalorder %s48_s12, %s48_s12 }
  0x1a   :  { %p4230_p10 = scmp.ne.s32.totalorder %s48_s12, %s4229_s13  ;;  %p4235_p12 = scmp.lt.s32.totalorder %s4229_s13, %s4229_s13 }
  0x1c   :  { %p4236_p13 = por %p4235_p12, %p4234_p11 }
  0x1e   :  { %p4237_p0 = pnand %p4236_p13, %p4230_p10 }
  0x20   :  { %4240 = shalt.err (!%p4237_p0)
}
  0x21   :  { %s4292_s4 = smov 512   ;;  %s4293_s14 = smov 32  }
  0x22   :  { %53 = dma.hbm_to_vmem [thread:$0]  %s6207_s5, 16384, %s48_s12, [#allocation7], %s4292_s4, %s4292_s4, %s4293_s14  }
  0x23   :  { %s4294_s17 = smov [#allocation9]  }
  0x24   :  { %s60_s18 = sshll.u32 %s4294_s17, 4  ;;  %s61_s18 = int_to_ptr.vmem [resolvable:$true] %s60_s18 }
  0x25   :  { %s4249_s1 = scalar_lea.vmem %s61_s18, 64  ;;  %p4254_p2 = scmp.lt.s32.totalorder %s61_s18, %s61_s18 }
  0x26   :  { %p4250_p1 = scmp.ne.s32.totalorder %s61_s18, %s4249_s1  ;;  %p4255_p3 = scmp.lt.s32.totalorder %s4249_s1, %s4249_s1 }
  0x28   :  { %p4256_p4 = por %p4255_p3, %p4254_p2 }
  0x2a   :  { %p4257_p5 = pnand %p4256_p4, %p4250_p1 }
  0x2c   :  { %4260 = shalt.err (!%p4257_p5)
}
  0x2d   :  { %63 = dma.hbm_to_vmem [thread:$0]  %s6208_s6, 64, %s61_s18, [#allocation10]  }
  0x2e   :  { %4281 = dma.done.wait [#allocation4], 32  }
  0x2f   :  { %4282 = vsyncadd [#allocation4], 4294967264 }
  0x30   :  { %4283 = dma.done.wait [#allocation7], 16448  }
  0x31   :  { %4284 = vsyncadd [#allocation7], 4294950848 }
  0x32   :  { %4285 = dma.done.wait [#allocation10], 64  }
  0x33   :  { %4286 = vsyncadd [#allocation10], 4294967232  ;;  %v6214_v0 = vmov 2   ;;  %v6218_v1 = vmov 0   ;;  %v84_v2 = vld [vmem:[#allocation3] sm:$0x3] }
  0x34   :  { %3899 = vset.pattern.permute.xlu1 %v6214_v0  ;;  %3897 = vset.pattern.permute.xlu0 %v6218_v1  ;;  %v6212_v3 = vmov 3   ;;  %v6210_v4 = vmov 1   ;;  %v76_v5 = vld [vmem:[%s6202_s0] sm:$0x3]  ;;  %v77_v6 = vld [vmem:[%s6202_s0 + $0x2] sm:$0x3] }
  0x35   :  { %361 = vperm.xlu1 %3899, %v84_v2   ;;  %263 = vperm.xlu0 %3897, %v84_v2   ;;  %v145_v7 = vld [vmem:[#allocation8 + $0x1c0] sm:$0xff]  ;;  %v146_v9 = vld [vmem:[#allocation8 + $0x1c8] sm:$0xff]  ;;  %v4374_v16 = vld [vmem:[%s6202_s0 + $0x4] sm:$0x3] }
  0x36   :  { %v149_v8 = vld [vmem:[#allocation8 + $0x1e0] sm:$0xff]  ;;  %v150_v10 = vld [vmem:[#allocation8 + $0x1e8] sm:$0xff] }
  0x37   :  { %v137_v11 = vld [vmem:[#allocation8 + $0x180] sm:$0xff]  ;;  %v4369_v13 = vcombine.high %v145_v7, %v149_v8  ;;  %v138_v14 = vld [vmem:[#allocation8 + $0x188] sm:$0xff]  ;;  %v4376_v17 = vcombine.high %v146_v9, %v150_v10  ;;  %v4378_v18 = vcombine.low %v145_v7, %v149_v8  ;;  %v4381_v19 = vcombine.low %v146_v9, %v150_v10 }
  0x38   :  { %v141_v12 = vld [vmem:[#allocation8 + $0x1a0] sm:$0xff]  ;;  %v142_v15 = vld [vmem:[#allocation8 + $0x1a8] sm:$0xff] }
  0x39   :  { %3900 = vset.pattern.permute.xlu1 %v6212_v3  ;;  %3898 = vset.pattern.permute.xlu0 %v6210_v4  ;;  %6511 = vst [vmem:[#allocation16_spill] sm:$0xff] %v4369_v13  ;;  %6512 = vst [vmem:[#allocation17_spill] sm:$0xff] %v4376_v17  ;;  %v4383_v20 = vcombine.high %v137_v11, %v141_v12  ;;  %v4387_v21 = vcombine.high %v138_v14, %v142_v15  ;;  %v129_v22 = vld [vmem:[#allocation8 + $0x140] sm:$0xff]  ;;  %v130_v24 = vld [vmem:[#allocation8 + $0x148] sm:$0xff] }
  0x3a   :  { %409 = vperm.xlu1 %3900, %v84_v2   ;;  %313 = vperm.xlu0 %3898, %v84_v2   ;;  %6513 = vst [vmem:[#allocation18_spill] sm:$0xff] %v4378_v18  ;;  %6514 = vst [vmem:[#allocation19_spill] sm:$0xff] %v4381_v19  ;;  %v133_v23 = vld [vmem:[#allocation8 + $0x160] sm:$0xff]  ;;  %v134_v25 = vld [vmem:[#allocation8 + $0x168] sm:$0xff]  ;;  %v4399_v27 = vcombine.low %v137_v11, %v141_v12  ;;  %v4402_v28 = vcombine.low %v138_v14, %v142_v15 }
  0x3b   :  { %1853 = vmatprep.subr.bf16.mxu0 %v4369_v13  ;;  %6515 = vst [vmem:[#allocation20_spill] sm:$0xff] %v4383_v20  ;;  %1894 = vmatprep.subr.bf16.mxu1 %v4376_v17  ;;  %6516 = vst [vmem:[#allocation21_spill] sm:$0xff] %v4387_v21  ;;  %v4395_v26 = vld [vmem:[%s6202_s0 + $0x6] sm:$0x3]  ;;  %v4404_v29 = vcombine.high %v129_v22, %v133_v23  ;;  %v4407_v30 = vcombine.high %v130_v24, %v134_v25  ;;  %v122_v33 = vld [vmem:[#allocation8 + $0x108] sm:$0xff] }
  0x3c   :  { %1854 = vmatpush1.bf16.msra.mxu0 %v4378_v18  ;;  %1895 = vmatpush1.bf16.msra.mxu1 %v4381_v19  ;;  %6517 = vst [vmem:[#allocation22_spill] sm:$0xff] %v4399_v27  ;;  %6518 = vst [vmem:[#allocation23_spill] sm:$0xff] %v4402_v28  ;;  %v121_v31 = vld [vmem:[#allocation8 + $0x100] sm:$0xff]  ;;  %v126_v34 = vld [vmem:[#allocation8 + $0x128] sm:$0xff]  ;;  %v4414_v35 = vcombine.low %v129_v22, %v133_v23  ;;  %v4417_v36 = vcombine.low %v130_v24, %v134_v25 }
  0x3d   :  { %1855 = vmatprep.subr.bf16.mxu0 %v4383_v20  ;;  %1896 = vmatprep.subr.bf16.mxu1 %v4387_v21  ;;  %6519 = vst [vmem:[#allocation24_spill] sm:$0xff] %v4404_v29  ;;  %6520 = vst [vmem:[#allocation25_spill] sm:$0xff] %v4407_v30  ;;  %v125_v32 = vld [vmem:[#allocation8 + $0x120] sm:$0xff]  ;;  %v4422_v38 = vcombine.high %v122_v33, %v126_v34  ;;  %v114_v41 = vld [vmem:[#allocation8 + $0xc8] sm:$0xff]  ;;  %v4438_v45 = vcombine.low %v122_v33, %v126_v34 }
  0x3e   :  { %3901 = vset.pattern.permute.xlu1 %v6218_v1  ;;  %599 = vperm.xlu0 %3898, %v76_v5   ;;  %6521 = vst [vmem:[#allocation26_spill] sm:$0xff] %v4414_v35  ;;  %6522 = vst [vmem:[#allocation27_spill] sm:$0xff] %v4417_v36  ;;  %v4419_v37 = vcombine.high %v121_v31, %v125_v32  ;;  %v113_v39 = vld [vmem:[#allocation8 + $0xc0] sm:$0xff]  ;;  %v118_v42 = vld [vmem:[#allocation8 + $0xe8] sm:$0xff]  ;;  %v4435_v44 = vcombine.low %v121_v31, %v125_v32 }
  0x3f   :  { %458 = vperm.xlu1 %3901, %v76_v5   ;;  %6524 = vst [vmem:[#allocation29_spill] sm:$0xff] %v4422_v38  ;;  %v117_v40 = vld [vmem:[#allocation8 + $0xe0] sm:$0xff]  ;;  %6526 = vst [vmem:[#allocation31_spill] sm:$0xff] %v4438_v45  ;;  %v4443_v47 = vcombine.high %v114_v41, %v118_v42  ;;  %v106_v50 = vld [vmem:[#allocation8 + $0x88] sm:$0xff]  ;;  %v4459_v54 = vcombine.low %v114_v41, %v118_v42 }
  0x40   :  { %1856 = vmatpush1.bf16.msra.mxu0 %v4399_v27  ;;  %1897 = vmatpush1.bf16.msra.mxu1 %v4402_v28  ;;  %6523 = vst [vmem:[#allocation28_spill] sm:$0xff] %v4419_v37  ;;  %v4431_v43 = vld [vmem:[%s6202_s0 + $0x8] sm:$0x3]  ;;  %6525 = vst [vmem:[#allocation30_spill] sm:$0xff] %v4435_v44  ;;  %v4440_v46 = vcombine.high %v113_v39, %v117_v40  ;;  %v110_v51 = vld [vmem:[#allocation8 + $0xa8] sm:$0xff]  ;;  %v4456_v53 = vcombine.low %v113_v39, %v117_v40 }
  0x41   :  { %1857 = vmatprep.subr.bf16.mxu0 %v4404_v29  ;;  %1898 = vmatprep.subr.bf16.mxu1 %v4407_v30  ;;  %6528 = vst [vmem:[#allocation33_spill] sm:$0xff] %v4443_v47  ;;  %v105_v48 = vld [vmem:[#allocation8 + $0x80] sm:$0xff]  ;;  %6530 = vst [vmem:[#allocation35_spill] sm:$0xff] %v4459_v54  ;;  %v4464_v56 = vcombine.high %v106_v50, %v110_v51  ;;  %v98_v59 = vld [vmem:[#allocation8 + $0x48] sm:$0xff]  ;;  %v4480_v63 = vcombine.low %v106_v50, %v110_v51 }
  0x42   :  { %3903 = vset.pattern.permute.xlu0 %v6212_v3  ;;  %6527 = vst [vmem:[#allocation32_spill] sm:$0xff] %v4440_v46  ;;  %v109_v49 = vld [vmem:[#allocation8 + $0xa0] sm:$0xff]  ;;  %6529 = vst [vmem:[#allocation34_spill] sm:$0xff] %v4456_v53  ;;  %v102_v60 = vld [vmem:[#allocation8 + $0x68] sm:$0xff] }
  0x43   :  { %863 = vperm.xlu0 %3903, %v76_v5   ;;  %3902 = vset.pattern.permute.xlu1 %v6214_v0  ;;  %v4452_v52 = vld [vmem:[%s6202_s0 + $0xa] sm:$0x3]  ;;  %v4461_v55 = vcombine.high %v105_v48, %v109_v49  ;;  %6532 = vst [vmem:[#allocation37_spill] sm:$0xff] %v4464_v56  ;;  %v4473_v61 = vld [vmem:[%s6202_s0 + $0xc] sm:$0x3]  ;;  %v4477_v62 = vcombine.low %v105_v48, %v109_v49  ;;  %6534 = vst [vmem:[#allocation39_spill] sm:$0xff] %v4480_v63 }
  0x44   :  { %731 = vperm.xlu1 %3902, %v76_v5   ;;  %1858 = vmatpush1.bf16.msra.mxu0 %v4414_v35  ;;  %v97_v57 = vld [vmem:[#allocation8 + $0x40] sm:$0xff]  ;;  %v4485_v5 = vcombine.high %v98_v59, %v102_v60  ;;  %v90_v8 = vld [vmem:[#allocation8 + $0x8] sm:$0xff]  ;;  %v4496_v11 = vcombine.low %v98_v59, %v102_v60 }
  0x45   :  { %1899 = vmatpush1.bf16.msra.mxu1 %v4417_v36  ;;  %1859 = vmatprep.subr.bf16.mxu0 %v4419_v37  ;;  %6531 = vst [vmem:[#allocation36_spill] sm:$0xff] %v4461_v55  ;;  %v101_v58 = vld [vmem:[#allocation8 + $0x60] sm:$0xff]  ;;  %6533 = vst [vmem:[#allocation38_spill] sm:$0xff] %v4477_v62  ;;  %v94_v9 = vld [vmem:[#allocation8 + $0x28] sm:$0xff] }
  0x46   :  { %1900 = vmatprep.subr.bf16.mxu1 %v4422_v38  ;;  %v4482_v2 = vcombine.high %v97_v57, %v101_v58  ;;  %6536 = vst [vmem:[#allocation41_spill] sm:$0xff] %v4485_v5  ;;  %v93_v7 = vld [vmem:[#allocation8 + $0x20] sm:$0xff]  ;;  %v4493_v10 = vcombine.low %v97_v57, %v101_v58  ;;  %6538 = vst [vmem:[#allocation43_spill] sm:$0xff] %v4496_v11  ;;  %v4501_v14 = vcombine.high %v90_v8, %v94_v9  ;;  %v210_v22 = vld [vmem:[#allocation8 + $0x3c8] sm:$0xff] }
  0x47   :  { %3906 = vset.pattern.permute.xlu0 %v6214_v0  ;;  %v209_v15 = vld [vmem:[#allocation8 + $0x3c0] sm:$0xff]  ;;  %v214_v23 = vld [vmem:[#allocation8 + $0x3e8] sm:$0xff]  ;;  %v4512_v25 = vcombine.low %v90_v8, %v94_v9 }
  0x48   :  { %735 = vperm.xlu0 %3906, %v77_v6   ;;  %3904 = vset.pattern.permute.xlu1 %v6218_v1  ;;  %6535 = vst [vmem:[#allocation40_spill] sm:$0xff] %v4482_v2  ;;  %6537 = vst [vmem:[#allocation42_spill] sm:$0xff] %v4493_v10  ;;  %v4522_v32 = vcombine.high %v210_v22, %v214_v23  ;;  %v201_v33 = vld [vmem:[#allocation8 + $0x380] sm:$0xff]  ;;  %v202_v39 = vld [vmem:[#allocation8 + $0x388] sm:$0xff]  ;;  %v4532_v42 = vcombine.low %v210_v22, %v214_v23 }
  0x49   :  { %463 = vperm.xlu1 %3904, %v77_v6   ;;  %1860 = vmatpush1.bf16.msra.mxu0 %v4435_v44  ;;  %6540 = vst [vmem:[#allocation45_spill] sm:$0xff] %v4501_v14  ;;  %6542 = vst [vmem:[#allocation47_spill] sm:$0xff] %v4512_v25  ;;  %v205_v34 = vld [vmem:[#allocation8 + $0x3a0] sm:$0xff]  ;;  %v206_v40 = vld [vmem:[#allocation8 + $0x3a8] sm:$0xff] }
  0x4a   :  { %1901 = vmatpush1.bf16.msra.mxu1 %v4438_v45  ;;  %1861 = vmatprep.subr.bf16.mxu0 %v4440_v46  ;;  %6544 = vst [vmem:[#allocation49_spill] sm:$0xff] %v4522_v32  ;;  %6546 = vst [vmem:[#allocation51_spill] sm:$0xff] %v4532_v42  ;;  %v4535_v48 = vcombine.high %v201_v33, %v205_v34  ;;  %v4537_v49 = vcombine.high %v202_v39, %v206_v40  ;;  %v193_v50 = vld [vmem:[#allocation8 + $0x340] sm:$0xff]  ;;  %v194_v58 = vld [vmem:[#allocation8 + $0x348] sm:$0xff]  ;;  %v4300_v46 = vmov 1983009808  }
  0x4b   :  { %1902 = vmatprep.subr.bf16.mxu1 %v4443_v47  ;;  %v197_v51 = vld [vmem:[#allocation8 + $0x360] sm:$0xff]  ;;  %v4542_v57 = vcombine.low %v201_v33, %v205_v34  ;;  %v198_v59 = vld [vmem:[#allocation8 + $0x368] sm:$0xff]  ;;  %v4546_v60 = vcombine.low %v202_v39, %v206_v40  ;;  %v4791_v45 = vunpack.c.l.s4 %v4300_v46 }
  0x4c   :  { %3909 = vset.pattern.permute.xlu0 %v6210_v4  ;;  %6547 = vst [vmem:[#allocation52_spill] sm:$0xff] %v4535_v48  ;;  %6548 = vst [vmem:[#allocation53_spill] sm:$0xff] %v4537_v49  ;;  %v189_v8 = vld [vmem:[#allocation8 + $0x320] sm:$0xff]  ;;  %v4552_v9 = vcombine.high %v194_v58, %v198_v59  ;;  %v4555_v22 = vcombine.low %v193_v50, %v197_v51  ;;  %v4559_v23 = vcombine.low %v194_v58, %v198_v59 }
  0x4d   :  { %607 = vperm.xlu0 %3909, %v4374_v16   ;;  %3905 = vset.pattern.permute.xlu1 %v6210_v4  ;;  %6549 = vst [vmem:[#allocation54_spill] sm:$0xff] %v4542_v57  ;;  %6550 = vst [vmem:[#allocation55_spill] sm:$0xff] %v4546_v60  ;;  %v177_v39 = vld [vmem:[#allocation8 + $0x2c0] sm:$0xff] }
  0x4e   :  { %603 = vperm.xlu1 %3905, %v77_v6   ;;  %1862 = vmatpush1.bf16.msra.mxu0 %v4456_v53  ;;  %6552 = vst [vmem:[#allocation57_spill] sm:$0xff] %v4552_v9  ;;  %6553 = vst [vmem:[#allocation58_spill] sm:$0xff] %v4555_v22  ;;  %v181_v40 = vld [vmem:[#allocation8 + $0x2e0] sm:$0xff] }
  0x4f   :  { %1903 = vmatpush1.bf16.msra.mxu1 %v4459_v54  ;;  %1863 = vmatprep.subr.bf16.mxu0 %v4461_v55  ;;  %6554 = vst [vmem:[#allocation59_spill] sm:$0xff] %v4559_v23 }
  0x50   :  { %1904 = vmatprep.subr.bf16.mxu1 %v4464_v56 }
  0x51   :  { %3912 = vset.pattern.permute.xlu0 %v6218_v1 }
  0x52   :  { %473 = vperm.xlu0 %3912, %v4395_v26   ;;  %3907 = vset.pattern.permute.xlu1 %v6212_v3 }
  0x53   :  { %867 = vperm.xlu1 %3907, %v77_v6   ;;  %v89_v6 = vld [vmem:[#allocation8] sm:$0xff]  ;;  %1864 = vmatpush1.bf16.msra.mxu0 %v4477_v62 }
  0x54   :  { %1905 = vmatpush1.bf16.msra.mxu1 %v4480_v63  ;;  %1865 = vmatprep.subr.bf16.mxu0 %v4482_v2  ;;  %v4498_v12 = vcombine.high %v89_v6, %v93_v7  ;;  %v4509_v24 = vcombine.low %v89_v6, %v93_v7  ;;  %v4550_v6 = vcombine.high %v193_v50, %v197_v51  ;;  %v185_v7 = vld [vmem:[#allocation8 + $0x300] sm:$0xff]  ;;  %v178_v50 = vld [vmem:[#allocation8 + $0x2c8] sm:$0xff] }
  0x55   :  { %1906 = vmatprep.subr.bf16.mxu1 %v4485_v5  ;;  %v4561_v33 = vcombine.high %v185_v7, %v189_v8  ;;  %v182_v51 = vld [vmem:[#allocation8 + $0x2e8] sm:$0xff] }
  0x56   :  { %3915 = vset.pattern.permute.xlu0 %v6212_v3  ;;  %6539 = vst [vmem:[#allocation44_spill] sm:$0xff] %v4498_v12  ;;  %6541 = vst [vmem:[#allocation46_spill] sm:$0xff] %v4509_v24  ;;  %v4579_v59 = vcombine.high %v178_v50, %v182_v51 }
  0x57   :  { %875 = vperm.xlu0 %3915, %v4395_v26   ;;  %3908 = vset.pattern.permute.xlu1 %v6218_v1  ;;  %6551 = vst [vmem:[#allocation56_spill] sm:$0xff] %v4550_v6  ;;  %6555 = vst [vmem:[#allocation60_spill] sm:$0xff] %v4561_v33 }
  0x58   :  { %468 = vperm.xlu1 %3908, %v4374_v16   ;;  %1866 = vmatpush1.bf16.msra.mxu0 %v4493_v10  ;;  %6560 = vst [vmem:[#allocation65_spill] sm:$0xff] %v4579_v59 }
  0x59   :  { %1907 = vmatpush1.bf16.msra.mxu1 %v4496_v11  ;;  %1867 = vmatprep.subr.bf16.mxu0 %v4498_v12 }
  0x5a   :  { %1908 = vmatprep.subr.bf16.mxu1 %v4501_v14 }
  0x5b   :  { %3918 = vset.pattern.permute.xlu0 %v6214_v0 }
  0x5c   :  { %747 = vperm.xlu0 %3918, %v4431_v43   ;;  %3910 = vset.pattern.permute.xlu1 %v6214_v0 }
  0x5d   :  { %739 = vperm.xlu1 %3910, %v4374_v16   ;;  %1868 = vmatpush1.bf16.msra.mxu0 %v4509_v24 }
  0x5e   :  { %1909 = vmatpush1.bf16.msra.mxu1 %v4512_v25 }
  0x5f   :  { %1910 = vmatprep.subr.bf16.mxu1 %v4522_v32 }
  0x60   :  { %3921 = vset.pattern.permute.xlu0 %v6210_v4 }
  0x61   :  { %619 = vperm.xlu0 %3921, %v4452_v52   ;;  %3911 = vset.pattern.permute.xlu1 %v6212_v3 }
  0x62   :  { %871 = vperm.xlu1 %3911, %v4374_v16   ;;  %v213_v16 = vld [vmem:[#allocation8 + $0x3e0] sm:$0xff]  ;;  %1911 = vmatpush2.bf16.msra.mxu1 %v4532_v42 }
  0x63   :  { %v4514_v31 = vcombine.high %v209_v15, %v213_v16  ;;  %v4528_v41 = vcombine.low %v209_v15, %v213_v16  ;;  %1912 = vmatprep.subr.bf16.mxu1 %v4537_v49  ;;  %v186_v15 = vld [vmem:[#allocation8 + $0x308] sm:$0xff] }
  0x64   :  { %v190_v16 = vld [vmem:[#allocation8 + $0x328] sm:$0xff] }
  0x65   :  { %3924 = vset.pattern.permute.xlu0 %v6218_v1  ;;  %6543 = vst [vmem:[#allocation48_spill] sm:$0xff] %v4514_v31  ;;  %6545 = vst [vmem:[#allocation50_spill] sm:$0xff] %v4528_v41  ;;  %1869 = vmatprep.subr.bf16.mxu0 %v4514_v31  ;;  %v4565_v34 = vcombine.high %v186_v15, %v190_v16  ;;  %v4573_v58 = vcombine.low %v186_v15, %v190_v16 }
  0x66   :  { %488 = vperm.xlu0 %3924, %v4473_v61   ;;  %3913 = vset.pattern.permute.xlu1 %v6210_v4  ;;  %v4587_v15 = vcombine.low %v178_v50, %v182_v51  ;;  %v152_v50 = vld [vmem:[#allocation8 + $0x1f8] sm:$0xff] }
  0x67   :  { %611 = vperm.xlu1 %3913, %v4395_v26   ;;  %1870 = vmatpush2.bf16.msra.mxu0 %v4528_v41  ;;  %6556 = vst [vmem:[#allocation61_spill] sm:$0xff] %v4565_v34  ;;  %6558 = vst [vmem:[#allocation63_spill] sm:$0xff] %v4573_v58 }
  0x68   :  { %1871 = vmatprep.subr.bf16.mxu0 %v4535_v48  ;;  %1913 = vmatpush2.bf16.msra.mxu1 %v4546_v60  ;;  %6562 = vst [vmem:[#allocation67_spill] sm:$0xff] %v4587_v15 }
  0x69   :  { %1914 = vmatprep.subr.bf16.mxu1 %v4552_v9  ;;  %v147_v9 = vld [vmem:[#allocation8 + $0x1d0] sm:$0xff] }
  0x6a   :  { %3927 = vset.pattern.permute.xlu0 %v6212_v3 }
  0x6b   :  { %3914 = vset.pattern.permute.xlu1 %v6214_v0  ;;  %887 = vperm.xlu0 %3927, %v4473_v61  }
  0x6c   :  { %743 = vperm.xlu1 %3914, %v4395_v26   ;;  %v4519_v26 = vld [vmem:[%s6202_s0 + $0xe] sm:$0x3]  ;;  %1872 = vmatpush2.bf16.msra.mxu0 %v4542_v57  ;;  %v6570_v57 = vmov 0.0|0.0  }
  0x6d   :  { %1873 = vmatprep.subr.bf16.mxu0 %v4550_v6  ;;  %1915 = vmatpush2.bf16.msra.mxu1 %v4559_v23  ;;  %v4583_v23 = vcombine.low %v177_v39, %v181_v40  ;;  %v151_v6 = vld [vmem:[#allocation8 + $0x1f0] sm:$0xff] }
  0x6e   :  { %1916 = vmatprep.subr.bf16.mxu1 %v4565_v34  ;;  %v165_v34 = vld [vmem:[#allocation8 + $0x260] sm:$0xff]  ;;  %1926 = vmatprep.mubr.bf16.mxu1 %v6570_v57 }
  0x6f   :  { %3930 = vset.pattern.permute.xlu0 %v6214_v0  ;;  %v173_v0 = vld [vmem:[#allocation8 + $0x2a0] sm:$0xff]  ;;  %6561 = vst [vmem:[#allocation66_spill] sm:$0xff] %v4583_v23 }
  0x70   :  { %3916 = vset.pattern.permute.xlu1 %v6218_v1  ;;  %759 = vperm.xlu0 %3930, %v4519_v26  }
  0x71   :  { %478 = vperm.xlu1 %3916, %v4431_v43   ;;  %1874 = vmatpush2.bf16.msra.mxu0 %v4555_v22  ;;  %v162_v22 = vld [vmem:[#allocation8 + $0x248] sm:$0xff] }
  0x72   :  { %1875 = vmatprep.subr.bf16.mxu0 %v4561_v33  ;;  %1917 = vmatpush2.bf16.msra.mxu1 %v4573_v58  ;;  %v4604_v58 = vcombine.low %v147_v9, %v151_v6 }
  0x73   :  { %1918 = vmatprep.subr.bf16.mxu1 %v4579_v59 }
  0x74   :  { %3932 = vset.pattern.permute.xlu0 %v6212_v3 }
  0x75   :  { %3917 = vset.pattern.permute.xlu1 %v6210_v4  ;;  %v4569_v4 = vcombine.low %v185_v7, %v189_v8  ;;  %v170_v7 = vld [vmem:[#allocation8 + $0x288] sm:$0xff] }
  0x76   :  { %615 = vperm.xlu1 %3917, %v4431_v43   ;;  %v174_v8 = vld [vmem:[#allocation8 + $0x2a8] sm:$0xff]  ;;  %1919 = vmatpush2.bf16.msra.mxu1 %v4587_v15 }
  0x77   :  { %6557 = vst [vmem:[#allocation62_spill] sm:$0xff] %v4569_v4  ;;  %1876 = vmatpush2.bf16.msra.mxu0 %v4569_v4  ;;  %v4592_v33 = vcombine.high %v170_v7, %v174_v8  ;;  %v6565_v4 = vmov 2   ;;  %v4602_v59 = vcombine.low %v170_v7, %v174_v8  ;;  %v154_v8 = vld [vmem:[#allocation8 + $0x208] sm:$0xff] }
  0x79   :  { %6564 = vst [vmem:[#allocation69_spill] sm:$0xff] %v4592_v33  ;;  %6567 = vst [vmem:[#allocation71_spill] sm:$0xff] %v4602_v59  ;;  %1920 = vmatprep.subr.bf16.mxu1 %v4592_v33 }
  0x7a   :  { %3919 = vset.pattern.permute.xlu1 %v6212_v3  ;;  %v169_v3 = vld [vmem:[#allocation8 + $0x280] sm:$0xff]  ;;  %1921 = vmatpush2.bf16.msra.mxu1 %v4602_v59 }
  0x7b   :  { %879 = vperm.xlu1 %3919, %v4431_v43   ;;  %v4575_v43 = vcombine.high %v177_v39, %v181_v40  ;;  %v4589_v16 = vcombine.high %v169_v3, %v173_v0  ;;  %v166_v39 = vld [vmem:[#allocation8 + $0x268] sm:$0xff]  ;;  %v6239_v40 = vmov 0.0|0.0   ;;  %v4598_v51 = vcombine.low %v169_v3, %v173_v0  ;;  %v153_v0 = vld [vmem:[#allocation8 + $0x200] sm:$0xff] }
  0x7c   :  { %1885 = vmatprep.mubr.bf16.mxu0 %v6239_v40  ;;  %v4609_v40 = vcombine.high %v162_v22, %v166_v39  ;;  %v157_v3 = vld [vmem:[#allocation8 + $0x220] sm:$0xff]  ;;  %v4620_v33 = vcombine.low %v162_v22, %v166_v39  ;;  %v4635_v22 = vcombine.high %v147_v9, %v151_v6  ;;  %v219_v6 = vlaneseq }
  0x7d   :  { %6559 = vst [vmem:[#allocation64_spill] sm:$0xff] %v4575_v43  ;;  %1877 = vmatprep.subr.bf16.mxu0 %v4575_v43  ;;  %6563 = vst [vmem:[#allocation68_spill] sm:$0xff] %v4589_v16  ;;  %v148_v43 = vld [vmem:[#allocation8 + $0x1d8] sm:$0xff]  ;;  %v4624_v15 = vcombine.high %v153_v0, %v157_v3  ;;  %v6581_v9 = vmov 0  }
  0x7e   :  { %1878 = vmatpush2.bf16.msra.mxu0 %v4583_v23  ;;  %6566 = vst [vmem:[#allocation70_spill] sm:$0xff] %v4598_v51  ;;  %6569 = vst [vmem:[#allocation73_spill] sm:$0xff] %v4609_v40  ;;  %v4612_v49 = vcombine.low %v148_v43, %v152_v50  ;;  %v6571_v23 = vmov 3   ;;  %1922 = vmatprep.subr.bf16.mxu1 %v4609_v40  ;;  %v4639_v39 = vcombine.high %v148_v43, %v152_v50  ;;  %v4650_v43 = vshrl.u32 %v219_v6, 7 }
  0x7f   :  { %3920 = vset.pattern.permute.xlu1 %v6218_v1  ;;  %v161_v1 = vld [vmem:[#allocation8 + $0x240] sm:$0xff]  ;;  %1879 = vmatprep.subr.bf16.mxu0 %v4589_v16  ;;  %v158_v16 = vld [vmem:[#allocation8 + $0x228] sm:$0xff]  ;;  %6573 = vst [vmem:[#allocation75_spill] sm:$0xff] %v4620_v33  ;;  %6574 = vst [vmem:[#allocation76_spill] sm:$0xff] %v4624_v15 }
  0x80   :  { %483 = vperm.xlu1 %3920, %v4452_v52   ;;  %v4607_v60 = vcombine.high %v161_v1, %v165_v34  ;;  %v4616_v7 = vcombine.low %v161_v1, %v165_v34  ;;  %v4626_v48 = vcombine.high %v154_v8, %v158_v16  ;;  %v4629_v1 = vcombine.low %v153_v0, %v157_v3  ;;  %v4671_v0 = vld [vmem:[%s6204_s2] sm:$0xff]  ;;  %v4676_v3 = vld [vmem:[%s6204_s2 + $0x8] sm:$0xff]  ;;  %s4301_s2 = smov [#allocation11]  }
  0x81   :  { %v6577_v34 = vmov 1   ;;  %1923 = vmatpush2.bf16.msra.mxu1 %v4620_v33  ;;  %6579 = vst [vmem:[#allocation80_spill] sm:$0xff] %v4635_v22  ;;  %6580 = vst [vmem:[#allocation81_spill] sm:$0xff] %v4639_v39  ;;  %v370_v50 = vsub.s32 6, %v4650_v43  ;;  %v4701_v33 = vld [vmem:[#allocation6] sm:$0xf] }
  0x82   :  { %6568 = vst [vmem:[#allocation72_spill] sm:$0xff] %v4607_v60  ;;  %1880 = vmatpush2.bf16.msra.mxu0 %v4598_v51  ;;  %6572 = vst [vmem:[#allocation74_spill] sm:$0xff] %v4616_v7  ;;  %1924 = vmatprep.subr.bf16.mxu1 %v4626_v48  ;;  %v322_v40 = vsub.s32 5, %v4650_v43 }
  0x83   :  { %1881 = vmatprep.subr.bf16.mxu0 %v4607_v60  ;;  %6575 = vst [vmem:[#allocation77_spill] sm:$0xff] %v4626_v48  ;;  %6576 = vst [vmem:[#allocation78_spill] sm:$0xff] %v4629_v1  ;;  %v274_v48 = vsub.s32 4, %v4650_v43 }
  0x84   :  { %3922 = vset.pattern.permute.xlu1 %v6565_v4 }
  0x85   :  { %751 = vperm.xlu1 %3922, %v4452_v52   ;;  %v513_v32 = vrot.slane %v4676_v3, %v274_v48 }
  0x86   :  { %1882 = vmatpush2.bf16.msra.mxu0 %v4616_v7  ;;  %v418_v7 = vsub.s32 7, %v4650_v43 }
  0x87   :  { %1883 = vmatprep.subr.bf16.mxu0 %v4624_v15 }
  0x88   :  { %v901_v11 = vrot.slane %v4671_v0, %v418_v7  ;;  %v909_v5 = vrot.slane %v4676_v3, %v418_v7 }
  0x89   :  { %3923 = vset.pattern.permute.xlu1 %v6571_v23 }
  0x8a   :  { %883 = vperm.xlu1 %3923, %v4452_v52   ;;  %v4633_v52 = vcombine.low %v154_v8, %v158_v16  ;;  %1884 = vmatpush2.bf16.msra.mxu0 %v4629_v1  ;;  %v4654_v16 = vsub.s32 2, %v4650_v43  ;;  %v4679_v8 = vsub.s32 0, %v4650_v43  ;;  %v4694_v1 = vsub.s32 3, %v4650_v43 }
  0x8b   :  { %1935 = vmatprep.subr.bf16.mxu0 %v4635_v22 }
  0x8c   :  { %6578 = vst [vmem:[#allocation79_spill] sm:$0xff] %v4633_v52  ;;  %1925 = vmatpush2.bf16.msra.mxu1 %v4633_v52  ;;  %6582 = vst [vmem:[#allocation82_spill] sm:$0xff] %v4654_v16  ;;  %v769_v52 = vrot.slane %v4671_v0, %v370_v50  ;;  %v256_v24 = vrot.slane %v4701_v33, %v4694_v1  ;;  %v4763_v55 = vrot.slane %v513_v32, %v4679_v8 }
  0x8d   :  { %1976 = vmatprep.subr.bf16.mxu1 %v4639_v39  ;;  %6584 = vst [vmem:[#allocation84_spill] sm:$0xff] %v4694_v1  ;;  %v4775_v54 = vrot.slane %v909_v5, %v4694_v1 }
  0x8e   :  { %3925 = vset.pattern.permute.xlu1 %v6577_v34  ;;  %v4721_v42 = vrot.slane %v769_v52, %v4654_v16  ;;  %v252_v52 = vrot.slane %v4701_v33, %v4654_v16  ;;  %6588 = vst [vmem:[#allocation88_spill] sm:$0xff] %v4763_v55 }
  0x8f   :  { %623 = vperm.xlu1 %3925, %v4473_v61   ;;  %6590 = vst [vmem:[#allocation90_spill] sm:$0xff] %v4775_v54 }
  0x90   :  { %6585 = vst [vmem:[#allocation85_spill] sm:$0xff] %v4721_v42 }
  0x93   :  { %3926 = vset.pattern.permute.xlu1 %v6565_v4  ;;  %v4661_v4 = vld [vmem:[%s6205_s3] sm:$0xff] }
  0x94   :  { %755 = vperm.xlu1 %3926, %v4473_v61   ;;  %v4666_v61 = vld [vmem:[%s6205_s3 + $0x8] sm:$0xff]  ;;  %v371_v6 = vrot.slane %v4661_v4, %v370_v50  ;;  %v271_v59 = vrot.slane %v4661_v4, %v4679_v8  ;;  %v415_v31 = vrot.slane %v4661_v4, %v4694_v1  ;;  %v419_v25 = vrot.slane %v4661_v4, %v418_v7  ;;  %s3692_s3 = sshll.u32 %s4301_s2, 4  ;;  %s3693_s3 = int_to_ptr.vmem [resolvable:$true] %s3692_s3 }
  0x95   :  { %v375_v39 = vrot.slane %v4666_v61, %v4654_v16  ;;  %v379_v22 = vrot.slane %v4666_v61, %v370_v50  ;;  %v283_v41 = vrot.slane %v4666_v61, %v274_v48  ;;  %v423_v14 = vrot.slane %v4666_v61, %v4694_v1  ;;  %s4261_s18 = scalar_lea.vmem %s3693_s3, 32  ;;  %p4266_p7 = scmp.lt.s32.totalorder %s3693_s3, %s3693_s3 }
  0x96   :  { %v427_v12 = vrot.slane %v4666_v61, %v418_v7  ;;  %v323_v56 = vrot.slane %v4661_v4, %v322_v40  ;;  %v331_v32 = vrot.slane %v4666_v61, %v322_v40  ;;  %p4262_p6 = scmp.ne.s32.totalorder %s3693_s3, %s4261_s18  ;;  %p4267_p8 = scmp.lt.s32.totalorder %s4261_s18, %s4261_s18 }
  0x97   :  { %v4715_v51 = vrot.slane %v375_v39, %v4654_v16  ;;  %v4718_v15 = vrot.slane %v379_v22, %v4654_v16  ;;  %v279_v39 = vrot.slane %v4666_v61, %v4679_v8  ;;  %v303_v2 = vrot.slane %v283_v41, %v4679_v8 }
  0x98   :  { %3928 = vset.pattern.permute.xlu1 %v6581_v9  ;;  %v4686_v9 = vsub.s32 1, %v4650_v43  ;;  %v443_v41 = vrot.slane %v423_v14, %v4694_v1  ;;  %p4268_p9 = por %p4267_p8, %p4266_p7 }
  0x99   :  { %493 = vperm.xlu1 %3928, %v4519_v26  }
  0x9a   :  { %6583 = vst [vmem:[#allocation83_spill] sm:$0xff] %v4686_v9  ;;  %v248_v22 = vrot.slane %v4701_v33, %v4686_v9  ;;  %v319_v62 = vrot.slane %v4661_v4, %v4686_v9  ;;  %v327_v7 = vrot.slane %v4666_v61, %v4686_v9  ;;  %v343_v14 = vrot.slane %v323_v56, %v4686_v9  ;;  %p4269_p10 = pnand %p4268_p9, %p4262_p6 }
  0x9b   :  { %v765_v61 = vrot.slane %v4671_v0, %v4654_v16  ;;  %v351_v37 = vrot.slane %v331_v32, %v4686_v9  ;;  %v6593_v35 = vrot.slane %v4676_v3, %v4686_v9 }
  0x9c   :  { %v339_v47 = vrot.slane %v319_v62, %v4686_v9  ;;  %v347_v5 = vrot.slane %v327_v7, %v4686_v9 }
  0x9d   :  { %3929 = vset.pattern.permute.xlu1 %v6577_v34  ;;  %v367_v34 = vrot.slane %v4661_v4, %v4654_v16 }
  0x9e   :  { %627 = vperm.xlu1 %3929, %v4519_v26  }
  0x9f   :  { %v4706_v60 = vrot.slane %v367_v34, %v4654_v16  ;;  %v505_v34 = vrot.slane %v4671_v0, %v274_v48 }
  0xa1   :  { %v4757_v63 = vrot.slane %v505_v34, %v4679_v8  ;;  %v447_v34 = vrot.slane %v427_v12, %v4694_v1  ;;  %v633_v12 = vrot.slane %v4671_v0, %v4686_v9 }
  0xa2   :  { %3931 = vset.pattern.permute.xlu1 %v6571_v23  ;;  %v777_v23 = vrot.slane %v4676_v3, %v370_v50  ;;  %v275_v50 = vrot.slane %v4661_v4, %v274_v48  ;;  %v299_v48 = vrot.slane %v279_v39, %v4679_v8  ;;  %v4772_v39 = vrot.slane %v901_v11, %v4694_v1 }
  0xa3   :  { %891 = vperm.xlu1 %3931, %v4519_v26   ;;  %v4709_v26 = vrot.slane %v371_v6, %v4654_v16  ;;  %6587 = vst [vmem:[#allocation87_spill] sm:$0xff] %v4757_v63  ;;  %v637_v4 = vrot.slane %v4671_v0, %v322_v40  ;;  %v501_v11 = vrot.slane %v4671_v0, %v4679_v8 }
  0xa4   :  { %v4739_v6 = vrot.slane %v777_v23, %v4654_v16  ;;  %v291_v23 = vrot.slane %v271_v59, %v4679_v8  ;;  %v295_v10 = vrot.slane %v275_v50, %v4679_v8  ;;  %v435_v59 = vrot.slane %v415_v31, %v4694_v1  ;;  %6589 = vst [vmem:[#allocation89_spill] sm:$0xff] %v4772_v39 }
  0xa5   :  { %v439_v50 = vrot.slane %v419_v25, %v4694_v1  ;;  %v645_v31 = vrot.slane %v4676_v3, %v322_v40  ;;  %v897_v40 = vrot.slane %v4671_v0, %v4694_v1  ;;  %v4795_v36 = vrot.slane %v637_v4, %v4686_v9 }
  0xa6   :  { %6586 = vst [vmem:[#allocation86_spill] sm:$0xff] %v4739_v6  ;;  %v4804_v0 = vrot.slane %v6593_v35, %v4686_v9  ;;  %v4807_v46 = vrot.slane %v633_v12, %v4686_v9  ;;  %v4825_v4 = vrot.slane %v765_v61, %v4654_v16  ;;  %v6603_v12 = vrot.slane %v4676_v3, %v4694_v1 }
  0xa7   :  { %6591 = vst [vmem:[#allocation91_spill] sm:$0xff] %v4795_v36  ;;  %v4798_v7 = vrot.slane %v645_v31, %v4686_v9  ;;  %v4828_v31 = vrot.slane %v897_v40, %v4694_v1 }
  0xa8   :  { %6594 = vst [vmem:[#allocation93_spill] sm:$0xff] %v4804_v0  ;;  %6595 = vst [vmem:[#allocation94_spill] sm:$0xff] %v4807_v46 }
  0xa9   :  { %6592 = vst [vmem:[#allocation92_spill] sm:$0xff] %v4798_v7  ;;  %6601 = vst [vmem:[#allocation98_spill] sm:$0xff] %v4825_v4 }
  0xaa   :  { %6602 = vst [vmem:[#allocation99_spill] sm:$0xff] %v4828_v31 }
  0xb0   :  { %v362_v25 = vpop.permute.xlu1 %361  ;;  %v264_v53 = vpop.permute.xlu0 %263 }
  0xb1   :  { %v304_v62 = vmul.f32 %v291_v23, %v264_v53  ;;  %v305_v44 = vmul.f32 %v295_v10, %v264_v53  ;;  %v306_v56 = vmul.f32 %v299_v48, %v264_v53  ;;  %v307_v38 = vmul.f32 %v303_v2, %v264_v53 }
  0xb2   :  { %v4810_v10 = vrot.slane %v501_v11, %v4679_v8  ;;  %v6597_v53 = vrot.slane %v4676_v3, %v4679_v8  ;;  %v6599_v23 = vrot.slane %v4676_v3, %v4654_v16  ;;  %v4834_v11 = vrot.slane %v6603_v12, %v4694_v1 }
  0xb3   :  { %v309_v30 = vadd.f32 %v305_v44, %v248_v22  ;;  %v310_v29 = vadd.f32 %v306_v56, %v252_v52  ;;  %v311_v28 = vadd.f32 %v307_v38, %v256_v24  ;;  %v400_v21 = vmul.f32 %v4706_v60, %v362_v25 }
  0xb4   :  { %6596 = vst [vmem:[#allocation95_spill] sm:$0xff] %v4810_v10  ;;  %v4816_v2 = vrot.slane %v6597_v53, %v4679_v8  ;;  %v4822_v48 = vrot.slane %v6599_v23, %v4654_v16  ;;  %6604 = vst [vmem:[#allocation100_spill] sm:$0xff] %v4834_v11  ;;  %v1031_v53 = vunpack.c.0.s8 %v4791_v45  ;;  %v6605_v23 = vrot.slane %v4701_v33, %v4679_v8 }
  0xb5   :  { %v410_v35 = vpop.permute.xlu1 %409  ;;  %v314_v32 = vpop.permute.xlu0 %313  ;;  %v401_v20 = vmul.f32 %v4709_v26, %v362_v25  ;;  %v402_v3 = vmul.f32 %v4715_v51, %v362_v25  ;;  %v403_v12 = vmul.f32 %v4718_v15, %v362_v25 }
  0xb6   :  { %6598 = vst [vmem:[#allocation96_spill] sm:$0xff] %v4816_v2  ;;  %6600 = vst [vmem:[#allocation97_spill] sm:$0xff] %v4822_v48  ;;  %v308_v9 = vadd.f32 %v304_v62, %v6605_v23  ;;  %v352_v61 = vmul.f32 %v339_v47, %v314_v32  ;;  %v353_v16 = vmul.f32 %v343_v14, %v314_v32 }
  0xb7   :  { %v354_v27 = vmul.f32 %v347_v5, %v314_v32  ;;  %v355_v40 = vmul.f32 %v351_v37, %v314_v32  ;;  %v448_v62 = vmul.f32 %v435_v59, %v410_v35  ;;  %v449_v44 = vmul.f32 %v439_v50, %v410_v35 }
  0xb8   :  { %v356_v45 = vadd.f32 %v352_v61, %v308_v9  ;;  %v357_v1 = vadd.f32 %v353_v16, %v309_v30  ;;  %v450_v22 = vmul.f32 %v443_v41, %v410_v35  ;;  %v451_v38 = vmul.f32 %v447_v34, %v410_v35 }
  0xb9   :  { %v358_v19 = vadd.f32 %v354_v27, %v310_v29  ;;  %v359_v33 = vadd.f32 %v355_v40, %v311_v28  ;;  %v600_v60 = vpop.permute.xlu0 %599 }
  0xba   :  { %v459_v47 = vpop.permute.xlu1 %458  ;;  %v404_v24 = vadd.f32 %v400_v21, %v356_v45  ;;  %v405_v52 = vadd.f32 %v401_v20, %v357_v1  ;;  %v667_v20 = vmul.f32 %v4795_v36, %v600_v60  ;;  %v668_v21 = vmul.f32 %v4804_v0, %v600_v60 }
  0xbb   :  { %v406_v37 = vadd.f32 %v402_v3, %v358_v19  ;;  %v407_v14 = vadd.f32 %v403_v12, %v359_v33  ;;  %v534_v26 = vmul.f32 %v4810_v10, %v459_v47  ;;  %v535_v51 = vmul.f32 %v4757_v63, %v459_v47 }
  0xbc   :  { %v536_v15 = vmul.f32 %v4816_v2, %v459_v47  ;;  %v537_v30 = vmul.f32 %v4763_v55, %v459_v47  ;;  %v4848_v27 = vadd.f32 %v448_v62, %v404_v24  ;;  %v4850_v28 = vadd.f32 %v449_v44, %v405_v52 }
  0xbd   :  { %v4852_v29 = vadd.f32 %v450_v22, %v406_v37  ;;  %v4854_v16 = vadd.f32 %v451_v38, %v407_v14  ;;  %v666_v19 = vmul.f32 %v4807_v46, %v600_v60  ;;  %v669_v1 = vmul.f32 %v4798_v7, %v600_v60 }
  0xbe   :  { %6606 = vst [vmem:[#allocation101_spill] sm:$0xff] %v4848_v27  ;;  %6607 = vst [vmem:[#allocation102_spill] sm:$0xff] %v4850_v28  ;;  %v566_v9 = vadd.f32 %v534_v26, %v4848_v27  ;;  %v567_v59 = vadd.f32 %v535_v51, %v4850_v28  ;;  %v864_v25 = vpop.permute.xlu0 %863  ;;  %v4873_v24 = vsub.s32 %v1031_v53, %v4650_v43 }
  0xbf   :  { %6608 = vst [vmem:[#allocation103_spill] sm:$0xff] %v4852_v29  ;;  %6609 = vst [vmem:[#allocation104_spill] sm:$0xff] %v4854_v16  ;;  %v568_v50 = vadd.f32 %v536_v15, %v4852_v29  ;;  %v569_v41 = vadd.f32 %v537_v30, %v4854_v16  ;;  %v732_v34 = vpop.permute.xlu1 %731  ;;  %v930_v12 = vmul.f32 %v4828_v31, %v864_v25 }
  0xc0   :  { %v798_v5 = vmul.f32 %v4825_v4, %v732_v34  ;;  %v799_v56 = vmul.f32 %v4721_v42, %v732_v34  ;;  %v800_v35 = vmul.f32 %v4822_v48, %v732_v34  ;;  %v801_v32 = vmul.f32 %v4739_v6, %v732_v34  ;;  %6610 = vst [vmem:[#allocation105_spill] sm:$0xff] %v4873_v24 }
  0xc1   :  { %v698_v23 = vadd.f32 %v666_v19, %v566_v9  ;;  %v699_v61 = vadd.f32 %v667_v20, %v567_v59  ;;  %v700_v40 = vadd.f32 %v668_v21, %v568_v50  ;;  %v701_v3 = vadd.f32 %v669_v1, %v569_v41 }
  0xc2   :  { %v931_v45 = vmul.f32 %v4772_v39, %v864_v25  ;;  %v932_v33 = vmul.f32 %v4834_v11, %v864_v25  ;;  %v933_v62 = vmul.f32 %v4775_v54, %v864_v25 }
  0xc3   :  { %v830_v44 = vadd.f32 %v798_v5, %v698_v23  ;;  %v831_v22 = vadd.f32 %v799_v56, %v699_v61  ;;  %v832_v38 = vadd.f32 %v800_v35, %v700_v40  ;;  %v833_v47 = vadd.f32 %v801_v32, %v701_v3  ;;  %v139_v56 = vld [vmem:[#allocation8 + $0x190] sm:$0xff]  ;;  %v140_v32 = vld [vmem:[#allocation8 + $0x198] sm:$0xff] }
  0xc4   :  { %v143_v35 = vld [vmem:[#allocation8 + $0x1b0] sm:$0xff]  ;;  %v144_v23 = vld [vmem:[#allocation8 + $0x1b8] sm:$0xff] }
  0xc5   :  { %v962_v52 = vadd.f32 %v930_v12, %v830_v44  ;;  %v963_v37 = vadd.f32 %v931_v45, %v831_v22  ;;  %v964_v14 = vadd.f32 %v932_v33, %v832_v38  ;;  %v965_v60 = vadd.f32 %v933_v62, %v833_v47  ;;  %v131_v45 = vld [vmem:[#allocation8 + $0x150] sm:$0xff]  ;;  %v132_v62 = vld [vmem:[#allocation8 + $0x158] sm:$0xff] }
  0xc6   :  { %v4882_v3 = vcombine.high %v139_v56, %v143_v35  ;;  %v4884_v12 = vcombine.high %v140_v32, %v144_v23  ;;  %v135_v33 = vld [vmem:[#allocation8 + $0x170] sm:$0xff]  ;;  %v136_v44 = vld [vmem:[#allocation8 + $0x178] sm:$0xff]  ;;  %v4890_v22 = vcombine.low %v139_v56, %v143_v35  ;;  %v4892_v38 = vcombine.low %v140_v32, %v144_v23 }
  0xc7   :  { %v1027_v26 = vcombine.low %v962_v52, %v963_v37  ;;  %v1028_v51 = vcombine.low %v964_v14, %v965_v60  ;;  %v4896_v47 = vcombine.high %v131_v45, %v135_v33  ;;  %v4898_v52 = vcombine.high %v132_v62, %v136_v44  ;;  %v123_v37 = vld [vmem:[#allocation8 + $0x110] sm:$0xff]  ;;  %v124_v60 = vld [vmem:[#allocation8 + $0x118] sm:$0xff] }
  0xc8   :  { %v127_v14 = vld [vmem:[#allocation8 + $0x130] sm:$0xff] }
  0xc9   :  { %v1035_v15 = vrot.slane %v1027_v26, %v4873_v24  ;;  %v1042_v30 = vrot.slane %v1028_v51, %v4873_v24  ;;  %v128_v26 = vld [vmem:[#allocation8 + $0x138] sm:$0xff]  ;;  %v4904_v51 = vcombine.low %v131_v45, %v135_v33  ;;  %v103_v45 = vld [vmem:[#allocation8 + $0x70] sm:$0xff] }
  0xca   :  { %v100_v33 = vld [vmem:[#allocation8 + $0x58] sm:$0xff] }
  0xcb   :  { %v1043_v19 = vcombine.low %v1035_v15, %v1042_v30  ;;  %v4906_v15 = vcombine.low %v132_v62, %v136_v44  ;;  %v4910_v30 = vcombine.high %v123_v37, %v127_v14  ;;  %v104_v62 = vld [vmem:[#allocation8 + $0x78] sm:$0xff] }
  0xcd   :  { %v3703_v20 = vmul.f32 -1.442695, %v1043_v19  ;;  %v1198_v9 = vrot.slane %v1043_v19, 6  ;;  %v4912_v19 = vcombine.high %v124_v60, %v128_v26 }
  0xcf   :  { %3933 = vpow2.f32 %v3703_v20  ;;  %v115_v20 = vld [vmem:[#allocation8 + $0xd0] sm:$0xff] }
  0xdc   :  { %v3934_v21 = vpop.eup %3933 }
  0xdd   :  { %v1194_v1 = vadd.f32 1.0, %v3934_v21  ;;  %v119_v21 = vld [vmem:[#allocation8 + $0xf0] sm:$0xff] }
  0xde   :  { %v4928_v56 = vcombine.low %v115_v20, %v119_v21 }
  0xdf   :  { %3935 = vrcp.f32 %v1194_v1  ;;  %v116_v1 = vld [vmem:[#allocation8 + $0xd8] sm:$0xff] }
  0xe0   :  { %3937 = vtanh.f32 %v1198_v9  ;;  %v4916_v9 = vcombine.low %v123_v37, %v127_v14 }
  0xec   :  { %v3936_v43 = vpop.eup %3935 }
  0xed   :  { %v1202_v53 = vrot.slane %v3936_v43, 2  ;;  %v3938_v59 = vpop.eup %3937  ;;  %v1208_v5 = vrot.slane %v3936_v43, 4 }
  0xee   :  { %v1205_v41 = vmul.f32 %v3938_v59, %v3936_v43  ;;  %v4918_v43 = vcombine.low %v124_v60, %v128_v26  ;;  %v4948_v60 = vcombine.high %v100_v33, %v104_v62  ;;  %v91_v26 = vld [vmem:[#allocation8 + $0x10] sm:$0xff] }
  0xef   :  { %v1204_v50 = vmul.f32 0.0, %v1202_v53  ;;  %v4922_v53 = vcombine.high %v115_v20, %v119_v21  ;;  %v95_v20 = vld [vmem:[#allocation8 + $0x30] sm:$0xff]  ;;  %v92_v21 = vld [vmem:[#allocation8 + $0x18] sm:$0xff] }
  0xf0   :  { %6617 = vst [vmem:[#allocation112_spill] sm:$0xff] %v4948_v60 }
  0xf1   :  { %v4877_v34 = vadd.f32 %v1205_v41, %v1204_v50  ;;  %v107_v50 = vld [vmem:[#allocation8 + $0x90] sm:$0xff] }
  0xf2   :  { %v111_v41 = vld [vmem:[#allocation8 + $0xb0] sm:$0xff] }
  0xf3   :  { %3939 = vtanh.f32 %v4877_v34  ;;  %v4934_v32 = vcombine.high %v107_v50, %v111_v41  ;;  %v4940_v44 = vcombine.low %v107_v50, %v111_v41  ;;  %v4954_v50 = vcombine.low %v100_v33, %v104_v62 }
  0xf4   :  { %v4958_v41 = vcombine.high %v91_v26, %v95_v20 }
  0xf5   :  { %6612 = vst [vmem:[#allocation107_spill] sm:$0xff] %v4934_v32  ;;  %6614 = vst [vmem:[#allocation109_spill] sm:$0xff] %v4940_v44 }
  0xf6   :  { %6619 = vst [vmem:[#allocation114_spill] sm:$0xff] %v4954_v50  ;;  %6620 = vst [vmem:[#allocation115_spill] sm:$0xff] %v4958_v41 }
 0x100   :  { %v3940_v25 = vpop.eup %3939 }
 0x101   :  { %v1210_v61 = vmul.f32 %v3940_v25, %v1208_v5  ;;  %v108_v25 = vld [vmem:[#allocation8 + $0x98] sm:$0xff] }
 0x102   :  { %v112_v5 = vld [vmem:[#allocation8 + $0xb8] sm:$0xff] }
 0x103   :  { %v4880_v40 = vpack.c.bf16 %v1210_v61, %v1210_v61  ;;  %v4936_v23 = vcombine.high %v108_v25, %v112_v5  ;;  %v99_v61 = vld [vmem:[#allocation8 + $0x50] sm:$0xff]  ;;  %v4942_v37 = vcombine.low %v108_v25, %v112_v5 }
 0x104   :  { %v4946_v14 = vcombine.high %v99_v61, %v103_v45  ;;  %v211_v5 = vld [vmem:[#allocation8 + $0x3d0] sm:$0xff] }
 0x105   :  { %1886 = vmatmul.mubr.bf16.vlgmr.msra.gmra.mxu0 %v4880_v40  ;;  %1927 = vmatmul.mubr.bf16.vlgmr.msra.gmra.mxu1 %v4880_v40  ;;  %6613 = vst [vmem:[#allocation108_spill] sm:$0xff] %v4936_v23  ;;  %6615 = vst [vmem:[#allocation110_spill] sm:$0xff] %v4942_v37 }
 0x106   :  { %1936 = vmatpush1.bf16.msra.mxu0 %v4604_v58  ;;  %1977 = vmatpush1.bf16.msra.mxu1 %v4612_v49  ;;  %6616 = vst [vmem:[#allocation111_spill] sm:$0xff] %v4946_v14 }
 0x107   :  { %1937 = vmatprep.subr.bf16.mxu0 %v4882_v3  ;;  %1978 = vmatprep.subr.bf16.mxu1 %v4884_v12 }
 0x108   :  { %1967 = vmatprep.mubr.bf16.mxu0 %v6570_v57  ;;  %2008 = vmatprep.mubr.bf16.mxu1 %v6570_v57  ;;  %v120_v57 = vld [vmem:[#allocation8 + $0xf8] sm:$0xff] }
 0x109   :  { %v4924_v59 = vcombine.high %v116_v1, %v120_v57  ;;  %v4930_v35 = vcombine.low %v116_v1, %v120_v57  ;;  %v96_v1 = vld [vmem:[#allocation8 + $0x38] sm:$0xff]  ;;  %v4952_v57 = vcombine.low %v99_v61, %v103_v45  ;;  %v4964_v61 = vcombine.low %v91_v26, %v95_v20 }
 0x10a   :  { %1938 = vmatpush1.bf16.msra.mxu0 %v4890_v22  ;;  %1979 = vmatpush1.bf16.msra.mxu1 %v4892_v38  ;;  %v4960_v25 = vcombine.high %v92_v21, %v96_v1  ;;  %v4966_v45 = vcombine.low %v92_v21, %v96_v1 }
 0x10b   :  { %1939 = vmatprep.subr.bf16.mxu0 %v4896_v47  ;;  %1980 = vmatprep.subr.bf16.mxu1 %v4898_v52  ;;  %6611 = vst [vmem:[#allocation106_spill] sm:$0xff] %v4930_v35  ;;  %6618 = vst [vmem:[#allocation113_spill] sm:$0xff] %v4952_v57 }
 0x10c   :  { %6621 = vst [vmem:[#allocation116_spill] sm:$0xff] %v4960_v25  ;;  %6622 = vst [vmem:[#allocation117_spill] sm:$0xff] %v4964_v61 }
 0x10d   :  { %6623 = vst [vmem:[#allocation118_spill] sm:$0xff] %v4966_v45 }
 0x10e   :  { %1940 = vmatpush1.bf16.msra.mxu0 %v4904_v51  ;;  %1981 = vmatpush1.bf16.msra.mxu1 %v4906_v15 }
 0x10f   :  { %1941 = vmatprep.subr.bf16.mxu0 %v4910_v30  ;;  %1982 = vmatprep.subr.bf16.mxu1 %v4912_v19 }
 0x112   :  { %1942 = vmatpush1.bf16.msra.mxu0 %v4916_v9  ;;  %1983 = vmatpush1.bf16.msra.mxu1 %v4918_v43 }
 0x113   :  { %1943 = vmatprep.subr.bf16.mxu0 %v4922_v53  ;;  %1984 = vmatprep.subr.bf16.mxu1 %v4924_v59 }
 0x116   :  { %1944 = vmatpush1.bf16.msra.mxu0 %v4928_v56  ;;  %1985 = vmatpush1.bf16.msra.mxu1 %v4930_v35  ;;  %v216_v35 = vld [vmem:[#allocation8 + $0x3f8] sm:$0xff] }
 0x117   :  { %1945 = vmatprep.subr.bf16.mxu0 %v4934_v32  ;;  %1986 = vmatprep.subr.bf16.mxu1 %v4936_v23  ;;  %v215_v23 = vld [vmem:[#allocation8 + $0x3f0] sm:$0xff]  ;;  %v212_v32 = vld [vmem:[#allocation8 + $0x3d8] sm:$0xff] }
 0x118   :  { %v4970_v33 = vcombine.high %v211_v5, %v215_v23  ;;  %v4972_v62 = vcombine.high %v212_v32, %v216_v35  ;;  %v4976_v26 = vcombine.low %v211_v5, %v215_v23  ;;  %v4978_v20 = vcombine.low %v212_v32, %v216_v35 }
 0x11a   :  { %1946 = vmatpush1.bf16.msra.mxu0 %v4940_v44  ;;  %1987 = vmatpush1.bf16.msra.mxu1 %v4942_v37  ;;  %6624 = vst [vmem:[#allocation119_spill] sm:$0xff] %v4970_v33  ;;  %6625 = vst [vmem:[#allocation120_spill] sm:$0xff] %v4972_v62  ;;  %v204_v37 = vld [vmem:[#allocation8 + $0x398] sm:$0xff] }
 0x11b   :  { %1947 = vmatprep.subr.bf16.mxu0 %v4946_v14  ;;  %1988 = vmatprep.subr.bf16.mxu1 %v4948_v60  ;;  %v203_v60 = vld [vmem:[#allocation8 + $0x390] sm:$0xff]  ;;  %v208_v44 = vld [vmem:[#allocation8 + $0x3b8] sm:$0xff]  ;;  %6626 = vst [vmem:[#allocation121_spill] sm:$0xff] %v4976_v26  ;;  %6627 = vst [vmem:[#allocation122_spill] sm:$0xff] %v4978_v20 }
 0x11c   :  { %v207_v14 = vld [vmem:[#allocation8 + $0x3b0] sm:$0xff]  ;;  %v4984_v1 = vcombine.high %v204_v37, %v208_v44  ;;  %v4990_v35 = vcombine.low %v204_v37, %v208_v44 }
 0x11d   :  { %v4982_v21 = vcombine.high %v203_v60, %v207_v14  ;;  %v4988_v23 = vcombine.low %v203_v60, %v207_v14 }
 0x11e   :  { %1948 = vmatpush1.bf16.msra.mxu0 %v4952_v57  ;;  %1989 = vmatpush1.bf16.msra.mxu1 %v4954_v50  ;;  %6629 = vst [vmem:[#allocation124_spill] sm:$0xff] %v4984_v1  ;;  %v196_v50 = vld [vmem:[#allocation8 + $0x358] sm:$0xff]  ;;  %6631 = vst [vmem:[#allocation126_spill] sm:$0xff] %v4990_v35 }
 0x11f   :  { %1949 = vmatprep.subr.bf16.mxu0 %v4958_v41  ;;  %1990 = vmatprep.subr.bf16.mxu1 %v4960_v25  ;;  %6628 = vst [vmem:[#allocation123_spill] sm:$0xff] %v4982_v21  ;;  %v195_v25 = vld [vmem:[#allocation8 + $0x350] sm:$0xff]  ;;  %v200_v57 = vld [vmem:[#allocation8 + $0x378] sm:$0xff]  ;;  %6630 = vst [vmem:[#allocation125_spill] sm:$0xff] %v4988_v23 }
 0x120   :  { %v199_v41 = vld [vmem:[#allocation8 + $0x370] sm:$0xff]  ;;  %v4996_v5 = vcombine.high %v196_v50, %v200_v57  ;;  %v5002_v44 = vcombine.low %v196_v50, %v200_v57 }
 0x121   :  { %v4994_v32 = vcombine.high %v195_v25, %v199_v41  ;;  %v5000_v14 = vcombine.low %v195_v25, %v199_v41 }
 0x122   :  { %1950 = vmatpush1.bf16.msra.mxu0 %v4964_v61  ;;  %1991 = vmatpush1.bf16.msra.mxu1 %v4966_v45  ;;  %6633 = vst [vmem:[#allocation128_spill] sm:$0xff] %v4996_v5  ;;  %v188_v45 = vld [vmem:[#allocation8 + $0x318] sm:$0xff]  ;;  %6635 = vst [vmem:[#allocation130_spill] sm:$0xff] %v5002_v44 }
 0x123   :  { %1951 = vmatprep.subr.bf16.mxu0 %v4970_v33  ;;  %1992 = vmatprep.subr.bf16.mxu1 %v4972_v62  ;;  %6632 = vst [vmem:[#allocation127_spill] sm:$0xff] %v4994_v32  ;;  %v187_v62 = vld [vmem:[#allocation8 + $0x310] sm:$0xff]  ;;  %v192_v61 = vld [vmem:[#allocation8 + $0x338] sm:$0xff]  ;;  %6634 = vst [vmem:[#allocation129_spill] sm:$0xff] %v5000_v14 }
 0x124   :  { %v191_v33 = vld [vmem:[#allocation8 + $0x330] sm:$0xff]  ;;  %v5008_v60 = vcombine.high %v188_v45, %v192_v61  ;;  %v5014_v57 = vcombine.low %v188_v45, %v192_v61 }
 0x125   :  { %v5006_v37 = vcombine.high %v187_v62, %v191_v33  ;;  %v5012_v41 = vcombine.low %v187_v62, %v191_v33 }
 0x126   :  { %1952 = vmatpush2.bf16.msra.mxu0 %v4976_v26  ;;  %1993 = vmatpush2.bf16.msra.mxu1 %v4978_v20  ;;  %6637 = vst [vmem:[#allocation132_spill] sm:$0xff] %v5008_v60  ;;  %v180_v20 = vld [vmem:[#allocation8 + $0x2d8] sm:$0xff]  ;;  %6639 = vst [vmem:[#allocation134_spill] sm:$0xff] %v5014_v57 }
 0x127   :  { %1953 = vmatprep.subr.bf16.mxu0 %v4982_v21  ;;  %1994 = vmatprep.subr.bf16.mxu1 %v4984_v1  ;;  %6636 = vst [vmem:[#allocation131_spill] sm:$0xff] %v5006_v37  ;;  %v179_v1 = vld [vmem:[#allocation8 + $0x2d0] sm:$0xff]  ;;  %v184_v26 = vld [vmem:[#allocation8 + $0x2f8] sm:$0xff]  ;;  %6638 = vst [vmem:[#allocation133_spill] sm:$0xff] %v5012_v41 }
 0x128   :  { %v183_v21 = vld [vmem:[#allocation8 + $0x2f0] sm:$0xff]  ;;  %v5020_v25 = vcombine.high %v180_v20, %v184_v26  ;;  %v5026_v61 = vcombine.low %v180_v20, %v184_v26 }
 0x129   :  { %v5018_v50 = vcombine.high %v179_v1, %v183_v21  ;;  %v5024_v33 = vcombine.low %v179_v1, %v183_v21 }
 0x12a   :  { %1954 = vmatpush2.bf16.msra.mxu0 %v4988_v23  ;;  %1995 = vmatpush2.bf16.msra.mxu1 %v4990_v35  ;;  %6641 = vst [vmem:[#allocation136_spill] sm:$0xff] %v5020_v25  ;;  %v172_v35 = vld [vmem:[#allocation8 + $0x298] sm:$0xff]  ;;  %6643 = vst [vmem:[#allocation138_spill] sm:$0xff] %v5026_v61 }
 0x12b   :  { %1955 = vmatprep.subr.bf16.mxu0 %v4994_v32  ;;  %1996 = vmatprep.subr.bf16.mxu1 %v4996_v5  ;;  %6640 = vst [vmem:[#allocation135_spill] sm:$0xff] %v5018_v50  ;;  %v171_v5 = vld [vmem:[#allocation8 + $0x290] sm:$0xff]  ;;  %v176_v23 = vld [vmem:[#allocation8 + $0x2b8] sm:$0xff]  ;;  %6642 = vst [vmem:[#allocation137_spill] sm:$0xff] %v5024_v33 }
 0x12c   :  { %v175_v32 = vld [vmem:[#allocation8 + $0x2b0] sm:$0xff]  ;;  %v5032_v62 = vcombine.high %v172_v35, %v176_v23  ;;  %v5038_v26 = vcombine.low %v172_v35, %v176_v23 }
 0x12d   :  { %v5030_v45 = vcombine.high %v171_v5, %v175_v32  ;;  %v5036_v21 = vcombine.low %v171_v5, %v175_v32 }
 0x12e   :  { %1956 = vmatpush2.bf16.msra.mxu0 %v5000_v14  ;;  %1997 = vmatpush2.bf16.msra.mxu1 %v5002_v44  ;;  %6645 = vst [vmem:[#allocation140_spill] sm:$0xff] %v5032_v62  ;;  %v164_v44 = vld [vmem:[#allocation8 + $0x258] sm:$0xff]  ;;  %6647 = vst [vmem:[#allocation142_spill] sm:$0xff] %v5038_v26 }
 0x12f   :  { %1957 = vmatprep.subr.bf16.mxu0 %v5006_v37  ;;  %1998 = vmatprep.subr.bf16.mxu1 %v5008_v60  ;;  %6644 = vst [vmem:[#allocation139_spill] sm:$0xff] %v5030_v45  ;;  %v163_v60 = vld [vmem:[#allocation8 + $0x250] sm:$0xff]  ;;  %v168_v14 = vld [vmem:[#allocation8 + $0x278] sm:$0xff]  ;;  %6646 = vst [vmem:[#allocation141_spill] sm:$0xff] %v5036_v21 }
 0x130   :  { %v167_v37 = vld [vmem:[#allocation8 + $0x270] sm:$0xff]  ;;  %v5044_v1 = vcombine.high %v164_v44, %v168_v14  ;;  %v5050_v23 = vcombine.low %v164_v44, %v168_v14  ;;  %v6656_v14 = vld [vmem:[#allocation19_spill] sm:$0xff]  ;;  %v6657_v44 = vld [vmem:[#allocation20_spill] sm:$0xff] }
 0x131   :  { %v5042_v20 = vcombine.high %v163_v60, %v167_v37  ;;  %v5048_v32 = vcombine.low %v163_v60, %v167_v37  ;;  %v6658_v37 = vld [vmem:[#allocation21_spill] sm:$0xff]  ;;  %v6659_v60 = vld [vmem:[#allocation22_spill] sm:$0xff] }
 0x132   :  { %1958 = vmatpush2.bf16.msra.mxu0 %v5012_v41  ;;  %1999 = vmatpush2.bf16.msra.mxu1 %v5014_v57  ;;  %6649 = vst [vmem:[#allocation144_spill] sm:$0xff] %v5044_v1  ;;  %v156_v57 = vld [vmem:[#allocation8 + $0x218] sm:$0xff]  ;;  %6651 = vst [vmem:[#allocation146_spill] sm:$0xff] %v5050_v23 }
 0x133   :  { %1959 = vmatprep.subr.bf16.mxu0 %v5018_v50  ;;  %2000 = vmatprep.subr.bf16.mxu1 %v5020_v25  ;;  %6648 = vst [vmem:[#allocation143_spill] sm:$0xff] %v5042_v20  ;;  %v155_v25 = vld [vmem:[#allocation8 + $0x210] sm:$0xff]  ;;  %v160_v41 = vld [vmem:[#allocation8 + $0x238] sm:$0xff]  ;;  %6650 = vst [vmem:[#allocation145_spill] sm:$0xff] %v5048_v32 }
 0x134   :  { %v159_v50 = vld [vmem:[#allocation8 + $0x230] sm:$0xff]  ;;  %v5056_v5 = vcombine.high %v156_v57, %v160_v41 }
 0x135   :  { %v5054_v35 = vcombine.high %v155_v25, %v159_v50 }
 0x136   :  { %1960 = vmatpush2.bf16.msra.mxu0 %v5024_v33  ;;  %2001 = vmatpush2.bf16.msra.mxu1 %v5026_v61  ;;  %6653 = vst [vmem:[#allocation148_spill] sm:$0xff] %v5056_v5 }
 0x137   :  { %1961 = vmatprep.subr.bf16.mxu0 %v5030_v45  ;;  %2002 = vmatprep.subr.bf16.mxu1 %v5032_v62  ;;  %6652 = vst [vmem:[#allocation147_spill] sm:$0xff] %v5054_v35  ;;  %v5060_v62 = vcombine.low %v155_v25, %v159_v50  ;;  %v6662_v50 = vld [vmem:[#allocation25_spill] sm:$0xff]  ;;  %v6663_v25 = vld [vmem:[#allocation26_spill] sm:$0xff] }
 0x139   :  { %6654 = vst [vmem:[#allocation149_spill] sm:$0xff] %v5060_v62 }
 0x13a   :  { %1962 = vmatpush2.bf16.msra.mxu0 %v5036_v21  ;;  %2003 = vmatpush2.bf16.msra.mxu1 %v5038_v26  ;;  %v5062_v21 = vcombine.low %v156_v57, %v160_v41  ;;  %v6660_v41 = vld [vmem:[#allocation23_spill] sm:$0xff]  ;;  %v6661_v57 = vld [vmem:[#allocation24_spill] sm:$0xff] }
 0x13b   :  { %1963 = vmatprep.subr.bf16.mxu0 %v5042_v20  ;;  %2004 = vmatprep.subr.bf16.mxu1 %v5044_v1 }
 0x13c   :  { %6655 = vst [vmem:[#allocation150_spill] sm:$0xff] %v5062_v21 }
 0x13e   :  { %1964 = vmatpush2.bf16.msra.mxu0 %v5048_v32  ;;  %2005 = vmatpush2.bf16.msra.mxu1 %v5050_v23 }
 0x13f   :  { %1965 = vmatprep.subr.bf16.mxu0 %v5054_v35  ;;  %2006 = vmatprep.subr.bf16.mxu1 %v5056_v5 }
 0x142   :  { %1966 = vmatpush2.bf16.msra.mxu0 %v5060_v62  ;;  %2007 = vmatpush2.bf16.msra.mxu1 %v5062_v21  ;;  %v736_v21 = vpop.permute.xlu0 %735 }
 0x143   :  { %2099 = vmatprep.subr.bf16.mxu0 %v4369_v13  ;;  %2140 = vmatprep.subr.bf16.mxu1 %v4376_v17  ;;  %v6664_v17 = vld [vmem:[#allocation27_spill] sm:$0xff] }
 0x145   :  { %1968 = vmatmul.mubr.bf16.vlgmr.msra.gmra.mxu0 %v4880_v40  ;;  %2009 = vmatmul.mubr.bf16.vlgmr.msra.gmra.mxu1 %v4880_v40  ;;  %v6665_v40 = vld [vmem:[#allocation28_spill] sm:$0xff] }
 0x146   :  { %2100 = vmatpush1.bf16.msra.mxu0 %v4378_v18  ;;  %2141 = vmatpush1.bf16.msra.mxu1 %v6656_v14  ;;  %v6666_v18 = vld [vmem:[#allocation29_spill] sm:$0xff]  ;;  %v6667_v14 = vld [vmem:[#allocation30_spill] sm:$0xff] }
 0x147   :  { %2101 = vmatprep.subr.bf16.mxu0 %v6657_v44  ;;  %2142 = vmatprep.subr.bf16.mxu1 %v6658_v37  ;;  %v6668_v44 = vld [vmem:[#allocation31_spill] sm:$0xff]  ;;  %v6669_v37 = vld [vmem:[#allocation32_spill] sm:$0xff] }
 0x14a   :  { %2102 = vmatpush1.bf16.msra.mxu0 %v6659_v60  ;;  %2143 = vmatpush1.bf16.msra.mxu1 %v6660_v41  ;;  %v6670_v60 = vld [vmem:[#allocation33_spill] sm:$0xff]  ;;  %v6671_v41 = vld [vmem:[#allocation34_spill] sm:$0xff] }
 0x14b   :  { %2103 = vmatprep.subr.bf16.mxu0 %v6661_v57  ;;  %2144 = vmatprep.subr.bf16.mxu1 %v6662_v50  ;;  %v6672_v57 = vld [vmem:[#allocation35_spill] sm:$0xff]  ;;  %v6673_v50 = vld [vmem:[#allocation36_spill] sm:$0xff] }
 0x14e   :  { %2104 = vmatpush1.bf16.msra.mxu0 %v6663_v25  ;;  %2145 = vmatpush1.bf16.msra.mxu1 %v6664_v17  ;;  %v6674_v25 = vld [vmem:[#allocation37_spill] sm:$0xff]  ;;  %v6675_v17 = vld [vmem:[#allocation38_spill] sm:$0xff] }
 0x14f   :  { %2105 = vmatprep.subr.bf16.mxu0 %v6665_v40  ;;  %2146 = vmatprep.subr.bf16.mxu1 %v6666_v18  ;;  %v6676_v40 = vld [vmem:[#allocation39_spill] sm:$0xff]  ;;  %v6677_v18 = vld [vmem:[#allocation40_spill] sm:$0xff] }
 0x152   :  { %2106 = vmatpush1.bf16.msra.mxu0 %v6667_v14  ;;  %2147 = vmatpush1.bf16.msra.mxu1 %v6668_v44  ;;  %v6678_v14 = vld [vmem:[#allocation41_spill] sm:$0xff]  ;;  %v6679_v44 = vld [vmem:[#allocation42_spill] sm:$0xff] }
 0x153   :  { %2107 = vmatprep.subr.bf16.mxu0 %v6669_v37  ;;  %2148 = vmatprep.subr.bf16.mxu1 %v6670_v60  ;;  %v6680_v37 = vld [vmem:[#allocation43_spill] sm:$0xff]  ;;  %v6681_v60 = vld [vmem:[#allocation44_spill] sm:$0xff] }
 0x156   :  { %2108 = vmatpush1.bf16.msra.mxu0 %v6671_v41  ;;  %2149 = vmatpush1.bf16.msra.mxu1 %v6672_v57  ;;  %v6682_v41 = vld [vmem:[#allocation45_spill] sm:$0xff]  ;;  %v6683_v57 = vld [vmem:[#allocation46_spill] sm:$0xff] }
 0x157   :  { %2109 = vmatprep.subr.bf16.mxu0 %v6673_v50  ;;  %2150 = vmatprep.subr.bf16.mxu1 %v6674_v25  ;;  %v6684_v50 = vld [vmem:[#allocation47_spill] sm:$0xff]  ;;  %v6685_v25 = vld [vmem:[#allocation48_spill] sm:$0xff] }
 0x15a   :  { %2110 = vmatpush1.bf16.msra.mxu0 %v6675_v17  ;;  %2151 = vmatpush1.bf16.msra.mxu1 %v6676_v40  ;;  %v6686_v17 = vld [vmem:[#allocation49_spill] sm:$0xff]  ;;  %v6687_v40 = vld [vmem:[#allocation50_spill] sm:$0xff] }
 0x15b   :  { %2111 = vmatprep.subr.bf16.mxu0 %v6677_v18  ;;  %2152 = vmatprep.subr.bf16.mxu1 %v6678_v14  ;;  %v6688_v18 = vld [vmem:[#allocation51_spill] sm:$0xff]  ;;  %v6689_v14 = vld [vmem:[#allocation52_spill] sm:$0xff] }
 0x15e   :  { %2112 = vmatpush1.bf16.msra.mxu0 %v6679_v44  ;;  %2153 = vmatpush1.bf16.msra.mxu1 %v6680_v37  ;;  %v6690_v44 = vld [vmem:[#allocation53_spill] sm:$0xff]  ;;  %v6691_v37 = vld [vmem:[#allocation54_spill] sm:$0xff] }
 0x15f   :  { %2113 = vmatprep.subr.bf16.mxu0 %v6681_v60  ;;  %2154 = vmatprep.subr.bf16.mxu1 %v6682_v41  ;;  %v6692_v60 = vld [vmem:[#allocation55_spill] sm:$0xff]  ;;  %v6693_v41 = vld [vmem:[#allocation56_spill] sm:$0xff] }
 0x162   :  { %2114 = vmatpush1.bf16.msra.mxu0 %v6683_v57  ;;  %2155 = vmatpush1.bf16.msra.mxu1 %v6684_v50  ;;  %v6694_v57 = vld [vmem:[#allocation57_spill] sm:$0xff]  ;;  %v6695_v50 = vld [vmem:[#allocation58_spill] sm:$0xff] }
 0x163   :  { %2115 = vmatprep.subr.bf16.mxu0 %v6685_v25  ;;  %2156 = vmatprep.subr.bf16.mxu1 %v6686_v17  ;;  %v6696_v25 = vld [vmem:[#allocation59_spill] sm:$0xff]  ;;  %v6697_v17 = vld [vmem:[#allocation60_spill] sm:$0xff] }
 0x166   :  { %2116 = vmatpush2.bf16.msra.mxu0 %v6687_v40  ;;  %2157 = vmatpush2.bf16.msra.mxu1 %v6688_v18  ;;  %v6698_v40 = vld [vmem:[#allocation61_spill] sm:$0xff]  ;;  %v6699_v18 = vld [vmem:[#allocation62_spill] sm:$0xff] }
 0x167   :  { %2117 = vmatprep.subr.bf16.mxu0 %v6689_v14  ;;  %2158 = vmatprep.subr.bf16.mxu1 %v6690_v44  ;;  %v6700_v14 = vld [vmem:[#allocation63_spill] sm:$0xff]  ;;  %v6701_v44 = vld [vmem:[#allocation64_spill] sm:$0xff] }
 0x16a   :  { %2118 = vmatpush2.bf16.msra.mxu0 %v6691_v37  ;;  %2159 = vmatpush2.bf16.msra.mxu1 %v6692_v60  ;;  %v6702_v37 = vld [vmem:[#allocation65_spill] sm:$0xff]  ;;  %v6703_v60 = vld [vmem:[#allocation66_spill] sm:$0xff] }
 0x16b   :  { %2119 = vmatprep.subr.bf16.mxu0 %v6693_v41  ;;  %2160 = vmatprep.subr.bf16.mxu1 %v6694_v57  ;;  %v6704_v41 = vld [vmem:[#allocation67_spill] sm:$0xff]  ;;  %v6705_v57 = vld [vmem:[#allocation68_spill] sm:$0xff] }
 0x16e   :  { %2120 = vmatpush2.bf16.msra.mxu0 %v6695_v50  ;;  %2161 = vmatpush2.bf16.msra.mxu1 %v6696_v25  ;;  %v6706_v50 = vld [vmem:[#allocation69_spill] sm:$0xff]  ;;  %v6707_v25 = vld [vmem:[#allocation70_spill] sm:$0xff] }
 0x16f   :  { %2121 = vmatprep.subr.bf16.mxu0 %v6697_v17  ;;  %2162 = vmatprep.subr.bf16.mxu1 %v6698_v40  ;;  %v6708_v17 = vld [vmem:[#allocation71_spill] sm:$0xff]  ;;  %v6709_v40 = vld [vmem:[#allocation72_spill] sm:$0xff] }
 0x172   :  { %2122 = vmatpush2.bf16.msra.mxu0 %v6699_v18  ;;  %2163 = vmatpush2.bf16.msra.mxu1 %v6700_v14  ;;  %v6710_v18 = vld [vmem:[#allocation73_spill] sm:$0xff]  ;;  %v6711_v14 = vld [vmem:[#allocation74_spill] sm:$0xff] }
 0x173   :  { %2123 = vmatprep.subr.bf16.mxu0 %v6701_v44  ;;  %2164 = vmatprep.subr.bf16.mxu1 %v6702_v37  ;;  %v6712_v44 = vld [vmem:[#allocation75_spill] sm:$0xff]  ;;  %v6713_v37 = vld [vmem:[#allocation76_spill] sm:$0xff] }
 0x176   :  { %2124 = vmatpush2.bf16.msra.mxu0 %v6703_v60  ;;  %2165 = vmatpush2.bf16.msra.mxu1 %v6704_v41  ;;  %v6714_v60 = vld [vmem:[#allocation77_spill] sm:$0xff]  ;;  %v6715_v41 = vld [vmem:[#allocation78_spill] sm:$0xff] }
 0x177   :  { %2125 = vmatprep.subr.bf16.mxu0 %v6705_v57  ;;  %2166 = vmatprep.subr.bf16.mxu1 %v6706_v50  ;;  %v6716_v57 = vld [vmem:[#allocation79_spill] sm:$0xff]  ;;  %v6717_v50 = vld [vmem:[#allocation80_spill] sm:$0xff] }
 0x17a   :  { %2126 = vmatpush2.bf16.msra.mxu0 %v6707_v25  ;;  %2167 = vmatpush2.bf16.msra.mxu1 %v6708_v17  ;;  %v6718_v25 = vld [vmem:[#allocation81_spill] sm:$0xff]  ;;  %v464_v17 = vpop.permute.xlu1 %463 }
 0x17b   :  { %2127 = vmatprep.subr.bf16.mxu0 %v6709_v40  ;;  %2168 = vmatprep.subr.bf16.mxu1 %v6710_v18  ;;  %v538_v18 = vmul.f32 %v4810_v10, %v464_v17 }
 0x17e   :  { %2128 = vmatpush2.bf16.msra.mxu0 %v6711_v14  ;;  %2169 = vmatpush2.bf16.msra.mxu1 %v6712_v44  ;;  %v604_v40 = vpop.permute.xlu1 %603  ;;  %v539_v14 = vmul.f32 %v4757_v63, %v464_v17  ;;  %v540_v44 = vmul.f32 %v4816_v2, %v464_v17  ;;  %v802_v2 = vmul.f32 %v4825_v4, %v736_v21 }
 0x17f   :  { %2129 = vmatprep.subr.bf16.mxu0 %v6713_v37  ;;  %2170 = vmatprep.subr.bf16.mxu1 %v6714_v60  ;;  %v541_v37 = vmul.f32 %v4763_v55, %v464_v17  ;;  %v670_v60 = vmul.f32 %v4807_v46, %v604_v40  ;;  %v803_v17 = vmul.f32 %v4721_v42, %v736_v21 }
 0x180   :  { %v571_v13 = vadd.f32 %v539_v14, %v4850_v28  ;;  %v572_v10 = vadd.f32 %v540_v44, %v4852_v29  ;;  %v804_v46 = vmul.f32 %v4822_v48, %v736_v21 }
 0x181   :  { %v573_v63 = vadd.f32 %v541_v37, %v4854_v16 }
 0x182   :  { %2130 = vmatpush2.bf16.msra.mxu0 %v6715_v41  ;;  %2171 = vmatpush2.bf16.msra.mxu1 %v6716_v57  ;;  %v671_v41 = vmul.f32 %v4795_v36, %v604_v40  ;;  %v672_v57 = vmul.f32 %v4804_v0, %v604_v40  ;;  %v805_v36 = vmul.f32 %v4739_v6, %v736_v21 }
 0x183   :  { %2181 = vmatprep.subr.bf16.mxu0 %v6717_v50  ;;  %2222 = vmatprep.subr.bf16.mxu1 %v6718_v25  ;;  %v673_v50 = vmul.f32 %v4798_v7, %v604_v40  ;;  %v570_v25 = vadd.f32 %v538_v18, %v4848_v27  ;;  %v868_v18 = vpop.permute.xlu1 %867 }
 0x184   :  { %v703_v55 = vadd.f32 %v671_v41, %v571_v13  ;;  %v704_v40 = vadd.f32 %v672_v57, %v572_v10  ;;  %v934_v37 = vmul.f32 %v4828_v31, %v868_v18  ;;  %v935_v16 = vmul.f32 %v4772_v39, %v868_v18 }
 0x185   :  { %v702_v0 = vadd.f32 %v670_v60, %v570_v25  ;;  %v705_v7 = vadd.f32 %v673_v50, %v573_v63  ;;  %v936_v4 = vmul.f32 %v4834_v11, %v868_v18  ;;  %v937_v42 = vmul.f32 %v4775_v54, %v868_v18 }
 0x186   :  { %v835_v14 = vadd.f32 %v803_v17, %v703_v55  ;;  %v836_v28 = vadd.f32 %v804_v46, %v704_v40 }
 0x187   :  { %v834_v27 = vadd.f32 %v802_v2, %v702_v0  ;;  %v837_v44 = vadd.f32 %v805_v36, %v705_v7 }
 0x188   :  { %v967_v29 = vadd.f32 %v935_v16, %v835_v14  ;;  %v968_v21 = vadd.f32 %v936_v4, %v836_v28 }
 0x189   :  { %v966_v48 = vadd.f32 %v934_v37, %v834_v27  ;;  %v969_v60 = vadd.f32 %v937_v42, %v837_v44 }
 0x18b   :  { %v1044_v13 = vcombine.low %v966_v48, %v967_v29  ;;  %v1045_v10 = vcombine.low %v968_v21, %v969_v60 }
 0x18d   :  { %v1052_v63 = vrot.slane %v1044_v13, %v4873_v24  ;;  %v1059_v55 = vrot.slane %v1045_v10, %v4873_v24 }
 0x18f   :  { %v1060_v0 = vcombine.low %v1052_v63, %v1059_v55  ;;  %v3877_v48 = vcombine.low %v1059_v55, %v1059_v55 }
 0x191   :  { %v2027_v36 = vrot.slane %v1060_v0, %v4873_v24  ;;  %v2034_v17 = vrot.slane %v3877_v48, %v4873_v24 }
 0x193   :  { %v2035_v41 = vcombine.high %v2027_v36, %v2027_v36  ;;  %v2036_v40 = vcombine.high %v2034_v17, %v2034_v17 }
 0x1c5   :  { %v1887_v7 = vpop.f32.mrf.mxu0  ;;  %v1928_v46 = vpop.f32.mrf.mxu1 }
 0x1c6   :  { %v2041_v2 = vadd.f32 %v2027_v36, %v1887_v7  ;;  %v217_v36 = vld [vmem:[#allocation9] sm:$0xf] }
 0x1c7   :  { %v1889_v57 = vpop.f32.mrf.mxu0  ;;  %v1930_v50 = vpop.f32.mrf.mxu1  ;;  %v5164_v7 = vrot.slane %v217_v36, %v4679_v8  ;;  %v6722_v8 = vld [vmem:[#allocation82_spill] sm:$0xff] }
 0x1c8   :  { %v3832_v25 = vmul.f32 -1.442695, %v2041_v2  ;;  %v2042_v27 = vadd.f32 %v2035_v41, %v1889_v57  ;;  %v2044_v18 = vadd.f32 %v2036_v40, %v1930_v50  ;;  %v6720_v2 = vld [vmem:[#allocation83_spill] sm:$0xff] }
 0x1c9   :  { %v1891_v16 = vpop.f32.mrf.mxu0  ;;  %v1932_v4 = vpop.f32.mrf.mxu1  ;;  %6719 = vst [vmem:[#allocation151_spill] sm:$0xff] %v5164_v7  ;;  %v5167_v41 = vrot.slane %v217_v36, %v6720_v2 }
 0x1ca   :  { %3941 = vpow2.f32 %v3832_v25  ;;  %v3833_v42 = vmul.f32 -1.442695, %v2042_v27 }
 0x1cb   :  { %v1892_v28 = vpop.f32.mrf.mxu0  ;;  %v1933_v29 = vpop.f32.mrf.mxu1  ;;  %6721 = vst [vmem:[#allocation83_spill] sm:$0xff] %v5167_v41 }
 0x1cc   :  { %3943 = vpow2.f32 %v3833_v42 }
 0x1cd   :  { %3945 = vtanh.f32 %v2044_v18  ;;  %v5172_v18 = vrot.slane %v217_v36, %v6722_v8 }
 0x1cf   :  { %6723 = vst [vmem:[#allocation82_spill] sm:$0xff] %v5172_v18 }
 0x1d7   :  { %v3942_v14 = vpop.eup %3941 }
 0x1d8   :  { %v2054_v44 = vadd.f32 1.0, %v3942_v14  ;;  %v2043_v14 = vadd.f32 %v2034_v17, %v1928_v46 }
 0x1d9   :  { %v3944_v37 = vpop.eup %3943 }
 0x1da   :  { %3947 = vrcp.f32 %v2054_v44  ;;  %v2055_v21 = vadd.f32 1.0, %v3944_v37  ;;  %v3946_v60 = vpop.eup %3945  ;;  %v6724_v37 = vld [vmem:[#allocation84_spill] sm:$0xff] }
 0x1dc   :  { %3949 = vrcp.f32 %v2055_v21  ;;  %v5176_v21 = vrot.slane %v217_v36, %v6724_v37 }
 0x1de   :  { %6725 = vst [vmem:[#allocation84_spill] sm:$0xff] %v5176_v21 }
 0x1e7   :  { %v3948_v13 = vpop.eup %3947 }
 0x1e8   :  { %v2065_v10 = vmul.f32 %v3948_v13, %v3946_v60  ;;  %v3834_v60 = vmul.f32 -1.442695, %v2043_v14 }
 0x1e9   :  { %v3950_v63 = vpop.eup %3949 }
 0x1ea   :  { %v2064_v55 = vmul.f32 %v3950_v63, %v4877_v34 }
 0x1ec   :  { %v5161_v0 = vadd.f32 %v2065_v10, %v2064_v55 }
 0x205   :  { %v1969_v57 = vpop.f32.mrf.mxu0  ;;  %v2010_v50 = vpop.f32.mrf.mxu1 }
 0x206   :  { %v2069_v25 = vadd.f32 %v1969_v57, %v5164_v7  ;;  %v2071_v44 = vadd.f32 %v2010_v50, %v5172_v18 }
 0x207   :  { %v1971_v27 = vpop.f32.mrf.mxu0  ;;  %v2012_v16 = vpop.f32.mrf.mxu1 }
 0x208   :  { %v3835_v4 = vmul.f32 -1.442695, %v2069_v25  ;;  %v2070_v42 = vadd.f32 %v1971_v27, %v5167_v41  ;;  %v3837_v13 = vmul.f32 -1.442695, %v2071_v44  ;;  %v2072_v63 = vadd.f32 %v2012_v16, %v5176_v21 }
 0x209   :  { %v1973_v48 = vpop.f32.mrf.mxu0  ;;  %v2014_v34 = vpop.f32.mrf.mxu1 }
 0x20a   :  { %3951 = vpow2.f32 %v3835_v4  ;;  %v3836_v28 = vmul.f32 -1.442695, %v2070_v42 }
 0x20b   :  { %v1974_v29 = vpop.f32.mrf.mxu0  ;;  %v2015_v40 = vpop.f32.mrf.mxu1 }
 0x20c   :  { %3953 = vpow2.f32 %v3836_v28 }
 0x20d   :  { %3955 = vpow2.f32 %v3834_v60  ;;  %v6726_v60 = vld [vmem:[#allocation106_spill] sm:$0xff] }
 0x20e   :  { %3957 = vpow2.f32 %v3837_v13  ;;  %v6727_v13 = vld [vmem:[#allocation107_spill] sm:$0xff] }
 0x217   :  { %v3952_v10 = vpop.eup %3951 }
 0x218   :  { %v2082_v55 = vadd.f32 1.0, %v3952_v10  ;;  %v6728_v10 = vld [vmem:[#allocation108_spill] sm:$0xff] }
 0x219   :  { %v3954_v2 = vpop.eup %3953 }
 0x21a   :  { %3959 = vrcp.f32 %v2082_v55  ;;  %v2083_v57 = vadd.f32 1.0, %v3954_v2  ;;  %v3956_v25 = vpop.eup %3955  ;;  %v6730_v55 = vld [vmem:[#allocation110_spill] sm:$0xff]  ;;  %v6731_v2 = vld [vmem:[#allocation111_spill] sm:$0xff] }
 0x21b   :  { %3961 = vtanh.f32 %v2072_v63  ;;  %v3958_v46 = vpop.eup %3957  ;;  %v2056_v27 = vadd.f32 1.0, %v3956_v25  ;;  %v6729_v63 = vld [vmem:[#allocation109_spill] sm:$0xff] }
 0x21c   :  { %3963 = vrcp.f32 %v2083_v57  ;;  %v2084_v4 = vadd.f32 1.0, %v3958_v46  ;;  %v6732_v57 = vld [vmem:[#allocation112_spill] sm:$0xff]  ;;  %v6733_v25 = vld [vmem:[#allocation113_spill] sm:$0xff]  ;;  %v6734_v46 = vld [vmem:[#allocation114_spill] sm:$0xff] }
 0x21d   :  { %3965 = vtanh.f32 %v5161_v0 }
 0x21e   :  { %3967 = vrcp.f32 %v2056_v27  ;;  %v6737_v27 = vld [vmem:[#allocation117_spill] sm:$0xff] }
 0x21f   :  { %3969 = vrcp.f32 %v2084_v4  ;;  %v6739_v4 = vld [vmem:[#allocation119_spill] sm:$0xff] }
 0x227   :  { %v3960_v17 = vpop.eup %3959 }
 0x228   :  { %v3962_v50 = vpop.eup %3961 }
 0x229   :  { %v3964_v36 = vpop.eup %3963  ;;  %v2093_v48 = vmul.f32 %v3962_v50, %v3960_v17  ;;  %v6735_v17 = vld [vmem:[#allocation115_spill] sm:$0xff]  ;;  %v6736_v50 = vld [vmem:[#allocation116_spill] sm:$0xff] }
 0x22a   :  { %v2092_v42 = vmul.f32 0.0, %v3964_v36  ;;  %v3966_v34 = vpop.eup %3965  ;;  %v6738_v36 = vld [vmem:[#allocation118_spill] sm:$0xff] }
 0x22b   :  { %v3968_v28 = vpop.eup %3967 }
 0x22c   :  { %v5180_v16 = vadd.f32 %v2093_v48, %v2092_v42  ;;  %v3970_v29 = vpop.eup %3969  ;;  %v2068_v8 = vmul.f32 %v3968_v28, %v3966_v34  ;;  %v6740_v42 = vld [vmem:[#allocation120_spill] sm:$0xff]  ;;  %v6741_v48 = vld [vmem:[#allocation121_spill] sm:$0xff]  ;;  %v6742_v34 = vld [vmem:[#allocation122_spill] sm:$0xff] }
 0x22d   :  { %v6743_v28 = vld [vmem:[#allocation123_spill] sm:$0xff] }
 0x22e   :  { %3971 = vtanh.f32 %v5180_v16  ;;  %v5183_v37 = vpack.c.bf16 %v2068_v8, %v2068_v8  ;;  %v6746_v8 = vld [vmem:[#allocation126_spill] sm:$0xff] }
 0x23b   :  { %v3972_v40 = vpop.eup %3971 }
 0x23c   :  { %v2096_v14 = vmul.f32 %v3972_v40, %v3970_v29  ;;  %v6744_v29 = vld [vmem:[#allocation124_spill] sm:$0xff]  ;;  %v6745_v40 = vld [vmem:[#allocation125_spill] sm:$0xff] }
 0x23e   :  { %v2098_v44 = vpack.c.bf16 %v2096_v14, %v2096_v14  ;;  %v6747_v14 = vld [vmem:[#allocation127_spill] sm:$0xff] }
 0x240   :  { %2131 = vmatprep.mubr.bf16.mxu0 %v2098_v44  ;;  %2172 = vmatprep.mubr.bf16.mxu1 %v2098_v44 }
 0x241   :  { %2132 = vmatmul.mubr.bf16.vlgmr.msra.gmra.mxu0 %v5183_v37  ;;  %2173 = vmatmul.mubr.bf16.vlgmr.msra.gmra.mxu1 %v5183_v37 }
 0x242   :  { %2182 = vmatpush1.bf16.msra.mxu0 %v4604_v58  ;;  %2223 = vmatpush1.bf16.msra.mxu1 %v4612_v49 }
 0x243   :  { %2213 = vmatprep.mubr.bf16.mxu0 %v2098_v44  ;;  %2254 = vmatprep.mubr.bf16.mxu1 %v2098_v44  ;;  %v6748_v44 = vld [vmem:[#allocation128_spill] sm:$0xff] }
 0x244   :  { %2183 = vmatprep.subr.bf16.mxu0 %v4882_v3  ;;  %2224 = vmatprep.subr.bf16.mxu1 %v4884_v12 }
 0x246   :  { %2184 = vmatpush1.bf16.msra.mxu0 %v4890_v22  ;;  %2225 = vmatpush1.bf16.msra.mxu1 %v4892_v38 }
 0x247   :  { %2185 = vmatprep.subr.bf16.mxu0 %v4896_v47  ;;  %2226 = vmatprep.subr.bf16.mxu1 %v4898_v52 }
 0x24a   :  { %2186 = vmatpush1.bf16.msra.mxu0 %v4904_v51  ;;  %2227 = vmatpush1.bf16.msra.mxu1 %v4906_v15 }
 0x24b   :  { %2187 = vmatprep.subr.bf16.mxu0 %v4910_v30  ;;  %2228 = vmatprep.subr.bf16.mxu1 %v4912_v19 }
 0x24e   :  { %2188 = vmatpush1.bf16.msra.mxu0 %v4916_v9  ;;  %2229 = vmatpush1.bf16.msra.mxu1 %v4918_v43 }
 0x24f   :  { %2189 = vmatprep.subr.bf16.mxu0 %v4922_v53  ;;  %2230 = vmatprep.subr.bf16.mxu1 %v4924_v59 }
 0x252   :  { %2190 = vmatpush1.bf16.msra.mxu0 %v4928_v56  ;;  %2231 = vmatpush1.bf16.msra.mxu1 %v6726_v60 }
 0x253   :  { %2191 = vmatprep.subr.bf16.mxu0 %v6727_v13  ;;  %2232 = vmatprep.subr.bf16.mxu1 %v6728_v10 }
 0x256   :  { %2192 = vmatpush1.bf16.msra.mxu0 %v6729_v63  ;;  %2233 = vmatpush1.bf16.msra.mxu1 %v6730_v55 }
 0x257   :  { %2193 = vmatprep.subr.bf16.mxu0 %v6731_v2  ;;  %2234 = vmatprep.subr.bf16.mxu1 %v6732_v57 }
 0x25a   :  { %2194 = vmatpush1.bf16.msra.mxu0 %v6733_v25  ;;  %2235 = vmatpush1.bf16.msra.mxu1 %v6734_v46 }
 0x25b   :  { %2195 = vmatprep.subr.bf16.mxu0 %v6735_v17  ;;  %2236 = vmatprep.subr.bf16.mxu1 %v6736_v50 }
 0x25e   :  { %2196 = vmatpush1.bf16.msra.mxu0 %v6737_v27  ;;  %2237 = vmatpush1.bf16.msra.mxu1 %v6738_v36  ;;  %v6749_v36 = vld [vmem:[#allocation129_spill] sm:$0xff]  ;;  %v6837_v27 = vld [vmem:[#allocation104_spill] sm:$0xff] }
 0x25f   :  { %2197 = vmatprep.subr.bf16.mxu0 %v6739_v4  ;;  %2238 = vmatprep.subr.bf16.mxu1 %v6740_v42  ;;  %v6750_v4 = vld [vmem:[#allocation130_spill] sm:$0xff]  ;;  %v6751_v42 = vld [vmem:[#allocation131_spill] sm:$0xff] }
 0x262   :  { %2198 = vmatpush2.bf16.msra.mxu0 %v6741_v48  ;;  %2239 = vmatpush2.bf16.msra.mxu1 %v6742_v34  ;;  %v6752_v48 = vld [vmem:[#allocation132_spill] sm:$0xff]  ;;  %v6753_v34 = vld [vmem:[#allocation133_spill] sm:$0xff] }
 0x263   :  { %2199 = vmatprep.subr.bf16.mxu0 %v6743_v28  ;;  %2240 = vmatprep.subr.bf16.mxu1 %v6744_v29  ;;  %v6754_v28 = vld [vmem:[#allocation134_spill] sm:$0xff]  ;;  %v6755_v29 = vld [vmem:[#allocation135_spill] sm:$0xff] }
 0x266   :  { %2200 = vmatpush2.bf16.msra.mxu0 %v6745_v40  ;;  %2241 = vmatpush2.bf16.msra.mxu1 %v6746_v8  ;;  %v6756_v40 = vld [vmem:[#allocation136_spill] sm:$0xff]  ;;  %v6836_v8 = vld [vmem:[#allocation103_spill] sm:$0xff] }
 0x267   :  { %2201 = vmatprep.subr.bf16.mxu0 %v6747_v14  ;;  %2242 = vmatprep.subr.bf16.mxu1 %v6748_v44  ;;  %v6835_v14 = vld [vmem:[#allocation102_spill] sm:$0xff] }
 0x26a   :  { %2202 = vmatpush2.bf16.msra.mxu0 %v6749_v36  ;;  %2243 = vmatpush2.bf16.msra.mxu1 %v6750_v4  ;;  %v6757_v36 = vld [vmem:[#allocation140_spill] sm:$0xff]  ;;  %v6758_v4 = vld [vmem:[#allocation141_spill] sm:$0xff] }
 0x26b   :  { %2203 = vmatprep.subr.bf16.mxu0 %v6751_v42  ;;  %2244 = vmatprep.subr.bf16.mxu1 %v6752_v48 }
 0x26e   :  { %2204 = vmatpush2.bf16.msra.mxu0 %v6753_v34  ;;  %2245 = vmatpush2.bf16.msra.mxu1 %v6754_v28 }
 0x26f   :  { %2205 = vmatprep.subr.bf16.mxu0 %v6755_v29  ;;  %2246 = vmatprep.subr.bf16.mxu1 %v6756_v40 }
 0x272   :  { %2206 = vmatpush2.bf16.msra.mxu0 %v5024_v33  ;;  %2247 = vmatpush2.bf16.msra.mxu1 %v5026_v61 }
 0x273   :  { %2207 = vmatprep.subr.bf16.mxu0 %v5030_v45  ;;  %2248 = vmatprep.subr.bf16.mxu1 %v6757_v36  ;;  %v6759_v45 = vld [vmem:[#allocation150_spill] sm:$0xff]  ;;  %v6760_v36 = vld [vmem:[#allocation16_spill] sm:$0xff] }
 0x276   :  { %2208 = vmatpush2.bf16.msra.mxu0 %v6758_v4  ;;  %2249 = vmatpush2.bf16.msra.mxu1 %v5038_v26  ;;  %v6761_v4 = vld [vmem:[#allocation17_spill] sm:$0xff] }
 0x277   :  { %2209 = vmatprep.subr.bf16.mxu0 %v5042_v20  ;;  %2250 = vmatprep.subr.bf16.mxu1 %v5044_v1  ;;  %v6762_v1 = vld [vmem:[#allocation18_spill] sm:$0xff]  ;;  %v6771_v20 = vld [vmem:[#allocation27_spill] sm:$0xff] }
 0x27a   :  { %2210 = vmatpush2.bf16.msra.mxu0 %v5048_v32  ;;  %2251 = vmatpush2.bf16.msra.mxu1 %v5050_v23  ;;  %v6763_v32 = vld [vmem:[#allocation19_spill] sm:$0xff]  ;;  %v6764_v23 = vld [vmem:[#allocation20_spill] sm:$0xff] }
 0x27b   :  { %2211 = vmatprep.subr.bf16.mxu0 %v5054_v35  ;;  %2252 = vmatprep.subr.bf16.mxu1 %v5056_v5  ;;  %v6765_v35 = vld [vmem:[#allocation21_spill] sm:$0xff]  ;;  %v6766_v5 = vld [vmem:[#allocation22_spill] sm:$0xff] }
 0x27e   :  { %2212 = vmatpush2.bf16.msra.mxu0 %v5060_v62  ;;  %2253 = vmatpush2.bf16.msra.mxu1 %v6759_v45  ;;  %v6767_v62 = vld [vmem:[#allocation23_spill] sm:$0xff]  ;;  %v6768_v45 = vld [vmem:[#allocation24_spill] sm:$0xff] }
 0x27f   :  { %2345 = vmatprep.subr.bf16.mxu0 %v6760_v36  ;;  %2386 = vmatprep.subr.bf16.mxu1 %v6761_v4  ;;  %v6769_v36 = vld [vmem:[#allocation25_spill] sm:$0xff]  ;;  %v6770_v4 = vld [vmem:[#allocation26_spill] sm:$0xff] }
 0x281   :  { %2214 = vmatmul.mubr.bf16.vlgmr.msra.gmra.mxu0 %v5183_v37  ;;  %2255 = vmatmul.mubr.bf16.vlgmr.msra.gmra.mxu1 %v5183_v37  ;;  %v6772_v37 = vld [vmem:[#allocation28_spill] sm:$0xff] }
 0x282   :  { %2346 = vmatpush1.bf16.msra.mxu0 %v6762_v1  ;;  %2387 = vmatpush1.bf16.msra.mxu1 %v6763_v32  ;;  %v6773_v1 = vld [vmem:[#allocation29_spill] sm:$0xff]  ;;  %v6774_v32 = vld [vmem:[#allocation30_spill] sm:$0xff] }
 0x283   :  { %2347 = vmatprep.subr.bf16.mxu0 %v6764_v23  ;;  %2388 = vmatprep.subr.bf16.mxu1 %v6765_v35  ;;  %v6775_v23 = vld [vmem:[#allocation31_spill] sm:$0xff]  ;;  %v6776_v35 = vld [vmem:[#allocation32_spill] sm:$0xff] }
 0x286   :  { %2348 = vmatpush1.bf16.msra.mxu0 %v6766_v5  ;;  %2389 = vmatpush1.bf16.msra.mxu1 %v6767_v62  ;;  %v6777_v5 = vld [vmem:[#allocation33_spill] sm:$0xff]  ;;  %v6778_v62 = vld [vmem:[#allocation34_spill] sm:$0xff] }
 0x287   :  { %2349 = vmatprep.subr.bf16.mxu0 %v6768_v45  ;;  %2390 = vmatprep.subr.bf16.mxu1 %v6769_v36  ;;  %v6779_v45 = vld [vmem:[#allocation35_spill] sm:$0xff]  ;;  %v6780_v36 = vld [vmem:[#allocation36_spill] sm:$0xff] }
 0x28a   :  { %2350 = vmatpush1.bf16.msra.mxu0 %v6770_v4  ;;  %2391 = vmatpush1.bf16.msra.mxu1 %v6771_v20  ;;  %v6781_v4 = vld [vmem:[#allocation37_spill] sm:$0xff]  ;;  %v6782_v20 = vld [vmem:[#allocation38_spill] sm:$0xff] }
 0x28b   :  { %2351 = vmatprep.subr.bf16.mxu0 %v6772_v37  ;;  %2392 = vmatprep.subr.bf16.mxu1 %v6773_v1  ;;  %v6783_v37 = vld [vmem:[#allocation39_spill] sm:$0xff]  ;;  %v6784_v1 = vld [vmem:[#allocation40_spill] sm:$0xff] }
 0x28e   :  { %2352 = vmatpush1.bf16.msra.mxu0 %v6774_v32  ;;  %2393 = vmatpush1.bf16.msra.mxu1 %v6775_v23  ;;  %v6785_v32 = vld [vmem:[#allocation41_spill] sm:$0xff]  ;;  %v6786_v23 = vld [vmem:[#allocation42_spill] sm:$0xff] }
 0x28f   :  { %2353 = vmatprep.subr.bf16.mxu0 %v6776_v35  ;;  %2394 = vmatprep.subr.bf16.mxu1 %v6777_v5  ;;  %v6787_v35 = vld [vmem:[#allocation43_spill] sm:$0xff]  ;;  %v6788_v5 = vld [vmem:[#allocation44_spill] sm:$0xff] }
 0x292   :  { %2354 = vmatpush1.bf16.msra.mxu0 %v6778_v62  ;;  %2395 = vmatpush1.bf16.msra.mxu1 %v6779_v45  ;;  %v6789_v62 = vld [vmem:[#allocation45_spill] sm:$0xff]  ;;  %v6790_v45 = vld [vmem:[#allocation46_spill] sm:$0xff] }
 0x293   :  { %2355 = vmatprep.subr.bf16.mxu0 %v6780_v36  ;;  %2396 = vmatprep.subr.bf16.mxu1 %v6781_v4  ;;  %v6791_v36 = vld [vmem:[#allocation47_spill] sm:$0xff]  ;;  %v6792_v4 = vld [vmem:[#allocation48_spill] sm:$0xff] }
 0x296   :  { %2356 = vmatpush1.bf16.msra.mxu0 %v6782_v20  ;;  %2397 = vmatpush1.bf16.msra.mxu1 %v6783_v37  ;;  %v6793_v20 = vld [vmem:[#allocation49_spill] sm:$0xff]  ;;  %v6794_v37 = vld [vmem:[#allocation50_spill] sm:$0xff] }
 0x297   :  { %2357 = vmatprep.subr.bf16.mxu0 %v6784_v1  ;;  %2398 = vmatprep.subr.bf16.mxu1 %v6785_v32  ;;  %v6795_v1 = vld [vmem:[#allocation51_spill] sm:$0xff]  ;;  %v6796_v32 = vld [vmem:[#allocation52_spill] sm:$0xff] }
 0x29a   :  { %2358 = vmatpush1.bf16.msra.mxu0 %v6786_v23  ;;  %2399 = vmatpush1.bf16.msra.mxu1 %v6787_v35  ;;  %v6797_v23 = vld [vmem:[#allocation53_spill] sm:$0xff]  ;;  %v6798_v35 = vld [vmem:[#allocation54_spill] sm:$0xff] }
 0x29b   :  { %2359 = vmatprep.subr.bf16.mxu0 %v6788_v5  ;;  %2400 = vmatprep.subr.bf16.mxu1 %v6789_v62  ;;  %v6799_v5 = vld [vmem:[#allocation55_spill] sm:$0xff]  ;;  %v6800_v62 = vld [vmem:[#allocation56_spill] sm:$0xff] }
 0x29e   :  { %2360 = vmatpush1.bf16.msra.mxu0 %v6790_v45  ;;  %2401 = vmatpush1.bf16.msra.mxu1 %v6791_v36  ;;  %v6801_v45 = vld [vmem:[#allocation57_spill] sm:$0xff]  ;;  %v6802_v36 = vld [vmem:[#allocation58_spill] sm:$0xff] }
 0x29f   :  { %2361 = vmatprep.subr.bf16.mxu0 %v6792_v4  ;;  %2402 = vmatprep.subr.bf16.mxu1 %v6793_v20  ;;  %v6803_v4 = vld [vmem:[#allocation59_spill] sm:$0xff]  ;;  %v6804_v20 = vld [vmem:[#allocation60_spill] sm:$0xff] }
 0x2a2   :  { %2362 = vmatpush2.bf16.msra.mxu0 %v6794_v37  ;;  %2403 = vmatpush2.bf16.msra.mxu1 %v6795_v1  ;;  %v6805_v37 = vld [vmem:[#allocation61_spill] sm:$0xff]  ;;  %v6806_v1 = vld [vmem:[#allocation62_spill] sm:$0xff] }
 0x2a3   :  { %2363 = vmatprep.subr.bf16.mxu0 %v6796_v32  ;;  %2404 = vmatprep.subr.bf16.mxu1 %v6797_v23  ;;  %v6807_v32 = vld [vmem:[#allocation63_spill] sm:$0xff]  ;;  %v6808_v23 = vld [vmem:[#allocation64_spill] sm:$0xff] }
 0x2a6   :  { %2364 = vmatpush2.bf16.msra.mxu0 %v6798_v35  ;;  %2405 = vmatpush2.bf16.msra.mxu1 %v6799_v5  ;;  %v6809_v35 = vld [vmem:[#allocation65_spill] sm:$0xff]  ;;  %v6810_v5 = vld [vmem:[#allocation66_spill] sm:$0xff] }
 0x2a7   :  { %2365 = vmatprep.subr.bf16.mxu0 %v6800_v62  ;;  %2406 = vmatprep.subr.bf16.mxu1 %v6801_v45  ;;  %v6811_v62 = vld [vmem:[#allocation67_spill] sm:$0xff]  ;;  %v6812_v45 = vld [vmem:[#allocation68_spill] sm:$0xff] }
 0x2aa   :  { %2366 = vmatpush2.bf16.msra.mxu0 %v6802_v36  ;;  %2407 = vmatpush2.bf16.msra.mxu1 %v6803_v4  ;;  %v6813_v36 = vld [vmem:[#allocation69_spill] sm:$0xff]  ;;  %v6814_v4 = vld [vmem:[#allocation70_spill] sm:$0xff] }
 0x2ab   :  { %2367 = vmatprep.subr.bf16.mxu0 %v6804_v20  ;;  %2408 = vmatprep.subr.bf16.mxu1 %v6805_v37  ;;  %v6815_v20 = vld [vmem:[#allocation71_spill] sm:$0xff]  ;;  %v6816_v37 = vld [vmem:[#allocation72_spill] sm:$0xff] }
 0x2ae   :  { %2368 = vmatpush2.bf16.msra.mxu0 %v6806_v1  ;;  %2409 = vmatpush2.bf16.msra.mxu1 %v6807_v32  ;;  %v6817_v1 = vld [vmem:[#allocation73_spill] sm:$0xff]  ;;  %v6818_v32 = vld [vmem:[#allocation74_spill] sm:$0xff] }
 0x2af   :  { %2369 = vmatprep.subr.bf16.mxu0 %v6808_v23  ;;  %2410 = vmatprep.subr.bf16.mxu1 %v6809_v35  ;;  %v6819_v23 = vld [vmem:[#allocation75_spill] sm:$0xff]  ;;  %v6820_v35 = vld [vmem:[#allocation76_spill] sm:$0xff] }
 0x2b2   :  { %2370 = vmatpush2.bf16.msra.mxu0 %v6810_v5  ;;  %2411 = vmatpush2.bf16.msra.mxu1 %v6811_v62  ;;  %v6821_v5 = vld [vmem:[#allocation77_spill] sm:$0xff]  ;;  %v6822_v62 = vld [vmem:[#allocation78_spill] sm:$0xff] }
 0x2b3   :  { %2371 = vmatprep.subr.bf16.mxu0 %v6812_v45  ;;  %2412 = vmatprep.subr.bf16.mxu1 %v6813_v36  ;;  %v6823_v45 = vld [vmem:[#allocation79_spill] sm:$0xff]  ;;  %v6824_v36 = vld [vmem:[#allocation80_spill] sm:$0xff] }
 0x2b6   :  { %2372 = vmatpush2.bf16.msra.mxu0 %v6814_v4  ;;  %2413 = vmatpush2.bf16.msra.mxu1 %v6815_v20  ;;  %v6825_v4 = vld [vmem:[#allocation81_spill] sm:$0xff]  ;;  %v469_v20 = vpop.permute.xlu1 %468 }
 0x2b7   :  { %2373 = vmatprep.subr.bf16.mxu0 %v6816_v37  ;;  %2414 = vmatprep.subr.bf16.mxu1 %v6817_v1  ;;  %v6826_v37 = vld [vmem:[#allocation95_spill] sm:$0xff] }
 0x2b8   :  { %v542_v26 = vmul.f32 %v6826_v37, %v469_v20  ;;  %v6827_v1 = vld [vmem:[#allocation87_spill] sm:$0xff] }
 0x2b9   :  { %v543_v61 = vmul.f32 %v6827_v1, %v469_v20 }
 0x2ba   :  { %2374 = vmatpush2.bf16.msra.mxu0 %v6818_v32  ;;  %2415 = vmatpush2.bf16.msra.mxu1 %v6819_v23  ;;  %v6828_v32 = vld [vmem:[#allocation96_spill] sm:$0xff]  ;;  %v740_v29 = vpop.permute.xlu1 %739 }
 0x2bb   :  { %2375 = vmatprep.subr.bf16.mxu0 %v6820_v35  ;;  %2416 = vmatprep.subr.bf16.mxu1 %v6821_v5  ;;  %v544_v33 = vmul.f32 %v6828_v32, %v469_v20  ;;  %v6829_v23 = vld [vmem:[#allocation88_spill] sm:$0xff]  ;;  %v608_v35 = vpop.permute.xlu0 %607  ;;  %v6830_v5 = vld [vmem:[#allocation94_spill] sm:$0xff]  ;;  %v575_v37 = vadd.f32 %v543_v61, %v6835_v14 }
 0x2bc   :  { %v545_v40 = vmul.f32 %v6829_v23, %v469_v20  ;;  %v674_v28 = vmul.f32 %v6830_v5, %v608_v35  ;;  %v6838_v5 = vld [vmem:[#allocation98_spill] sm:$0xff] }
 0x2bd   :  { %v576_v1 = vadd.f32 %v544_v33, %v6836_v8  ;;  %v806_v25 = vmul.f32 %v6838_v5, %v740_v29 }
 0x2be   :  { %2376 = vmatpush2.bf16.msra.mxu0 %v6822_v62  ;;  %2417 = vmatpush2.bf16.msra.mxu1 %v6823_v45  ;;  %v6831_v62 = vld [vmem:[#allocation91_spill] sm:$0xff]  ;;  %v6832_v45 = vld [vmem:[#allocation93_spill] sm:$0xff]  ;;  %v577_v32 = vadd.f32 %v545_v40, %v6837_v27  ;;  %v872_v46 = vpop.permute.xlu1 %871 }
 0x2bf   :  { %2427 = vmatprep.subr.bf16.mxu0 %v6824_v36  ;;  %2468 = vmatprep.subr.bf16.mxu1 %v6825_v4  ;;  %v675_v34 = vmul.f32 %v6831_v62, %v608_v35  ;;  %v676_v48 = vmul.f32 %v6832_v45, %v608_v35  ;;  %v6833_v36 = vld [vmem:[#allocation92_spill] sm:$0xff]  ;;  %v6834_v4 = vld [vmem:[#allocation101_spill] sm:$0xff]  ;;  %v939_v61 = vmul.f32 %v4772_v39, %v872_v46 }
 0x2c0   :  { %v677_v42 = vmul.f32 %v6833_v36, %v608_v35  ;;  %v574_v44 = vadd.f32 %v542_v26, %v6834_v4  ;;  %v6839_v62 = vld [vmem:[#allocation85_spill] sm:$0xff]  ;;  %v809_v35 = vmul.f32 %v4739_v6, %v740_v29  ;;  %v938_v26 = vmul.f32 %v4828_v31, %v872_v46 }
 0x2c1   :  { %v707_v20 = vadd.f32 %v675_v34, %v575_v37  ;;  %v708_v23 = vadd.f32 %v676_v48, %v576_v1  ;;  %v807_v57 = vmul.f32 %v6839_v62, %v740_v29  ;;  %v6840_v45 = vld [vmem:[#allocation97_spill] sm:$0xff]  ;;  %v940_v33 = vmul.f32 %v4834_v11, %v872_v46 }
 0x2c2   :  { %v706_v50 = vadd.f32 %v674_v28, %v574_v44  ;;  %v709_v17 = vadd.f32 %v677_v42, %v577_v32  ;;  %v808_v2 = vmul.f32 %v6840_v45, %v740_v29  ;;  %v941_v28 = vmul.f32 %v4775_v54, %v872_v46 }
 0x2c3   :  { %v839_v1 = vadd.f32 %v807_v57, %v707_v20 }
 0x2c4   :  { %v838_v34 = vadd.f32 %v806_v25, %v706_v50  ;;  %v840_v32 = vadd.f32 %v808_v2, %v708_v23  ;;  %v841_v42 = vadd.f32 %v809_v35, %v709_v17 }
 0x2c5   :  { %v971_v40 = vadd.f32 %v939_v61, %v839_v1 }
 0x2c6   :  { %v970_v48 = vadd.f32 %v938_v26, %v838_v34  ;;  %v972_v44 = vadd.f32 %v940_v33, %v840_v32  ;;  %v973_v37 = vadd.f32 %v941_v28, %v841_v42 }
 0x2c8   :  { %v1061_v62 = vcombine.low %v970_v48, %v971_v40  ;;  %v1062_v45 = vcombine.low %v972_v44, %v973_v37 }
 0x2ca   :  { %v1069_v29 = vrot.slane %v1061_v62, %v4873_v24  ;;  %v1076_v31 = vrot.slane %v1062_v45, %v4873_v24 }
 0x2cc   :  { %v1077_v6 = vcombine.low %v1069_v29, %v1076_v31  ;;  %v3878_v26 = vcombine.low %v1076_v31, %v1076_v31 }
 0x2ce   :  { %v2273_v39 = vrot.slane %v1077_v6, %v4873_v24  ;;  %v2280_v45 = vrot.slane %v3878_v26, %v4873_v24 }
 0x2d0   :  { %v2281_v25 = vcombine.high %v2273_v39, %v2273_v39  ;;  %v2282_v33 = vcombine.high %v2280_v45, %v2280_v45 }
 0x301   :  { %v2133_v11 = vpop.f32.mrf.mxu0  ;;  %v2174_v5 = vpop.f32.mrf.mxu1 }
 0x302   :  { %v2287_v46 = vadd.f32 %v2273_v39, %v2133_v11  ;;  %v2289_v26 = vadd.f32 %v2280_v45, %v2174_v5 }
 0x303   :  { %v2135_v57 = vpop.f32.mrf.mxu0  ;;  %v2176_v23 = vpop.f32.mrf.mxu1 }
 0x304   :  { %v3838_v2 = vmul.f32 -1.442695, %v2287_v46  ;;  %v2288_v17 = vadd.f32 %v2281_v25, %v2135_v57  ;;  %v2290_v6 = vadd.f32 %v2282_v33, %v2176_v23 }
 0x305   :  { %v2137_v50 = vpop.f32.mrf.mxu0  ;;  %v2178_v20 = vpop.f32.mrf.mxu1 }
 0x306   :  { %3973 = vpow2.f32 %v3838_v2  ;;  %v3839_v35 = vmul.f32 -1.442695, %v2288_v17 }
 0x307   :  { %v2138_v61 = vpop.f32.mrf.mxu0  ;;  %v2179_v62 = vpop.f32.mrf.mxu1 }
 0x308   :  { %3975 = vpow2.f32 %v3839_v35  ;;  %v3840_v61 = vmul.f32 -1.442695, %v2289_v26  ;;  %v6844_v26 = vld [vmem:[#allocation114_spill] sm:$0xff] }
 0x309   :  { %3977 = vtanh.f32 %v2290_v6 }
 0x313   :  { %v3974_v28 = vpop.eup %3973 }
 0x314   :  { %v2300_v34 = vadd.f32 1.0, %v3974_v28 }
 0x315   :  { %v3976_v11 = vpop.eup %3975 }
 0x316   :  { %3979 = vrcp.f32 %v2300_v34  ;;  %v2301_v39 = vadd.f32 1.0, %v3976_v11  ;;  %v3978_v1 = vpop.eup %3977 }
 0x318   :  { %3981 = vrcp.f32 %v2301_v39 }
 0x323   :  { %v3980_v32 = vpop.eup %3979 }
 0x324   :  { %v2311_v42 = vmul.f32 %v3980_v32, %v3978_v1 }
 0x325   :  { %v3982_v48 = vpop.eup %3981 }
 0x326   :  { %v2310_v31 = vmul.f32 %v3982_v48, %v5161_v0 }
 0x328   :  { %v5342_v40 = vadd.f32 %v2311_v42, %v2310_v31 }
 0x341   :  { %v2215_v44 = vpop.f32.mrf.mxu0  ;;  %v2256_v37 = vpop.f32.mrf.mxu1 }
 0x342   :  { %v2315_v29 = vadd.f32 %v2215_v44, %v5164_v7  ;;  %v2317_v0 = vadd.f32 %v2256_v37, %v5172_v18 }
 0x343   :  { %v2217_v46 = vpop.f32.mrf.mxu0  ;;  %v2258_v25 = vpop.f32.mrf.mxu1 }
 0x344   :  { %v3841_v57 = vmul.f32 -1.442695, %v2315_v29  ;;  %v2316_v23 = vadd.f32 %v2217_v46, %v5167_v41  ;;  %v3843_v62 = vmul.f32 -1.442695, %v2317_v0  ;;  %v2318_v6 = vadd.f32 %v2258_v25, %v5176_v21  ;;  %v6845_v0 = vld [vmem:[#allocation115_spill] sm:$0xff] }
 0x345   :  { %v2219_v2 = vpop.f32.mrf.mxu0  ;;  %v2260_v17 = vpop.f32.mrf.mxu1 }
 0x346   :  { %3983 = vpow2.f32 %v3841_v57  ;;  %v3842_v50 = vmul.f32 -1.442695, %v2316_v23 }
 0x347   :  { %v2220_v20 = vpop.f32.mrf.mxu0  ;;  %v2261_v35 = vpop.f32.mrf.mxu1 }
 0x348   :  { %3985 = vpow2.f32 %v3842_v50  ;;  %v6842_v20 = vld [vmem:[#allocation112_spill] sm:$0xff]  ;;  %v6843_v35 = vld [vmem:[#allocation113_spill] sm:$0xff] }
 0x349   :  { %3987 = vpow2.f32 %v3840_v61  ;;  %v6846_v61 = vld [vmem:[#allocation116_spill] sm:$0xff] }
 0x34a   :  { %3989 = vpow2.f32 %v3843_v62  ;;  %v6847_v62 = vld [vmem:[#allocation117_spill] sm:$0xff] }
 0x353   :  { %v3984_v33 = vpop.eup %3983 }
 0x354   :  { %v2328_v28 = vadd.f32 1.0, %v3984_v33  ;;  %v6848_v33 = vld [vmem:[#allocation118_spill] sm:$0xff] }
 0x355   :  { %v3986_v34 = vpop.eup %3985 }
 0x356   :  { %3991 = vrcp.f32 %v2328_v28  ;;  %v2329_v11 = vadd.f32 1.0, %v3986_v34  ;;  %v3988_v39 = vpop.eup %3987  ;;  %v6850_v28 = vld [vmem:[#allocation120_spill] sm:$0xff]  ;;  %v6851_v34 = vld [vmem:[#allocation121_spill] sm:$0xff] }
 0x357   :  { %3993 = vtanh.f32 %v2318_v6  ;;  %v3990_v1 = vpop.eup %3989  ;;  %v2302_v5 = vadd.f32 1.0, %v3988_v39  ;;  %v6849_v6 = vld [vmem:[#allocation119_spill] sm:$0xff] }
 0x358   :  { %3995 = vrcp.f32 %v2329_v11  ;;  %v2330_v48 = vadd.f32 1.0, %v3990_v1  ;;  %v6852_v11 = vld [vmem:[#allocation122_spill] sm:$0xff]  ;;  %v6853_v39 = vld [vmem:[#allocation123_spill] sm:$0xff]  ;;  %v6854_v1 = vld [vmem:[#allocation124_spill] sm:$0xff] }
 0x359   :  { %3997 = vtanh.f32 %v5342_v40 }
 0x35a   :  { %3999 = vrcp.f32 %v2302_v5  ;;  %v6857_v5 = vld [vmem:[#allocation127_spill] sm:$0xff] }
 0x35b   :  { %4001 = vrcp.f32 %v2330_v48  ;;  %v6859_v48 = vld [vmem:[#allocation129_spill] sm:$0xff] }
 0x363   :  { %v3992_v32 = vpop.eup %3991 }
 0x364   :  { %v3994_v42 = vpop.eup %3993 }
 0x365   :  { %v3996_v45 = vpop.eup %3995  ;;  %v2339_v44 = vmul.f32 %v3994_v42, %v3992_v32  ;;  %v6855_v32 = vld [vmem:[#allocation125_spill] sm:$0xff]  ;;  %v6856_v42 = vld [vmem:[#allocation126_spill] sm:$0xff] }
 0x366   :  { %v2338_v31 = vmul.f32 %v3996_v45, %v5180_v16  ;;  %v3998_v29 = vpop.eup %3997  ;;  %v6841_v16 = vld [vmem:[#allocation111_spill] sm:$0xff]  ;;  %v6858_v45 = vld [vmem:[#allocation128_spill] sm:$0xff] }
 0x367   :  { %v4000_v46 = vpop.eup %3999 }
 0x368   :  { %v5350_v37 = vadd.f32 %v2339_v44, %v2338_v31  ;;  %v4002_v25 = vpop.eup %4001  ;;  %v2314_v23 = vmul.f32 %v4000_v46, %v3998_v29  ;;  %v6860_v31 = vld [vmem:[#allocation130_spill] sm:$0xff]  ;;  %v6861_v44 = vld [vmem:[#allocation131_spill] sm:$0xff]  ;;  %v6862_v29 = vld [vmem:[#allocation132_spill] sm:$0xff] }
 0x369   :  { %v6863_v46 = vld [vmem:[#allocation133_spill] sm:$0xff] }
 0x36a   :  { %4003 = vtanh.f32 %v5350_v37  ;;  %v5353_v50 = vpack.c.bf16 %v2314_v23, %v2314_v23  ;;  %v6866_v23 = vld [vmem:[#allocation136_spill] sm:$0xff] }
 0x377   :  { %v4004_v57 = vpop.eup %4003 }
 0x378   :  { %v2342_v2 = vmul.f32 %v4004_v57, %v4002_v25  ;;  %v6864_v25 = vld [vmem:[#allocation134_spill] sm:$0xff]  ;;  %v6865_v57 = vld [vmem:[#allocation135_spill] sm:$0xff] }
 0x37a   :  { %v2344_v17 = vpack.c.bf16 %v2342_v2, %v2342_v2  ;;  %v6867_v2 = vld [vmem:[#allocation137_spill] sm:$0xff] }
 0x37c   :  { %2377 = vmatprep.mubr.bf16.mxu0 %v2344_v17  ;;  %2418 = vmatprep.mubr.bf16.mxu1 %v2344_v17 }
 0x37d   :  { %2378 = vmatmul.mubr.bf16.vlgmr.msra.gmra.mxu0 %v5353_v50  ;;  %2419 = vmatmul.mubr.bf16.vlgmr.msra.gmra.mxu1 %v5353_v50 }
 0x37e   :  { %2428 = vmatpush1.bf16.msra.mxu0 %v4604_v58  ;;  %2469 = vmatpush1.bf16.msra.mxu1 %v4612_v49 }
 0x37f   :  { %2459 = vmatprep.mubr.bf16.mxu0 %v2344_v17  ;;  %2500 = vmatprep.mubr.bf16.mxu1 %v2344_v17  ;;  %v6868_v17 = vld [vmem:[#allocation138_spill] sm:$0xff] }
 0x380   :  { %2429 = vmatprep.subr.bf16.mxu0 %v4882_v3  ;;  %2470 = vmatprep.subr.bf16.mxu1 %v4884_v12 }
 0x382   :  { %2430 = vmatpush1.bf16.msra.mxu0 %v4890_v22  ;;  %2471 = vmatpush1.bf16.msra.mxu1 %v4892_v38 }
 0x383   :  { %2431 = vmatprep.subr.bf16.mxu0 %v4896_v47  ;;  %2472 = vmatprep.subr.bf16.mxu1 %v4898_v52 }
 0x386   :  { %2432 = vmatpush1.bf16.msra.mxu0 %v4904_v51  ;;  %2473 = vmatpush1.bf16.msra.mxu1 %v4906_v15 }
 0x387   :  { %2433 = vmatprep.subr.bf16.mxu0 %v4910_v30  ;;  %2474 = vmatprep.subr.bf16.mxu1 %v4912_v19 }
 0x38a   :  { %2434 = vmatpush1.bf16.msra.mxu0 %v4916_v9  ;;  %2475 = vmatpush1.bf16.msra.mxu1 %v4918_v43 }
 0x38b   :  { %2435 = vmatprep.subr.bf16.mxu0 %v4922_v53  ;;  %2476 = vmatprep.subr.bf16.mxu1 %v4924_v59 }
 0x38e   :  { %2436 = vmatpush1.bf16.msra.mxu0 %v4928_v56  ;;  %2477 = vmatpush1.bf16.msra.mxu1 %v6726_v60 }
 0x38f   :  { %2437 = vmatprep.subr.bf16.mxu0 %v6727_v13  ;;  %2478 = vmatprep.subr.bf16.mxu1 %v6728_v10 }
 0x392   :  { %2438 = vmatpush1.bf16.msra.mxu0 %v6729_v63  ;;  %2479 = vmatpush1.bf16.msra.mxu1 %v6730_v55 }
 0x393   :  { %2439 = vmatprep.subr.bf16.mxu0 %v6841_v16  ;;  %2480 = vmatprep.subr.bf16.mxu1 %v6842_v20 }
 0x396   :  { %2440 = vmatpush1.bf16.msra.mxu0 %v6843_v35  ;;  %2481 = vmatpush1.bf16.msra.mxu1 %v6844_v26 }
 0x397   :  { %2441 = vmatprep.subr.bf16.mxu0 %v6845_v0  ;;  %2482 = vmatprep.subr.bf16.mxu1 %v6846_v61 }
 0x39a   :  { %2442 = vmatpush1.bf16.msra.mxu0 %v6847_v62  ;;  %2483 = vmatpush1.bf16.msra.mxu1 %v6848_v33  ;;  %v6956_v33 = vld [vmem:[#allocation97_spill] sm:$0xff]  ;;  %v6957_v62 = vld [vmem:[#allocation86_spill] sm:$0xff] }
 0x39b   :  { %2443 = vmatprep.subr.bf16.mxu0 %v6849_v6  ;;  %2484 = vmatprep.subr.bf16.mxu1 %v6850_v28 }
 0x39e   :  { %2444 = vmatpush2.bf16.msra.mxu0 %v6851_v34  ;;  %2485 = vmatpush2.bf16.msra.mxu1 %v6852_v11 }
 0x39f   :  { %2445 = vmatprep.subr.bf16.mxu0 %v6853_v39  ;;  %2486 = vmatprep.subr.bf16.mxu1 %v6854_v1 }
 0x3a2   :  { %2446 = vmatpush2.bf16.msra.mxu0 %v6855_v32  ;;  %2487 = vmatpush2.bf16.msra.mxu1 %v6856_v42  ;;  %v6949_v42 = vld [vmem:[#allocation96_spill] sm:$0xff] }
 0x3a3   :  { %2447 = vmatprep.subr.bf16.mxu0 %v6857_v5  ;;  %2488 = vmatprep.subr.bf16.mxu1 %v6858_v45  ;;  %v6869_v45 = vld [vmem:[#allocation139_spill] sm:$0xff]  ;;  %v6950_v32 = vld [vmem:[#allocation88_spill] sm:$0xff] }
 0x3a4   :  { %v6948_v5 = vld [vmem:[#allocation87_spill] sm:$0xff] }
 0x3a6   :  { %2448 = vmatpush2.bf16.msra.mxu0 %v6859_v48  ;;  %2489 = vmatpush2.bf16.msra.mxu1 %v6860_v31  ;;  %v6870_v48 = vld [vmem:[#allocation140_spill] sm:$0xff]  ;;  %v6871_v31 = vld [vmem:[#allocation141_spill] sm:$0xff] }
 0x3a7   :  { %2449 = vmatprep.subr.bf16.mxu0 %v6861_v44  ;;  %2490 = vmatprep.subr.bf16.mxu1 %v6862_v29  ;;  %v6872_v44 = vld [vmem:[#allocation142_spill] sm:$0xff]  ;;  %v6873_v29 = vld [vmem:[#allocation143_spill] sm:$0xff] }
 0x3aa   :  { %2450 = vmatpush2.bf16.msra.mxu0 %v6863_v46  ;;  %2491 = vmatpush2.bf16.msra.mxu1 %v6864_v25  ;;  %v6874_v46 = vld [vmem:[#allocation144_spill] sm:$0xff]  ;;  %v6875_v25 = vld [vmem:[#allocation145_spill] sm:$0xff] }
 0x3ab   :  { %2451 = vmatprep.subr.bf16.mxu0 %v6865_v57  ;;  %2492 = vmatprep.subr.bf16.mxu1 %v6866_v23  ;;  %v6876_v57 = vld [vmem:[#allocation146_spill] sm:$0xff]  ;;  %v6877_v23 = vld [vmem:[#allocation147_spill] sm:$0xff] }
 0x3ae   :  { %2452 = vmatpush2.bf16.msra.mxu0 %v6867_v2  ;;  %2493 = vmatpush2.bf16.msra.mxu1 %v6868_v17  ;;  %v6878_v2 = vld [vmem:[#allocation148_spill] sm:$0xff]  ;;  %v6879_v17 = vld [vmem:[#allocation149_spill] sm:$0xff] }
 0x3af   :  { %2453 = vmatprep.subr.bf16.mxu0 %v6869_v45  ;;  %2494 = vmatprep.subr.bf16.mxu1 %v6870_v48  ;;  %v6880_v45 = vld [vmem:[#allocation150_spill] sm:$0xff]  ;;  %v6881_v48 = vld [vmem:[#allocation16_spill] sm:$0xff] }
 0x3b2   :  { %2454 = vmatpush2.bf16.msra.mxu0 %v6871_v31  ;;  %2495 = vmatpush2.bf16.msra.mxu1 %v6872_v44  ;;  %v6882_v31 = vld [vmem:[#allocation17_spill] sm:$0xff]  ;;  %v6947_v44 = vld [vmem:[#allocation95_spill] sm:$0xff] }
 0x3b3   :  { %2455 = vmatprep.subr.bf16.mxu0 %v6873_v29  ;;  %2496 = vmatprep.subr.bf16.mxu1 %v6874_v46  ;;  %v6883_v46 = vld [vmem:[#allocation18_spill] sm:$0xff]  ;;  %v6892_v29 = vld [vmem:[#allocation27_spill] sm:$0xff] }
 0x3b6   :  { %2456 = vmatpush2.bf16.msra.mxu0 %v6875_v25  ;;  %2497 = vmatpush2.bf16.msra.mxu1 %v6876_v57  ;;  %v6884_v25 = vld [vmem:[#allocation19_spill] sm:$0xff]  ;;  %v6885_v57 = vld [vmem:[#allocation20_spill] sm:$0xff] }
 0x3b7   :  { %2457 = vmatprep.subr.bf16.mxu0 %v6877_v23  ;;  %2498 = vmatprep.subr.bf16.mxu1 %v6878_v2  ;;  %v6886_v23 = vld [vmem:[#allocation21_spill] sm:$0xff]  ;;  %v6887_v2 = vld [vmem:[#allocation22_spill] sm:$0xff] }
 0x3ba   :  { %2458 = vmatpush2.bf16.msra.mxu0 %v6879_v17  ;;  %2499 = vmatpush2.bf16.msra.mxu1 %v6880_v45  ;;  %v6888_v17 = vld [vmem:[#allocation23_spill] sm:$0xff]  ;;  %v6889_v45 = vld [vmem:[#allocation24_spill] sm:$0xff] }
 0x3bb   :  { %2591 = vmatprep.subr.bf16.mxu0 %v6881_v48  ;;  %2632 = vmatprep.subr.bf16.mxu1 %v6882_v31  ;;  %v6890_v48 = vld [vmem:[#allocation25_spill] sm:$0xff]  ;;  %v6891_v31 = vld [vmem:[#allocation26_spill] sm:$0xff] }
 0x3bd   :  { %2460 = vmatmul.mubr.bf16.vlgmr.msra.gmra.mxu0 %v5353_v50  ;;  %2501 = vmatmul.mubr.bf16.vlgmr.msra.gmra.mxu1 %v5353_v50  ;;  %v6893_v50 = vld [vmem:[#allocation28_spill] sm:$0xff] }
 0x3be   :  { %2592 = vmatpush1.bf16.msra.mxu0 %v6883_v46  ;;  %2633 = vmatpush1.bf16.msra.mxu1 %v6884_v25  ;;  %v6894_v46 = vld [vmem:[#allocation29_spill] sm:$0xff]  ;;  %v6895_v25 = vld [vmem:[#allocation30_spill] sm:$0xff] }
 0x3bf   :  { %2593 = vmatprep.subr.bf16.mxu0 %v6885_v57  ;;  %2634 = vmatprep.subr.bf16.mxu1 %v6886_v23  ;;  %v6896_v57 = vld [vmem:[#allocation31_spill] sm:$0xff]  ;;  %v6897_v23 = vld [vmem:[#allocation32_spill] sm:$0xff] }
 0x3c2   :  { %2594 = vmatpush1.bf16.msra.mxu0 %v6887_v2  ;;  %2635 = vmatpush1.bf16.msra.mxu1 %v6888_v17  ;;  %v6898_v2 = vld [vmem:[#allocation33_spill] sm:$0xff]  ;;  %v6899_v17 = vld [vmem:[#allocation34_spill] sm:$0xff] }
 0x3c3   :  { %2595 = vmatprep.subr.bf16.mxu0 %v6889_v45  ;;  %2636 = vmatprep.subr.bf16.mxu1 %v6890_v48  ;;  %v6900_v45 = vld [vmem:[#allocation35_spill] sm:$0xff]  ;;  %v6901_v48 = vld [vmem:[#allocation36_spill] sm:$0xff] }
 0x3c6   :  { %2596 = vmatpush1.bf16.msra.mxu0 %v6891_v31  ;;  %2637 = vmatpush1.bf16.msra.mxu1 %v6892_v29  ;;  %v6902_v31 = vld [vmem:[#allocation37_spill] sm:$0xff]  ;;  %v6903_v29 = vld [vmem:[#allocation38_spill] sm:$0xff] }
 0x3c7   :  { %2597 = vmatprep.subr.bf16.mxu0 %v6893_v50  ;;  %2638 = vmatprep.subr.bf16.mxu1 %v6894_v46  ;;  %v6904_v50 = vld [vmem:[#allocation39_spill] sm:$0xff]  ;;  %v6905_v46 = vld [vmem:[#allocation40_spill] sm:$0xff] }
 0x3ca   :  { %2598 = vmatpush1.bf16.msra.mxu0 %v6895_v25  ;;  %2639 = vmatpush1.bf16.msra.mxu1 %v6896_v57  ;;  %v6906_v25 = vld [vmem:[#allocation41_spill] sm:$0xff]  ;;  %v6907_v57 = vld [vmem:[#allocation42_spill] sm:$0xff] }
 0x3cb   :  { %2599 = vmatprep.subr.bf16.mxu0 %v6897_v23  ;;  %2640 = vmatprep.subr.bf16.mxu1 %v6898_v2  ;;  %v6908_v23 = vld [vmem:[#allocation43_spill] sm:$0xff]  ;;  %v6909_v2 = vld [vmem:[#allocation44_spill] sm:$0xff] }
 0x3ce   :  { %2600 = vmatpush1.bf16.msra.mxu0 %v6899_v17  ;;  %2641 = vmatpush1.bf16.msra.mxu1 %v6900_v45  ;;  %v6910_v17 = vld [vmem:[#allocation45_spill] sm:$0xff]  ;;  %v6911_v45 = vld [vmem:[#allocation46_spill] sm:$0xff] }
 0x3cf   :  { %2601 = vmatprep.subr.bf16.mxu0 %v6901_v48  ;;  %2642 = vmatprep.subr.bf16.mxu1 %v6902_v31  ;;  %v6912_v48 = vld [vmem:[#allocation47_spill] sm:$0xff]  ;;  %v6913_v31 = vld [vmem:[#allocation48_spill] sm:$0xff] }
 0x3d2   :  { %2602 = vmatpush1.bf16.msra.mxu0 %v6903_v29  ;;  %2643 = vmatpush1.bf16.msra.mxu1 %v6904_v50  ;;  %v6914_v29 = vld [vmem:[#allocation49_spill] sm:$0xff]  ;;  %v6915_v50 = vld [vmem:[#allocation50_spill] sm:$0xff] }
 0x3d3   :  { %2603 = vmatprep.subr.bf16.mxu0 %v6905_v46  ;;  %2644 = vmatprep.subr.bf16.mxu1 %v6906_v25  ;;  %v6916_v46 = vld [vmem:[#allocation51_spill] sm:$0xff]  ;;  %v6917_v25 = vld [vmem:[#allocation52_spill] sm:$0xff] }
 0x3d6   :  { %2604 = vmatpush1.bf16.msra.mxu0 %v6907_v57  ;;  %2645 = vmatpush1.bf16.msra.mxu1 %v6908_v23  ;;  %v6918_v57 = vld [vmem:[#allocation53_spill] sm:$0xff]  ;;  %v6919_v23 = vld [vmem:[#allocation54_spill] sm:$0xff] }
 0x3d7   :  { %2605 = vmatprep.subr.bf16.mxu0 %v6909_v2  ;;  %2646 = vmatprep.subr.bf16.mxu1 %v6910_v17  ;;  %v6920_v2 = vld [vmem:[#allocation55_spill] sm:$0xff]  ;;  %v6921_v17 = vld [vmem:[#allocation56_spill] sm:$0xff] }
 0x3da   :  { %2606 = vmatpush1.bf16.msra.mxu0 %v6911_v45  ;;  %2647 = vmatpush1.bf16.msra.mxu1 %v6912_v48  ;;  %v6922_v45 = vld [vmem:[#allocation57_spill] sm:$0xff]  ;;  %v6923_v48 = vld [vmem:[#allocation58_spill] sm:$0xff] }
 0x3db   :  { %2607 = vmatprep.subr.bf16.mxu0 %v6913_v31  ;;  %2648 = vmatprep.subr.bf16.mxu1 %v6914_v29  ;;  %v6924_v31 = vld [vmem:[#allocation59_spill] sm:$0xff]  ;;  %v6925_v29 = vld [vmem:[#allocation60_spill] sm:$0xff] }
 0x3de   :  { %2608 = vmatpush2.bf16.msra.mxu0 %v6915_v50  ;;  %2649 = vmatpush2.bf16.msra.mxu1 %v6916_v46  ;;  %v6926_v50 = vld [vmem:[#allocation61_spill] sm:$0xff]  ;;  %v6927_v46 = vld [vmem:[#allocation62_spill] sm:$0xff] }
 0x3df   :  { %2609 = vmatprep.subr.bf16.mxu0 %v6917_v25  ;;  %2650 = vmatprep.subr.bf16.mxu1 %v6918_v57  ;;  %v6928_v25 = vld [vmem:[#allocation63_spill] sm:$0xff]  ;;  %v6929_v57 = vld [vmem:[#allocation64_spill] sm:$0xff] }
 0x3e2   :  { %2610 = vmatpush2.bf16.msra.mxu0 %v6919_v23  ;;  %2651 = vmatpush2.bf16.msra.mxu1 %v6920_v2  ;;  %v6930_v23 = vld [vmem:[#allocation65_spill] sm:$0xff]  ;;  %v6931_v2 = vld [vmem:[#allocation66_spill] sm:$0xff] }
 0x3e3   :  { %2611 = vmatprep.subr.bf16.mxu0 %v6921_v17  ;;  %2652 = vmatprep.subr.bf16.mxu1 %v6922_v45  ;;  %v6932_v17 = vld [vmem:[#allocation67_spill] sm:$0xff]  ;;  %v6933_v45 = vld [vmem:[#allocation68_spill] sm:$0xff] }
 0x3e6   :  { %2612 = vmatpush2.bf16.msra.mxu0 %v6923_v48  ;;  %2653 = vmatpush2.bf16.msra.mxu1 %v6924_v31  ;;  %v6934_v48 = vld [vmem:[#allocation69_spill] sm:$0xff]  ;;  %v6935_v31 = vld [vmem:[#allocation70_spill] sm:$0xff] }
 0x3e7   :  { %2613 = vmatprep.subr.bf16.mxu0 %v6925_v29  ;;  %2654 = vmatprep.subr.bf16.mxu1 %v6926_v50  ;;  %v6936_v29 = vld [vmem:[#allocation71_spill] sm:$0xff]  ;;  %v6937_v50 = vld [vmem:[#allocation72_spill] sm:$0xff] }
 0x3ea   :  { %2614 = vmatpush2.bf16.msra.mxu0 %v6927_v46  ;;  %2655 = vmatpush2.bf16.msra.mxu1 %v6928_v25  ;;  %v6938_v46 = vld [vmem:[#allocation73_spill] sm:$0xff]  ;;  %v6939_v25 = vld [vmem:[#allocation74_spill] sm:$0xff] }
 0x3eb   :  { %2615 = vmatprep.subr.bf16.mxu0 %v6929_v57  ;;  %2656 = vmatprep.subr.bf16.mxu1 %v6930_v23  ;;  %v6940_v57 = vld [vmem:[#allocation75_spill] sm:$0xff]  ;;  %v6941_v23 = vld [vmem:[#allocation76_spill] sm:$0xff] }
 0x3ee   :  { %2616 = vmatpush2.bf16.msra.mxu0 %v6931_v2  ;;  %2657 = vmatpush2.bf16.msra.mxu1 %v6932_v17  ;;  %v6942_v2 = vld [vmem:[#allocation77_spill] sm:$0xff]  ;;  %v6943_v17 = vld [vmem:[#allocation78_spill] sm:$0xff] }
 0x3ef   :  { %2617 = vmatprep.subr.bf16.mxu0 %v6933_v45  ;;  %2658 = vmatprep.subr.bf16.mxu1 %v6934_v48  ;;  %v6944_v45 = vld [vmem:[#allocation79_spill] sm:$0xff]  ;;  %v6945_v48 = vld [vmem:[#allocation80_spill] sm:$0xff] }
 0x3f2   :  { %2618 = vmatpush2.bf16.msra.mxu0 %v6935_v31  ;;  %2659 = vmatpush2.bf16.msra.mxu1 %v6936_v29  ;;  %v6946_v31 = vld [vmem:[#allocation81_spill] sm:$0xff]  ;;  %v612_v29 = vpop.permute.xlu1 %611 }
 0x3f3   :  { %2619 = vmatprep.subr.bf16.mxu0 %v6937_v50  ;;  %2660 = vmatprep.subr.bf16.mxu1 %v6938_v46  ;;  %v474_v50 = vpop.permute.xlu0 %473 }
 0x3f4   :  { %v546_v46 = vmul.f32 %v6947_v44, %v474_v50 }
 0x3f6   :  { %2620 = vmatpush2.bf16.msra.mxu0 %v6939_v25  ;;  %2661 = vmatpush2.bf16.msra.mxu1 %v6940_v57  ;;  %v547_v25 = vmul.f32 %v6948_v5, %v474_v50  ;;  %v548_v57 = vmul.f32 %v6949_v42, %v474_v50  ;;  %v744_v1 = vpop.permute.xlu1 %743  ;;  %v6954_v42 = vld [vmem:[#allocation98_spill] sm:$0xff] }
 0x3f7   :  { %2621 = vmatprep.subr.bf16.mxu0 %v6941_v23  ;;  %2662 = vmatprep.subr.bf16.mxu1 %v6942_v2  ;;  %v549_v23 = vmul.f32 %v6950_v32, %v474_v50  ;;  %v6951_v2 = vld [vmem:[#allocation94_spill] sm:$0xff]  ;;  %v810_v6 = vmul.f32 %v6954_v42, %v744_v1  ;;  %v6955_v50 = vld [vmem:[#allocation85_spill] sm:$0xff]  ;;  %v876_v61 = vpop.permute.xlu0 %875 }
 0x3f8   :  { %v678_v39 = vmul.f32 %v6951_v2, %v612_v29  ;;  %v579_v28 = vadd.f32 %v547_v25, %v6835_v14  ;;  %v580_v44 = vadd.f32 %v548_v57, %v6836_v8  ;;  %v811_v32 = vmul.f32 %v6955_v50, %v744_v1  ;;  %v6959_v25 = vld [vmem:[#allocation89_spill] sm:$0xff]  ;;  %v6960_v57 = vld [vmem:[#allocation100_spill] sm:$0xff] }
 0x3f9   :  { %v581_v5 = vadd.f32 %v549_v23, %v6837_v27  ;;  %v812_v2 = vmul.f32 %v6956_v33, %v744_v1  ;;  %v943_v14 = vmul.f32 %v6959_v25, %v876_v61  ;;  %v944_v8 = vmul.f32 %v6960_v57, %v876_v61 }
 0x3fa   :  { %2622 = vmatpush2.bf16.msra.mxu0 %v6943_v17  ;;  %2663 = vmatpush2.bf16.msra.mxu1 %v6944_v45  ;;  %v6952_v17 = vld [vmem:[#allocation91_spill] sm:$0xff]  ;;  %v6953_v45 = vld [vmem:[#allocation93_spill] sm:$0xff]  ;;  %v945_v23 = vmul.f32 %v4775_v54, %v876_v61 }
 0x3fb   :  { %2673 = vmatprep.subr.bf16.mxu0 %v6945_v48  ;;  %2714 = vmatprep.subr.bf16.mxu1 %v6946_v31  ;;  %v679_v11 = vmul.f32 %v6952_v17, %v612_v29  ;;  %v680_v34 = vmul.f32 %v6953_v45, %v612_v29  ;;  %v681_v48 = vmul.f32 %v6833_v36, %v612_v29 }
 0x3fc   :  { %v578_v31 = vadd.f32 %v546_v46, %v6834_v4  ;;  %v813_v17 = vmul.f32 %v6957_v62, %v744_v1  ;;  %v6958_v46 = vld [vmem:[#allocation99_spill] sm:$0xff] }
 0x3fd   :  { %v711_v0 = vadd.f32 %v679_v11, %v579_v28  ;;  %v712_v29 = vadd.f32 %v680_v34, %v580_v44  ;;  %v713_v36 = vadd.f32 %v681_v48, %v581_v5  ;;  %v942_v4 = vmul.f32 %v6958_v46, %v876_v61 }
 0x3fe   :  { %v710_v45 = vadd.f32 %v678_v39, %v578_v31 }
 0x3ff   :  { %v843_v27 = vadd.f32 %v811_v32, %v711_v0  ;;  %v844_v50 = vadd.f32 %v812_v2, %v712_v29  ;;  %v845_v26 = vadd.f32 %v813_v17, %v713_v36 }
 0x400   :  { %v842_v42 = vadd.f32 %v810_v6, %v710_v45 }
 0x401   :  { %v975_v35 = vadd.f32 %v943_v14, %v843_v27  ;;  %v976_v1 = vadd.f32 %v944_v8, %v844_v50  ;;  %v977_v62 = vadd.f32 %v945_v23, %v845_v26 }
 0x402   :  { %v974_v33 = vadd.f32 %v942_v4, %v842_v42 }
 0x403   :  { %v1079_v28 = vcombine.low %v976_v1, %v977_v62 }
 0x404   :  { %v1078_v39 = vcombine.low %v974_v33, %v975_v35 }
 0x405   :  { %v1093_v11 = vrot.slane %v1079_v28, %v4873_v24 }
 0x406   :  { %v1086_v34 = vrot.slane %v1078_v39, %v4873_v24 }
 0x407   :  { %v3879_v35 = vcombine.low %v1093_v11, %v1093_v11 }
 0x408   :  { %v1094_v5 = vcombine.low %v1086_v34, %v1093_v11 }
 0x409   :  { %v2526_v33 = vrot.slane %v3879_v35, %v4873_v24 }
 0x40a   :  { %v2519_v48 = vrot.slane %v1094_v5, %v4873_v24 }
 0x40b   :  { %v2528_v42 = vcombine.high %v2526_v33, %v2526_v33 }
 0x40c   :  { %v2527_v6 = vcombine.high %v2519_v48, %v2519_v48 }
 0x43d   :  { %v2379_v31 = vpop.f32.mrf.mxu0  ;;  %v2420_v44 = vpop.f32.mrf.mxu1 }
 0x43e   :  { %v2533_v61 = vadd.f32 %v2519_v48, %v2379_v31  ;;  %v2535_v35 = vadd.f32 %v2526_v33, %v2420_v44 }
 0x43f   :  { %v2381_v0 = vpop.f32.mrf.mxu0  ;;  %v2422_v32 = vpop.f32.mrf.mxu1 }
 0x440   :  { %v3844_v36 = vmul.f32 -1.442695, %v2533_v61  ;;  %v2534_v4 = vadd.f32 %v2527_v6, %v2381_v0  ;;  %v2536_v45 = vadd.f32 %v2528_v42, %v2422_v32 }
 0x441   :  { %v2383_v27 = vpop.f32.mrf.mxu0  ;;  %v2424_v8 = vpop.f32.mrf.mxu1 }
 0x442   :  { %4005 = vpow2.f32 %v3844_v36  ;;  %v3845_v14 = vmul.f32 -1.442695, %v2534_v4 }
 0x443   :  { %v2384_v26 = vpop.f32.mrf.mxu0  ;;  %v2425_v62 = vpop.f32.mrf.mxu1 }
 0x444   :  { %4007 = vpow2.f32 %v3845_v14  ;;  %v3846_v26 = vmul.f32 -1.442695, %v2535_v35  ;;  %v6964_v35 = vld [vmem:[#allocation116_spill] sm:$0xff] }
 0x445   :  { %4009 = vtanh.f32 %v2536_v45 }
 0x44f   :  { %v4006_v2 = vpop.eup %4005 }
 0x450   :  { %v2546_v17 = vadd.f32 1.0, %v4006_v2 }
 0x451   :  { %v4008_v50 = vpop.eup %4007 }
 0x452   :  { %4011 = vrcp.f32 %v2546_v17  ;;  %v2547_v29 = vadd.f32 1.0, %v4008_v50  ;;  %v4010_v23 = vpop.eup %4009 }
 0x454   :  { %4013 = vrcp.f32 %v2547_v29 }
 0x45f   :  { %v4012_v1 = vpop.eup %4011 }
 0x460   :  { %v2557_v39 = vmul.f32 %v4012_v1, %v4010_v23 }
 0x461   :  { %v4014_v28 = vpop.eup %4013 }
 0x462   :  { %v2556_v34 = vmul.f32 %v4014_v28, %v5342_v40 }
 0x464   :  { %v5512_v11 = vadd.f32 %v2557_v39, %v2556_v34 }
 0x47d   :  { %v2461_v5 = vpop.f32.mrf.mxu0  ;;  %v2502_v48 = vpop.f32.mrf.mxu1 }
 0x47e   :  { %v2561_v31 = vadd.f32 %v2461_v5, %v5164_v7  ;;  %v2563_v40 = vadd.f32 %v2502_v48, %v5172_v18 }
 0x47f   :  { %v2463_v61 = vpop.f32.mrf.mxu0  ;;  %v2504_v6 = vpop.f32.mrf.mxu1 }
 0x480   :  { %v3847_v0 = vmul.f32 -1.442695, %v2561_v31  ;;  %v2562_v32 = vadd.f32 %v2463_v61, %v5167_v41  ;;  %v3849_v62 = vmul.f32 -1.442695, %v2563_v40  ;;  %v2564_v45 = vadd.f32 %v2504_v6, %v5176_v21  ;;  %v6965_v40 = vld [vmem:[#allocation117_spill] sm:$0xff] }
 0x481   :  { %v2465_v36 = vpop.f32.mrf.mxu0  ;;  %v2506_v4 = vpop.f32.mrf.mxu1 }
 0x482   :  { %4015 = vpow2.f32 %v3847_v0  ;;  %v3848_v27 = vmul.f32 -1.442695, %v2562_v32 }
 0x483   :  { %v2466_v8 = vpop.f32.mrf.mxu0  ;;  %v2507_v14 = vpop.f32.mrf.mxu1 }
 0x484   :  { %4017 = vpow2.f32 %v3848_v27  ;;  %v6962_v8 = vld [vmem:[#allocation114_spill] sm:$0xff]  ;;  %v6963_v14 = vld [vmem:[#allocation115_spill] sm:$0xff] }
 0x485   :  { %4019 = vpow2.f32 %v3846_v26  ;;  %v6966_v26 = vld [vmem:[#allocation118_spill] sm:$0xff] }
 0x486   :  { %4021 = vpow2.f32 %v3849_v62  ;;  %v6967_v62 = vld [vmem:[#allocation119_spill] sm:$0xff] }
 0x48f   :  { %v4016_v42 = vpop.eup %4015 }
 0x490   :  { %v2574_v2 = vadd.f32 1.0, %v4016_v42  ;;  %v6968_v42 = vld [vmem:[#allocation120_spill] sm:$0xff] }
 0x491   :  { %v4018_v17 = vpop.eup %4017 }
 0x492   :  { %4023 = vrcp.f32 %v2574_v2  ;;  %v2575_v50 = vadd.f32 1.0, %v4018_v17  ;;  %v4020_v29 = vpop.eup %4019  ;;  %v6970_v2 = vld [vmem:[#allocation122_spill] sm:$0xff]  ;;  %v6971_v17 = vld [vmem:[#allocation123_spill] sm:$0xff] }
 0x493   :  { %4025 = vtanh.f32 %v2564_v45  ;;  %v4022_v23 = vpop.eup %4021  ;;  %v2548_v44 = vadd.f32 1.0, %v4020_v29  ;;  %v6969_v45 = vld [vmem:[#allocation121_spill] sm:$0xff] }
 0x494   :  { %4027 = vrcp.f32 %v2575_v50  ;;  %v2576_v28 = vadd.f32 1.0, %v4022_v23  ;;  %v6972_v50 = vld [vmem:[#allocation124_spill] sm:$0xff]  ;;  %v6973_v29 = vld [vmem:[#allocation125_spill] sm:$0xff]  ;;  %v6974_v23 = vld [vmem:[#allocation126_spill] sm:$0xff] }
 0x495   :  { %4029 = vtanh.f32 %v5512_v11 }
 0x496   :  { %4031 = vrcp.f32 %v2548_v44  ;;  %v6977_v44 = vld [vmem:[#allocation129_spill] sm:$0xff] }
 0x497   :  { %4033 = vrcp.f32 %v2576_v28  ;;  %v6979_v28 = vld [vmem:[#allocation131_spill] sm:$0xff] }
 0x49f   :  { %v4024_v1 = vpop.eup %4023 }
 0x4a0   :  { %v4026_v39 = vpop.eup %4025 }
 0x4a1   :  { %v4028_v33 = vpop.eup %4027  ;;  %v2585_v5 = vmul.f32 %v4026_v39, %v4024_v1  ;;  %v6975_v1 = vld [vmem:[#allocation127_spill] sm:$0xff]  ;;  %v6976_v39 = vld [vmem:[#allocation128_spill] sm:$0xff] }
 0x4a2   :  { %v2584_v34 = vmul.f32 %v4028_v33, %v5350_v37  ;;  %v4030_v31 = vpop.eup %4029  ;;  %v6961_v37 = vld [vmem:[#allocation113_spill] sm:$0xff]  ;;  %v6978_v33 = vld [vmem:[#allocation130_spill] sm:$0xff] }
 0x4a3   :  { %v4032_v61 = vpop.eup %4031 }
 0x4a4   :  { %v5520_v48 = vadd.f32 %v2585_v5, %v2584_v34  ;;  %v4034_v6 = vpop.eup %4033  ;;  %v2560_v32 = vmul.f32 %v4032_v61, %v4030_v31  ;;  %v6980_v34 = vld [vmem:[#allocation132_spill] sm:$0xff]  ;;  %v6981_v5 = vld [vmem:[#allocation133_spill] sm:$0xff]  ;;  %v6982_v31 = vld [vmem:[#allocation134_spill] sm:$0xff] }
 0x4a5   :  { %v6983_v61 = vld [vmem:[#allocation135_spill] sm:$0xff] }
 0x4a6   :  { %4035 = vtanh.f32 %v5520_v48  ;;  %v5523_v27 = vpack.c.bf16 %v2560_v32, %v2560_v32  ;;  %v6986_v32 = vld [vmem:[#allocation138_spill] sm:$0xff] }
 0x4b3   :  { %v4036_v0 = vpop.eup %4035 }
 0x4b4   :  { %v2588_v36 = vmul.f32 %v4036_v0, %v4034_v6  ;;  %v6984_v6 = vld [vmem:[#allocation136_spill] sm:$0xff]  ;;  %v6985_v0 = vld [vmem:[#allocation137_spill] sm:$0xff] }
 0x4b6   :  { %v2590_v4 = vpack.c.bf16 %v2588_v36, %v2588_v36  ;;  %v6987_v36 = vld [vmem:[#allocation139_spill] sm:$0xff] }
 0x4b8   :  { %2623 = vmatprep.mubr.bf16.mxu0 %v2590_v4  ;;  %2664 = vmatprep.mubr.bf16.mxu1 %v2590_v4 }
 0x4b9   :  { %2624 = vmatmul.mubr.bf16.vlgmr.msra.gmra.mxu0 %v5523_v27  ;;  %2665 = vmatmul.mubr.bf16.vlgmr.msra.gmra.mxu1 %v5523_v27 }
 0x4ba   :  { %2674 = vmatpush1.bf16.msra.mxu0 %v4604_v58  ;;  %2715 = vmatpush1.bf16.msra.mxu1 %v4612_v49 }
 0x4bb   :  { %2705 = vmatprep.mubr.bf16.mxu0 %v2590_v4  ;;  %2746 = vmatprep.mubr.bf16.mxu1 %v2590_v4  ;;  %v6988_v4 = vld [vmem:[#allocation140_spill] sm:$0xff] }
 0x4bc   :  { %2675 = vmatprep.subr.bf16.mxu0 %v4882_v3  ;;  %2716 = vmatprep.subr.bf16.mxu1 %v4884_v12 }
 0x4be   :  { %2676 = vmatpush1.bf16.msra.mxu0 %v4890_v22  ;;  %2717 = vmatpush1.bf16.msra.mxu1 %v4892_v38 }
 0x4bf   :  { %2677 = vmatprep.subr.bf16.mxu0 %v4896_v47  ;;  %2718 = vmatprep.subr.bf16.mxu1 %v4898_v52 }
 0x4c2   :  { %2678 = vmatpush1.bf16.msra.mxu0 %v4904_v51  ;;  %2719 = vmatpush1.bf16.msra.mxu1 %v4906_v15 }
 0x4c3   :  { %2679 = vmatprep.subr.bf16.mxu0 %v4910_v30  ;;  %2720 = vmatprep.subr.bf16.mxu1 %v4912_v19 }
 0x4c6   :  { %2680 = vmatpush1.bf16.msra.mxu0 %v4916_v9  ;;  %2721 = vmatpush1.bf16.msra.mxu1 %v4918_v43 }
 0x4c7   :  { %2681 = vmatprep.subr.bf16.mxu0 %v4922_v53  ;;  %2722 = vmatprep.subr.bf16.mxu1 %v4924_v59 }
 0x4ca   :  { %2682 = vmatpush1.bf16.msra.mxu0 %v4928_v56  ;;  %2723 = vmatpush1.bf16.msra.mxu1 %v6726_v60 }
 0x4cb   :  { %2683 = vmatprep.subr.bf16.mxu0 %v6727_v13  ;;  %2724 = vmatprep.subr.bf16.mxu1 %v6728_v10 }
 0x4ce   :  { %2684 = vmatpush1.bf16.msra.mxu0 %v6729_v63  ;;  %2725 = vmatpush1.bf16.msra.mxu1 %v6730_v55 }
 0x4cf   :  { %2685 = vmatprep.subr.bf16.mxu0 %v6841_v16  ;;  %2726 = vmatprep.subr.bf16.mxu1 %v6842_v20 }
 0x4d2   :  { %2686 = vmatpush1.bf16.msra.mxu0 %v6961_v37  ;;  %2727 = vmatpush1.bf16.msra.mxu1 %v6962_v8 }
 0x4d3   :  { %2687 = vmatprep.subr.bf16.mxu0 %v6963_v14  ;;  %2728 = vmatprep.subr.bf16.mxu1 %v6964_v35 }
 0x4d6   :  { %2688 = vmatpush1.bf16.msra.mxu0 %v6965_v40  ;;  %2729 = vmatpush1.bf16.msra.mxu1 %v6966_v26 }
 0x4d7   :  { %2689 = vmatprep.subr.bf16.mxu0 %v6967_v62  ;;  %2730 = vmatprep.subr.bf16.mxu1 %v6968_v42  ;;  %v7074_v42 = vld [vmem:[#allocation102_spill] sm:$0xff] }
 0x4da   :  { %2690 = vmatpush2.bf16.msra.mxu0 %v6969_v45  ;;  %2731 = vmatpush2.bf16.msra.mxu1 %v6970_v2  ;;  %v748_v2 = vpop.permute.xlu0 %747 }
 0x4db   :  { %2691 = vmatprep.subr.bf16.mxu0 %v6971_v17  ;;  %2732 = vmatprep.subr.bf16.mxu1 %v6972_v50  ;;  %v7071_v50 = vld [vmem:[#allocation93_spill] sm:$0xff]  ;;  %v7072_v17 = vld [vmem:[#allocation92_spill] sm:$0xff] }
 0x4de   :  { %2692 = vmatpush2.bf16.msra.mxu0 %v6973_v29  ;;  %2733 = vmatpush2.bf16.msra.mxu1 %v6974_v23  ;;  %v7069_v23 = vld [vmem:[#allocation94_spill] sm:$0xff]  ;;  %v7070_v29 = vld [vmem:[#allocation91_spill] sm:$0xff] }
 0x4df   :  { %2693 = vmatprep.subr.bf16.mxu0 %v6975_v1  ;;  %2734 = vmatprep.subr.bf16.mxu1 %v6976_v39  ;;  %v7067_v39 = vld [vmem:[#allocation96_spill] sm:$0xff] }
 0x4e0   :  { %v7068_v1 = vld [vmem:[#allocation88_spill] sm:$0xff] }
 0x4e2   :  { %2694 = vmatpush2.bf16.msra.mxu0 %v6977_v44  ;;  %2735 = vmatpush2.bf16.msra.mxu1 %v6978_v33  ;;  %v6989_v33 = vld [vmem:[#allocation141_spill] sm:$0xff]  ;;  %v7066_v44 = vld [vmem:[#allocation87_spill] sm:$0xff] }
 0x4e3   :  { %2695 = vmatprep.subr.bf16.mxu0 %v6979_v28  ;;  %2736 = vmatprep.subr.bf16.mxu1 %v6980_v34  ;;  %v6990_v28 = vld [vmem:[#allocation142_spill] sm:$0xff]  ;;  %v6991_v34 = vld [vmem:[#allocation143_spill] sm:$0xff] }
 0x4e6   :  { %2696 = vmatpush2.bf16.msra.mxu0 %v6981_v5  ;;  %2737 = vmatpush2.bf16.msra.mxu1 %v6982_v31  ;;  %v6992_v5 = vld [vmem:[#allocation144_spill] sm:$0xff]  ;;  %v6993_v31 = vld [vmem:[#allocation145_spill] sm:$0xff] }
 0x4e7   :  { %2697 = vmatprep.subr.bf16.mxu0 %v6983_v61  ;;  %2738 = vmatprep.subr.bf16.mxu1 %v6984_v6  ;;  %v6994_v61 = vld [vmem:[#allocation146_spill] sm:$0xff]  ;;  %v6995_v6 = vld [vmem:[#allocation147_spill] sm:$0xff] }
 0x4ea   :  { %2698 = vmatpush2.bf16.msra.mxu0 %v6985_v0  ;;  %2739 = vmatpush2.bf16.msra.mxu1 %v6986_v32  ;;  %v6996_v0 = vld [vmem:[#allocation148_spill] sm:$0xff]  ;;  %v6997_v32 = vld [vmem:[#allocation149_spill] sm:$0xff] }
 0x4eb   :  { %2699 = vmatprep.subr.bf16.mxu0 %v6987_v36  ;;  %2740 = vmatprep.subr.bf16.mxu1 %v6988_v4  ;;  %v6998_v36 = vld [vmem:[#allocation150_spill] sm:$0xff]  ;;  %v6999_v4 = vld [vmem:[#allocation16_spill] sm:$0xff] }
 0x4ee   :  { %2700 = vmatpush2.bf16.msra.mxu0 %v6989_v33  ;;  %2741 = vmatpush2.bf16.msra.mxu1 %v6990_v28  ;;  %v7000_v33 = vld [vmem:[#allocation17_spill] sm:$0xff]  ;;  %v7065_v28 = vld [vmem:[#allocation95_spill] sm:$0xff] }
 0x4ef   :  { %2701 = vmatprep.subr.bf16.mxu0 %v6991_v34  ;;  %2742 = vmatprep.subr.bf16.mxu1 %v6992_v5  ;;  %v7001_v5 = vld [vmem:[#allocation18_spill] sm:$0xff]  ;;  %v7010_v34 = vld [vmem:[#allocation27_spill] sm:$0xff] }
 0x4f2   :  { %2702 = vmatpush2.bf16.msra.mxu0 %v6993_v31  ;;  %2743 = vmatpush2.bf16.msra.mxu1 %v6994_v61  ;;  %v7002_v31 = vld [vmem:[#allocation19_spill] sm:$0xff]  ;;  %v7003_v61 = vld [vmem:[#allocation20_spill] sm:$0xff] }
 0x4f3   :  { %2703 = vmatprep.subr.bf16.mxu0 %v6995_v6  ;;  %2744 = vmatprep.subr.bf16.mxu1 %v6996_v0  ;;  %v7004_v6 = vld [vmem:[#allocation21_spill] sm:$0xff]  ;;  %v7005_v0 = vld [vmem:[#allocation22_spill] sm:$0xff] }
 0x4f6   :  { %2704 = vmatpush2.bf16.msra.mxu0 %v6997_v32  ;;  %2745 = vmatpush2.bf16.msra.mxu1 %v6998_v36  ;;  %v7006_v32 = vld [vmem:[#allocation23_spill] sm:$0xff]  ;;  %v7007_v36 = vld [vmem:[#allocation24_spill] sm:$0xff] }
 0x4f7   :  { %2837 = vmatprep.subr.bf16.mxu0 %v6999_v4  ;;  %2878 = vmatprep.subr.bf16.mxu1 %v7000_v33  ;;  %v7008_v4 = vld [vmem:[#allocation25_spill] sm:$0xff]  ;;  %v7009_v33 = vld [vmem:[#allocation26_spill] sm:$0xff] }
 0x4f9   :  { %2706 = vmatmul.mubr.bf16.vlgmr.msra.gmra.mxu0 %v5523_v27  ;;  %2747 = vmatmul.mubr.bf16.vlgmr.msra.gmra.mxu1 %v5523_v27  ;;  %v7011_v27 = vld [vmem:[#allocation28_spill] sm:$0xff] }
 0x4fa   :  { %2838 = vmatpush1.bf16.msra.mxu0 %v7001_v5  ;;  %2879 = vmatpush1.bf16.msra.mxu1 %v7002_v31  ;;  %v7012_v5 = vld [vmem:[#allocation29_spill] sm:$0xff]  ;;  %v7013_v31 = vld [vmem:[#allocation30_spill] sm:$0xff] }
 0x4fb   :  { %2839 = vmatprep.subr.bf16.mxu0 %v7003_v61  ;;  %2880 = vmatprep.subr.bf16.mxu1 %v7004_v6  ;;  %v7014_v61 = vld [vmem:[#allocation31_spill] sm:$0xff]  ;;  %v7015_v6 = vld [vmem:[#allocation32_spill] sm:$0xff] }
 0x4fe   :  { %2840 = vmatpush1.bf16.msra.mxu0 %v7005_v0  ;;  %2881 = vmatpush1.bf16.msra.mxu1 %v7006_v32  ;;  %v7016_v0 = vld [vmem:[#allocation33_spill] sm:$0xff]  ;;  %v7017_v32 = vld [vmem:[#allocation34_spill] sm:$0xff] }
 0x4ff   :  { %2841 = vmatprep.subr.bf16.mxu0 %v7007_v36  ;;  %2882 = vmatprep.subr.bf16.mxu1 %v7008_v4  ;;  %v7018_v36 = vld [vmem:[#allocation35_spill] sm:$0xff]  ;;  %v7019_v4 = vld [vmem:[#allocation36_spill] sm:$0xff] }
 0x502   :  { %2842 = vmatpush1.bf16.msra.mxu0 %v7009_v33  ;;  %2883 = vmatpush1.bf16.msra.mxu1 %v7010_v34  ;;  %v7020_v33 = vld [vmem:[#allocation37_spill] sm:$0xff]  ;;  %v7021_v34 = vld [vmem:[#allocation38_spill] sm:$0xff] }
 0x503   :  { %2843 = vmatprep.subr.bf16.mxu0 %v7011_v27  ;;  %2884 = vmatprep.subr.bf16.mxu1 %v7012_v5  ;;  %v7022_v27 = vld [vmem:[#allocation39_spill] sm:$0xff]  ;;  %v7023_v5 = vld [vmem:[#allocation40_spill] sm:$0xff] }
 0x506   :  { %2844 = vmatpush1.bf16.msra.mxu0 %v7013_v31  ;;  %2885 = vmatpush1.bf16.msra.mxu1 %v7014_v61  ;;  %v7024_v31 = vld [vmem:[#allocation41_spill] sm:$0xff]  ;;  %v7025_v61 = vld [vmem:[#allocation42_spill] sm:$0xff] }
 0x507   :  { %2845 = vmatprep.subr.bf16.mxu0 %v7015_v6  ;;  %2886 = vmatprep.subr.bf16.mxu1 %v7016_v0  ;;  %v7026_v6 = vld [vmem:[#allocation43_spill] sm:$0xff]  ;;  %v7027_v0 = vld [vmem:[#allocation44_spill] sm:$0xff] }
 0x50a   :  { %2846 = vmatpush1.bf16.msra.mxu0 %v7017_v32  ;;  %2887 = vmatpush1.bf16.msra.mxu1 %v7018_v36  ;;  %v7028_v32 = vld [vmem:[#allocation45_spill] sm:$0xff]  ;;  %v7029_v36 = vld [vmem:[#allocation46_spill] sm:$0xff] }
 0x50b   :  { %2847 = vmatprep.subr.bf16.mxu0 %v7019_v4  ;;  %2888 = vmatprep.subr.bf16.mxu1 %v7020_v33  ;;  %v7030_v4 = vld [vmem:[#allocation47_spill] sm:$0xff]  ;;  %v7031_v33 = vld [vmem:[#allocation48_spill] sm:$0xff] }
 0x50e   :  { %2848 = vmatpush1.bf16.msra.mxu0 %v7021_v34  ;;  %2889 = vmatpush1.bf16.msra.mxu1 %v7022_v27  ;;  %v7032_v34 = vld [vmem:[#allocation49_spill] sm:$0xff]  ;;  %v7033_v27 = vld [vmem:[#allocation50_spill] sm:$0xff] }
 0x50f   :  { %2849 = vmatprep.subr.bf16.mxu0 %v7023_v5  ;;  %2890 = vmatprep.subr.bf16.mxu1 %v7024_v31  ;;  %v7034_v5 = vld [vmem:[#allocation51_spill] sm:$0xff]  ;;  %v7035_v31 = vld [vmem:[#allocation52_spill] sm:$0xff] }
 0x512   :  { %2850 = vmatpush1.bf16.msra.mxu0 %v7025_v61  ;;  %2891 = vmatpush1.bf16.msra.mxu1 %v7026_v6  ;;  %v7036_v61 = vld [vmem:[#allocation53_spill] sm:$0xff]  ;;  %v7037_v6 = vld [vmem:[#allocation54_spill] sm:$0xff] }
 0x513   :  { %2851 = vmatprep.subr.bf16.mxu0 %v7027_v0  ;;  %2892 = vmatprep.subr.bf16.mxu1 %v7028_v32  ;;  %v7038_v0 = vld [vmem:[#allocation55_spill] sm:$0xff]  ;;  %v7039_v32 = vld [vmem:[#allocation56_spill] sm:$0xff] }
 0x516   :  { %2852 = vmatpush1.bf16.msra.mxu0 %v7029_v36  ;;  %2893 = vmatpush1.bf16.msra.mxu1 %v7030_v4  ;;  %v7040_v36 = vld [vmem:[#allocation57_spill] sm:$0xff]  ;;  %v7041_v4 = vld [vmem:[#allocation58_spill] sm:$0xff] }
 0x517   :  { %2853 = vmatprep.subr.bf16.mxu0 %v7031_v33  ;;  %2894 = vmatprep.subr.bf16.mxu1 %v7032_v34  ;;  %v7042_v33 = vld [vmem:[#allocation59_spill] sm:$0xff]  ;;  %v7043_v34 = vld [vmem:[#allocation60_spill] sm:$0xff] }
 0x51a   :  { %2854 = vmatpush2.bf16.msra.mxu0 %v7033_v27  ;;  %2895 = vmatpush2.bf16.msra.mxu1 %v7034_v5  ;;  %v7044_v27 = vld [vmem:[#allocation61_spill] sm:$0xff]  ;;  %v7045_v5 = vld [vmem:[#allocation62_spill] sm:$0xff] }
 0x51b   :  { %2855 = vmatprep.subr.bf16.mxu0 %v7035_v31  ;;  %2896 = vmatprep.subr.bf16.mxu1 %v7036_v61  ;;  %v7046_v31 = vld [vmem:[#allocation63_spill] sm:$0xff]  ;;  %v7047_v61 = vld [vmem:[#allocation64_spill] sm:$0xff] }
 0x51e   :  { %2856 = vmatpush2.bf16.msra.mxu0 %v7037_v6  ;;  %2897 = vmatpush2.bf16.msra.mxu1 %v7038_v0  ;;  %v7048_v6 = vld [vmem:[#allocation65_spill] sm:$0xff]  ;;  %v7049_v0 = vld [vmem:[#allocation66_spill] sm:$0xff] }
 0x51f   :  { %2857 = vmatprep.subr.bf16.mxu0 %v7039_v32  ;;  %2898 = vmatprep.subr.bf16.mxu1 %v7040_v36  ;;  %v7050_v32 = vld [vmem:[#allocation67_spill] sm:$0xff]  ;;  %v7051_v36 = vld [vmem:[#allocation68_spill] sm:$0xff] }
 0x522   :  { %2858 = vmatpush2.bf16.msra.mxu0 %v7041_v4  ;;  %2899 = vmatpush2.bf16.msra.mxu1 %v7042_v33  ;;  %v7052_v4 = vld [vmem:[#allocation69_spill] sm:$0xff]  ;;  %v7053_v33 = vld [vmem:[#allocation70_spill] sm:$0xff] }
 0x523   :  { %2859 = vmatprep.subr.bf16.mxu0 %v7043_v34  ;;  %2900 = vmatprep.subr.bf16.mxu1 %v7044_v27  ;;  %v7054_v34 = vld [vmem:[#allocation71_spill] sm:$0xff]  ;;  %v7055_v27 = vld [vmem:[#allocation72_spill] sm:$0xff] }
 0x526   :  { %2860 = vmatpush2.bf16.msra.mxu0 %v7045_v5  ;;  %2901 = vmatpush2.bf16.msra.mxu1 %v7046_v31  ;;  %v7056_v5 = vld [vmem:[#allocation73_spill] sm:$0xff]  ;;  %v7057_v31 = vld [vmem:[#allocation74_spill] sm:$0xff] }
 0x527   :  { %2861 = vmatprep.subr.bf16.mxu0 %v7047_v61  ;;  %2902 = vmatprep.subr.bf16.mxu1 %v7048_v6  ;;  %v7058_v61 = vld [vmem:[#allocation75_spill] sm:$0xff]  ;;  %v7059_v6 = vld [vmem:[#allocation76_spill] sm:$0xff] }
 0x52a   :  { %2862 = vmatpush2.bf16.msra.mxu0 %v7049_v0  ;;  %2903 = vmatpush2.bf16.msra.mxu1 %v7050_v32  ;;  %v7060_v0 = vld [vmem:[#allocation77_spill] sm:$0xff]  ;;  %v7061_v32 = vld [vmem:[#allocation78_spill] sm:$0xff] }
 0x52b   :  { %2863 = vmatprep.subr.bf16.mxu0 %v7051_v36  ;;  %2904 = vmatprep.subr.bf16.mxu1 %v7052_v4  ;;  %v7062_v36 = vld [vmem:[#allocation79_spill] sm:$0xff]  ;;  %v7063_v4 = vld [vmem:[#allocation80_spill] sm:$0xff] }
 0x52e   :  { %2864 = vmatpush2.bf16.msra.mxu0 %v7053_v33  ;;  %2905 = vmatpush2.bf16.msra.mxu1 %v7054_v34  ;;  %v7064_v33 = vld [vmem:[#allocation81_spill] sm:$0xff]  ;;  %v479_v34 = vpop.permute.xlu1 %478 }
 0x52f   :  { %2865 = vmatprep.subr.bf16.mxu0 %v7055_v27  ;;  %2906 = vmatprep.subr.bf16.mxu1 %v7056_v5  ;;  %v550_v5 = vmul.f32 %v7065_v28, %v479_v34  ;;  %v7075_v28 = vld [vmem:[#allocation103_spill] sm:$0xff] }
 0x532   :  { %2866 = vmatpush2.bf16.msra.mxu0 %v7057_v31  ;;  %2907 = vmatpush2.bf16.msra.mxu1 %v7058_v61  ;;  %v616_v27 = vpop.permute.xlu1 %615  ;;  %v551_v31 = vmul.f32 %v7066_v44, %v479_v34  ;;  %v552_v61 = vmul.f32 %v7067_v39, %v479_v34  ;;  %v7076_v44 = vld [vmem:[#allocation104_spill] sm:$0xff]  ;;  %v7077_v39 = vld [vmem:[#allocation98_spill] sm:$0xff] }
 0x533   :  { %2867 = vmatprep.subr.bf16.mxu0 %v7059_v6  ;;  %2908 = vmatprep.subr.bf16.mxu1 %v7060_v0  ;;  %v553_v6 = vmul.f32 %v7068_v1, %v479_v34  ;;  %v682_v0 = vmul.f32 %v7069_v23, %v616_v27  ;;  %v814_v35 = vmul.f32 %v7077_v39, %v748_v2  ;;  %v7078_v34 = vld [vmem:[#allocation85_spill] sm:$0xff] }
 0x534   :  { %v583_v62 = vadd.f32 %v551_v31, %v7074_v42  ;;  %v584_v26 = vadd.f32 %v552_v61, %v7075_v28  ;;  %v815_v1 = vmul.f32 %v7078_v34, %v748_v2  ;;  %v7079_v23 = vld [vmem:[#allocation97_spill] sm:$0xff] }
 0x535   :  { %v585_v40 = vadd.f32 %v553_v6, %v7076_v44  ;;  %v816_v14 = vmul.f32 %v7079_v23, %v748_v2 }
 0x536   :  { %2868 = vmatpush2.bf16.msra.mxu0 %v7061_v32  ;;  %2909 = vmatpush2.bf16.msra.mxu1 %v7062_v36  ;;  %v683_v32 = vmul.f32 %v7070_v29, %v616_v27  ;;  %v684_v36 = vmul.f32 %v7071_v50, %v616_v27  ;;  %v7080_v29 = vld [vmem:[#allocation86_spill] sm:$0xff]  ;;  %v880_v20 = vpop.permute.xlu1 %879 }
 0x537   :  { %2919 = vmatprep.subr.bf16.mxu0 %v7063_v4  ;;  %2960 = vmatprep.subr.bf16.mxu1 %v7064_v33  ;;  %v685_v4 = vmul.f32 %v7072_v17, %v616_v27  ;;  %v7073_v33 = vld [vmem:[#allocation101_spill] sm:$0xff]  ;;  %v817_v8 = vmul.f32 %v7080_v29, %v748_v2  ;;  %v946_v61 = vmul.f32 %v6958_v46, %v880_v20 }
 0x538   :  { %v582_v45 = vadd.f32 %v550_v5, %v7073_v33  ;;  %v715_v37 = vadd.f32 %v683_v32, %v583_v62  ;;  %v716_v27 = vadd.f32 %v684_v36, %v584_v26  ;;  %v947_v6 = vmul.f32 %v6959_v25, %v880_v20 }
 0x539   :  { %v717_v17 = vadd.f32 %v685_v4, %v585_v40  ;;  %v948_v39 = vmul.f32 %v6960_v57, %v880_v20  ;;  %v949_v34 = vmul.f32 %v4775_v54, %v880_v20 }
 0x53a   :  { %v714_v50 = vadd.f32 %v682_v0, %v582_v45  ;;  %v847_v33 = vadd.f32 %v815_v1, %v715_v37  ;;  %v848_v31 = vadd.f32 %v816_v14, %v716_v27 }
 0x53b   :  { %v849_v42 = vadd.f32 %v817_v8, %v717_v17 }
 0x53c   :  { %v846_v5 = vadd.f32 %v814_v35, %v714_v50  ;;  %v979_v44 = vadd.f32 %v947_v6, %v847_v33  ;;  %v980_v2 = vadd.f32 %v948_v39, %v848_v31 }
 0x53d   :  { %v981_v45 = vadd.f32 %v949_v34, %v849_v42 }
 0x53e   :  { %v978_v23 = vadd.f32 %v946_v61, %v846_v5 }
 0x53f   :  { %v1096_v26 = vcombine.low %v980_v2, %v981_v45 }
 0x540   :  { %v1095_v62 = vcombine.low %v978_v23, %v979_v44 }
 0x541   :  { %v1110_v37 = vrot.slane %v1096_v26, %v4873_v24 }
 0x542   :  { %v1103_v40 = vrot.slane %v1095_v62, %v4873_v24 }
 0x543   :  { %v3880_v23 = vcombine.low %v1110_v37, %v1110_v37 }
 0x544   :  { %v1111_v14 = vcombine.low %v1103_v40, %v1110_v37 }
 0x545   :  { %v2772_v34 = vrot.slane %v3880_v23, %v4873_v24 }
 0x546   :  { %v2765_v8 = vrot.slane %v1111_v14, %v4873_v24 }
 0x547   :  { %v2774_v27 = vcombine.high %v2772_v34, %v2772_v34 }
 0x548   :  { %v2773_v1 = vcombine.high %v2765_v8, %v2765_v8 }
 0x579   :  { %v2625_v35 = vpop.f32.mrf.mxu0  ;;  %v2666_v17 = vpop.f32.mrf.mxu1 }
 0x57a   :  { %v2779_v50 = vadd.f32 %v2765_v8, %v2625_v35 }
 0x57b   :  { %v2627_v0 = vpop.f32.mrf.mxu0  ;;  %v2668_v32 = vpop.f32.mrf.mxu1 }
 0x57c   :  { %v3850_v20 = vmul.f32 -1.442695, %v2779_v50  ;;  %v2780_v36 = vadd.f32 %v2773_v1, %v2627_v0  ;;  %v2782_v5 = vadd.f32 %v2774_v27, %v2668_v32 }
 0x57d   :  { %v2629_v33 = vpop.f32.mrf.mxu0  ;;  %v2670_v39 = vpop.f32.mrf.mxu1 }
 0x57e   :  { %4037 = vpow2.f32 %v3850_v20  ;;  %v3851_v42 = vmul.f32 -1.442695, %v2780_v36 }
 0x57f   :  { %v2630_v44 = vpop.f32.mrf.mxu0  ;;  %v2671_v4 = vpop.f32.mrf.mxu1 }
 0x580   :  { %4039 = vpow2.f32 %v3851_v42  ;;  %v2781_v44 = vadd.f32 %v2772_v34, %v2666_v17 }
 0x581   :  { %4041 = vtanh.f32 %v2782_v5 }
 0x582   :  { %v3852_v4 = vmul.f32 -1.442695, %v2781_v44  ;;  %v7083_v44 = vld [vmem:[#allocation114_spill] sm:$0xff] }
 0x58b   :  { %v4038_v31 = vpop.eup %4037 }
 0x58c   :  { %v2792_v61 = vadd.f32 1.0, %v4038_v31 }
 0x58d   :  { %v4040_v6 = vpop.eup %4039 }
 0x58e   :  { %4043 = vrcp.f32 %v2792_v61  ;;  %v2793_v2 = vadd.f32 1.0, %v4040_v6  ;;  %v4042_v45 = vpop.eup %4041 }
 0x590   :  { %4045 = vrcp.f32 %v2793_v2 }
 0x59b   :  { %v4044_v62 = vpop.eup %4043 }
 0x59c   :  { %v2803_v26 = vmul.f32 %v4044_v62, %v4042_v45 }
 0x59d   :  { %v4046_v40 = vpop.eup %4045 }
 0x59e   :  { %v2802_v37 = vmul.f32 %v4046_v40, %v5512_v11 }
 0x5a0   :  { %v5682_v14 = vadd.f32 %v2803_v26, %v2802_v37 }
 0x5b9   :  { %v2707_v8 = vpop.f32.mrf.mxu0  ;;  %v2748_v35 = vpop.f32.mrf.mxu1 }
 0x5ba   :  { %v2807_v50 = vadd.f32 %v2707_v8, %v5164_v7  ;;  %v2809_v11 = vadd.f32 %v2748_v35, %v5172_v18 }
 0x5bb   :  { %v2709_v1 = vpop.f32.mrf.mxu0  ;;  %v2750_v0 = vpop.f32.mrf.mxu1 }
 0x5bc   :  { %v3853_v32 = vmul.f32 -1.442695, %v2807_v50  ;;  %v2808_v20 = vadd.f32 %v2709_v1, %v5167_v41  ;;  %v3855_v27 = vmul.f32 -1.442695, %v2809_v11  ;;  %v2810_v31 = vadd.f32 %v2750_v0, %v5176_v21  ;;  %v7084_v11 = vld [vmem:[#allocation115_spill] sm:$0xff] }
 0x5bd   :  { %v2711_v36 = vpop.f32.mrf.mxu0  ;;  %v2752_v33 = vpop.f32.mrf.mxu1 }
 0x5be   :  { %4047 = vpow2.f32 %v3853_v32  ;;  %v3854_v39 = vmul.f32 -1.442695, %v2808_v20 }
 0x5bf   :  { %v2712_v42 = vpop.f32.mrf.mxu0  ;;  %v2753_v23 = vpop.f32.mrf.mxu1 }
 0x5c0   :  { %4049 = vpow2.f32 %v3854_v39  ;;  %v7082_v23 = vld [vmem:[#allocation113_spill] sm:$0xff] }
 0x5c1   :  { %4051 = vpow2.f32 %v3852_v4  ;;  %v7085_v4 = vld [vmem:[#allocation116_spill] sm:$0xff] }
 0x5c2   :  { %4053 = vpow2.f32 %v3855_v27  ;;  %v7086_v27 = vld [vmem:[#allocation117_spill] sm:$0xff] }
 0x5cb   :  { %v4048_v5 = vpop.eup %4047 }
 0x5cc   :  { %v2820_v61 = vadd.f32 1.0, %v4048_v5  ;;  %v7087_v5 = vld [vmem:[#allocation118_spill] sm:$0xff] }
 0x5cd   :  { %v4050_v6 = vpop.eup %4049 }
 0x5ce   :  { %4055 = vrcp.f32 %v2820_v61  ;;  %v2821_v2 = vadd.f32 1.0, %v4050_v6  ;;  %v4052_v45 = vpop.eup %4051  ;;  %v7089_v61 = vld [vmem:[#allocation120_spill] sm:$0xff]  ;;  %v7090_v6 = vld [vmem:[#allocation121_spill] sm:$0xff] }
 0x5cf   :  { %4057 = vtanh.f32 %v2810_v31  ;;  %v4054_v62 = vpop.eup %4053  ;;  %v2794_v17 = vadd.f32 1.0, %v4052_v45  ;;  %v7088_v31 = vld [vmem:[#allocation119_spill] sm:$0xff] }
 0x5d0   :  { %4059 = vrcp.f32 %v2821_v2  ;;  %v2822_v37 = vadd.f32 1.0, %v4054_v62  ;;  %v7091_v2 = vld [vmem:[#allocation122_spill] sm:$0xff]  ;;  %v7092_v45 = vld [vmem:[#allocation123_spill] sm:$0xff]  ;;  %v7093_v62 = vld [vmem:[#allocation124_spill] sm:$0xff] }
 0x5d1   :  { %4061 = vtanh.f32 %v5682_v14 }
 0x5d2   :  { %4063 = vrcp.f32 %v2794_v17  ;;  %v7096_v17 = vld [vmem:[#allocation127_spill] sm:$0xff] }
 0x5d3   :  { %4065 = vrcp.f32 %v2822_v37  ;;  %v7098_v37 = vld [vmem:[#allocation129_spill] sm:$0xff] }
 0x5db   :  { %v4056_v26 = vpop.eup %4055 }
 0x5dc   :  { %v4058_v40 = vpop.eup %4057 }
 0x5dd   :  { %v4060_v34 = vpop.eup %4059  ;;  %v2831_v35 = vmul.f32 %v4058_v40, %v4056_v26  ;;  %v7094_v26 = vld [vmem:[#allocation125_spill] sm:$0xff]  ;;  %v7095_v40 = vld [vmem:[#allocation126_spill] sm:$0xff] }
 0x5de   :  { %v2830_v8 = vmul.f32 %v4060_v34, %v5520_v48  ;;  %v4062_v1 = vpop.eup %4061  ;;  %v7081_v48 = vld [vmem:[#allocation112_spill] sm:$0xff] }
 0x5df   :  { %v4064_v0 = vpop.eup %4063  ;;  %v7097_v34 = vld [vmem:[#allocation128_spill] sm:$0xff] }
 0x5e0   :  { %v5690_v50 = vadd.f32 %v2831_v35, %v2830_v8  ;;  %v4066_v32 = vpop.eup %4065  ;;  %v2806_v36 = vmul.f32 %v4064_v0, %v4062_v1  ;;  %v7099_v8 = vld [vmem:[#allocation130_spill] sm:$0xff]  ;;  %v7100_v35 = vld [vmem:[#allocation131_spill] sm:$0xff]  ;;  %v7101_v1 = vld [vmem:[#allocation132_spill] sm:$0xff] }
 0x5e1   :  { %v7102_v0 = vld [vmem:[#allocation133_spill] sm:$0xff] }
 0x5e2   :  { %4067 = vtanh.f32 %v5690_v50  ;;  %v5693_v42 = vpack.c.bf16 %v2806_v36, %v2806_v36  ;;  %v7105_v36 = vld [vmem:[#allocation136_spill] sm:$0xff] }
 0x5ef   :  { %v4068_v20 = vpop.eup %4067 }
 0x5f0   :  { %v2834_v33 = vmul.f32 %v4068_v20, %v4066_v32  ;;  %v7103_v32 = vld [vmem:[#allocation134_spill] sm:$0xff]  ;;  %v7104_v20 = vld [vmem:[#allocation135_spill] sm:$0xff] }
 0x5f2   :  { %v2836_v39 = vpack.c.bf16 %v2834_v33, %v2834_v33  ;;  %v7106_v33 = vld [vmem:[#allocation137_spill] sm:$0xff] }
 0x5f4   :  { %2869 = vmatprep.mubr.bf16.mxu0 %v2836_v39  ;;  %2910 = vmatprep.mubr.bf16.mxu1 %v2836_v39 }
 0x5f5   :  { %2870 = vmatmul.mubr.bf16.vlgmr.msra.gmra.mxu0 %v5693_v42  ;;  %2911 = vmatmul.mubr.bf16.vlgmr.msra.gmra.mxu1 %v5693_v42 }
 0x5f6   :  { %2920 = vmatpush1.bf16.msra.mxu0 %v4604_v58  ;;  %2961 = vmatpush1.bf16.msra.mxu1 %v4612_v49 }
 0x5f7   :  { %2951 = vmatprep.mubr.bf16.mxu0 %v2836_v39  ;;  %2992 = vmatprep.mubr.bf16.mxu1 %v2836_v39  ;;  %v7107_v39 = vld [vmem:[#allocation138_spill] sm:$0xff] }
 0x5f8   :  { %2921 = vmatprep.subr.bf16.mxu0 %v4882_v3  ;;  %2962 = vmatprep.subr.bf16.mxu1 %v4884_v12 }
 0x5fa   :  { %2922 = vmatpush1.bf16.msra.mxu0 %v4890_v22  ;;  %2963 = vmatpush1.bf16.msra.mxu1 %v4892_v38 }
 0x5fb   :  { %2923 = vmatprep.subr.bf16.mxu0 %v4896_v47  ;;  %2964 = vmatprep.subr.bf16.mxu1 %v4898_v52 }
 0x5fe   :  { %2924 = vmatpush1.bf16.msra.mxu0 %v4904_v51  ;;  %2965 = vmatpush1.bf16.msra.mxu1 %v4906_v15 }
 0x5ff   :  { %2925 = vmatprep.subr.bf16.mxu0 %v4910_v30  ;;  %2966 = vmatprep.subr.bf16.mxu1 %v4912_v19 }
 0x602   :  { %2926 = vmatpush1.bf16.msra.mxu0 %v4916_v9  ;;  %2967 = vmatpush1.bf16.msra.mxu1 %v4918_v43 }
 0x603   :  { %2927 = vmatprep.subr.bf16.mxu0 %v4922_v53  ;;  %2968 = vmatprep.subr.bf16.mxu1 %v4924_v59 }
 0x606   :  { %2928 = vmatpush1.bf16.msra.mxu0 %v4928_v56  ;;  %2969 = vmatpush1.bf16.msra.mxu1 %v6726_v60 }
 0x607   :  { %2929 = vmatprep.subr.bf16.mxu0 %v6727_v13  ;;  %2970 = vmatprep.subr.bf16.mxu1 %v6728_v10 }
 0x60a   :  { %2930 = vmatpush1.bf16.msra.mxu0 %v6729_v63  ;;  %2971 = vmatpush1.bf16.msra.mxu1 %v6730_v55 }
 0x60b   :  { %2931 = vmatprep.subr.bf16.mxu0 %v6841_v16  ;;  %2972 = vmatprep.subr.bf16.mxu1 %v7081_v48 }
 0x60e   :  { %2932 = vmatpush1.bf16.msra.mxu0 %v7082_v23  ;;  %2973 = vmatpush1.bf16.msra.mxu1 %v7083_v44 }
 0x60f   :  { %2933 = vmatprep.subr.bf16.mxu0 %v7084_v11  ;;  %2974 = vmatprep.subr.bf16.mxu1 %v7085_v4 }
 0x612   :  { %2934 = vmatpush1.bf16.msra.mxu0 %v7086_v27  ;;  %2975 = vmatpush1.bf16.msra.mxu1 %v7087_v5  ;;  %v7195_v5 = vld [vmem:[#allocation102_spill] sm:$0xff]  ;;  %v7196_v27 = vld [vmem:[#allocation104_spill] sm:$0xff] }
 0x613   :  { %2935 = vmatprep.subr.bf16.mxu0 %v7088_v31  ;;  %2976 = vmatprep.subr.bf16.mxu1 %v7089_v61 }
 0x616   :  { %2936 = vmatpush2.bf16.msra.mxu0 %v7090_v6  ;;  %2977 = vmatpush2.bf16.msra.mxu1 %v7091_v2 }
 0x617   :  { %2937 = vmatprep.subr.bf16.mxu0 %v7092_v45  ;;  %2978 = vmatprep.subr.bf16.mxu1 %v7093_v62 }
 0x61a   :  { %2938 = vmatpush2.bf16.msra.mxu0 %v7094_v26  ;;  %2979 = vmatpush2.bf16.msra.mxu1 %v7095_v40 }
 0x61b   :  { %2939 = vmatprep.subr.bf16.mxu0 %v7096_v17  ;;  %2980 = vmatprep.subr.bf16.mxu1 %v7097_v34  ;;  %v7108_v34 = vld [vmem:[#allocation139_spill] sm:$0xff] }
 0x61e   :  { %2940 = vmatpush2.bf16.msra.mxu0 %v7098_v37  ;;  %2981 = vmatpush2.bf16.msra.mxu1 %v7099_v8  ;;  %v7109_v37 = vld [vmem:[#allocation140_spill] sm:$0xff]  ;;  %v7110_v8 = vld [vmem:[#allocation141_spill] sm:$0xff] }
 0x61f   :  { %2941 = vmatprep.subr.bf16.mxu0 %v7100_v35  ;;  %2982 = vmatprep.subr.bf16.mxu1 %v7101_v1  ;;  %v7111_v35 = vld [vmem:[#allocation142_spill] sm:$0xff]  ;;  %v7112_v1 = vld [vmem:[#allocation143_spill] sm:$0xff] }
 0x622   :  { %2942 = vmatpush2.bf16.msra.mxu0 %v7102_v0  ;;  %2983 = vmatpush2.bf16.msra.mxu1 %v7103_v32  ;;  %v7113_v0 = vld [vmem:[#allocation144_spill] sm:$0xff]  ;;  %v7114_v32 = vld [vmem:[#allocation145_spill] sm:$0xff] }
 0x623   :  { %2943 = vmatprep.subr.bf16.mxu0 %v7104_v20  ;;  %2984 = vmatprep.subr.bf16.mxu1 %v7105_v36  ;;  %v7115_v20 = vld [vmem:[#allocation146_spill] sm:$0xff]  ;;  %v7116_v36 = vld [vmem:[#allocation147_spill] sm:$0xff] }
 0x626   :  { %2944 = vmatpush2.bf16.msra.mxu0 %v7106_v33  ;;  %2985 = vmatpush2.bf16.msra.mxu1 %v7107_v39  ;;  %v7117_v33 = vld [vmem:[#allocation148_spill] sm:$0xff]  ;;  %v7118_v39 = vld [vmem:[#allocation149_spill] sm:$0xff] }
 0x627   :  { %2945 = vmatprep.subr.bf16.mxu0 %v7108_v34  ;;  %2986 = vmatprep.subr.bf16.mxu1 %v7109_v37  ;;  %v7119_v34 = vld [vmem:[#allocation150_spill] sm:$0xff]  ;;  %v7120_v37 = vld [vmem:[#allocation16_spill] sm:$0xff] }
 0x62a   :  { %2946 = vmatpush2.bf16.msra.mxu0 %v7110_v8  ;;  %2987 = vmatpush2.bf16.msra.mxu1 %v7111_v35  ;;  %v7121_v8 = vld [vmem:[#allocation17_spill] sm:$0xff] }
 0x62b   :  { %2947 = vmatprep.subr.bf16.mxu0 %v7112_v1  ;;  %2988 = vmatprep.subr.bf16.mxu1 %v7113_v0  ;;  %v7122_v0 = vld [vmem:[#allocation18_spill] sm:$0xff]  ;;  %v7131_v1 = vld [vmem:[#allocation27_spill] sm:$0xff] }
 0x62e   :  { %2948 = vmatpush2.bf16.msra.mxu0 %v7114_v32  ;;  %2989 = vmatpush2.bf16.msra.mxu1 %v7115_v20  ;;  %v7123_v32 = vld [vmem:[#allocation19_spill] sm:$0xff]  ;;  %v7124_v20 = vld [vmem:[#allocation20_spill] sm:$0xff] }
 0x62f   :  { %2949 = vmatprep.subr.bf16.mxu0 %v7116_v36  ;;  %2990 = vmatprep.subr.bf16.mxu1 %v7117_v33  ;;  %v7125_v36 = vld [vmem:[#allocation21_spill] sm:$0xff]  ;;  %v7126_v33 = vld [vmem:[#allocation22_spill] sm:$0xff] }
 0x632   :  { %2950 = vmatpush2.bf16.msra.mxu0 %v7118_v39  ;;  %2991 = vmatpush2.bf16.msra.mxu1 %v7119_v34  ;;  %v7127_v39 = vld [vmem:[#allocation23_spill] sm:$0xff]  ;;  %v7128_v34 = vld [vmem:[#allocation24_spill] sm:$0xff] }
 0x633   :  { %3083 = vmatprep.subr.bf16.mxu0 %v7120_v37  ;;  %3124 = vmatprep.subr.bf16.mxu1 %v7121_v8  ;;  %v7129_v37 = vld [vmem:[#allocation25_spill] sm:$0xff]  ;;  %v7130_v8 = vld [vmem:[#allocation26_spill] sm:$0xff] }
 0x635   :  { %2952 = vmatmul.mubr.bf16.vlgmr.msra.gmra.mxu0 %v5693_v42  ;;  %2993 = vmatmul.mubr.bf16.vlgmr.msra.gmra.mxu1 %v5693_v42  ;;  %v7132_v42 = vld [vmem:[#allocation28_spill] sm:$0xff] }
 0x636   :  { %3084 = vmatpush1.bf16.msra.mxu0 %v7122_v0  ;;  %3125 = vmatpush1.bf16.msra.mxu1 %v7123_v32  ;;  %v7133_v0 = vld [vmem:[#allocation29_spill] sm:$0xff]  ;;  %v7134_v32 = vld [vmem:[#allocation30_spill] sm:$0xff] }
 0x637   :  { %3085 = vmatprep.subr.bf16.mxu0 %v7124_v20  ;;  %3126 = vmatprep.subr.bf16.mxu1 %v7125_v36  ;;  %v7135_v20 = vld [vmem:[#allocation31_spill] sm:$0xff]  ;;  %v7136_v36 = vld [vmem:[#allocation32_spill] sm:$0xff] }
 0x63a   :  { %3086 = vmatpush1.bf16.msra.mxu0 %v7126_v33  ;;  %3127 = vmatpush1.bf16.msra.mxu1 %v7127_v39  ;;  %v7137_v33 = vld [vmem:[#allocation33_spill] sm:$0xff]  ;;  %v7138_v39 = vld [vmem:[#allocation34_spill] sm:$0xff] }
 0x63b   :  { %3087 = vmatprep.subr.bf16.mxu0 %v7128_v34  ;;  %3128 = vmatprep.subr.bf16.mxu1 %v7129_v37  ;;  %v7139_v34 = vld [vmem:[#allocation35_spill] sm:$0xff]  ;;  %v7140_v37 = vld [vmem:[#allocation36_spill] sm:$0xff] }
 0x63e   :  { %3088 = vmatpush1.bf16.msra.mxu0 %v7130_v8  ;;  %3129 = vmatpush1.bf16.msra.mxu1 %v7131_v1  ;;  %v7141_v8 = vld [vmem:[#allocation37_spill] sm:$0xff]  ;;  %v7142_v1 = vld [vmem:[#allocation38_spill] sm:$0xff] }
 0x63f   :  { %3089 = vmatprep.subr.bf16.mxu0 %v7132_v42  ;;  %3130 = vmatprep.subr.bf16.mxu1 %v7133_v0  ;;  %v7143_v42 = vld [vmem:[#allocation39_spill] sm:$0xff]  ;;  %v7144_v0 = vld [vmem:[#allocation40_spill] sm:$0xff] }
 0x642   :  { %3090 = vmatpush1.bf16.msra.mxu0 %v7134_v32  ;;  %3131 = vmatpush1.bf16.msra.mxu1 %v7135_v20  ;;  %v7145_v32 = vld [vmem:[#allocation41_spill] sm:$0xff]  ;;  %v7146_v20 = vld [vmem:[#allocation42_spill] sm:$0xff] }
 0x643   :  { %3091 = vmatprep.subr.bf16.mxu0 %v7136_v36  ;;  %3132 = vmatprep.subr.bf16.mxu1 %v7137_v33  ;;  %v7147_v36 = vld [vmem:[#allocation43_spill] sm:$0xff]  ;;  %v7148_v33 = vld [vmem:[#allocation44_spill] sm:$0xff] }
 0x646   :  { %3092 = vmatpush1.bf16.msra.mxu0 %v7138_v39  ;;  %3133 = vmatpush1.bf16.msra.mxu1 %v7139_v34  ;;  %v7149_v39 = vld [vmem:[#allocation45_spill] sm:$0xff]  ;;  %v7150_v34 = vld [vmem:[#allocation46_spill] sm:$0xff] }
 0x647   :  { %3093 = vmatprep.subr.bf16.mxu0 %v7140_v37  ;;  %3134 = vmatprep.subr.bf16.mxu1 %v7141_v8  ;;  %v7151_v37 = vld [vmem:[#allocation47_spill] sm:$0xff]  ;;  %v7152_v8 = vld [vmem:[#allocation48_spill] sm:$0xff] }
 0x64a   :  { %3094 = vmatpush1.bf16.msra.mxu0 %v7142_v1  ;;  %3135 = vmatpush1.bf16.msra.mxu1 %v7143_v42  ;;  %v7153_v1 = vld [vmem:[#allocation49_spill] sm:$0xff]  ;;  %v7154_v42 = vld [vmem:[#allocation50_spill] sm:$0xff] }
 0x64b   :  { %3095 = vmatprep.subr.bf16.mxu0 %v7144_v0  ;;  %3136 = vmatprep.subr.bf16.mxu1 %v7145_v32  ;;  %v7155_v0 = vld [vmem:[#allocation51_spill] sm:$0xff]  ;;  %v7156_v32 = vld [vmem:[#allocation52_spill] sm:$0xff] }
 0x64e   :  { %3096 = vmatpush1.bf16.msra.mxu0 %v7146_v20  ;;  %3137 = vmatpush1.bf16.msra.mxu1 %v7147_v36  ;;  %v7157_v20 = vld [vmem:[#allocation53_spill] sm:$0xff]  ;;  %v7158_v36 = vld [vmem:[#allocation54_spill] sm:$0xff] }
 0x64f   :  { %3097 = vmatprep.subr.bf16.mxu0 %v7148_v33  ;;  %3138 = vmatprep.subr.bf16.mxu1 %v7149_v39  ;;  %v7159_v33 = vld [vmem:[#allocation55_spill] sm:$0xff]  ;;  %v7160_v39 = vld [vmem:[#allocation56_spill] sm:$0xff] }
 0x652   :  { %3098 = vmatpush1.bf16.msra.mxu0 %v7150_v34  ;;  %3139 = vmatpush1.bf16.msra.mxu1 %v7151_v37  ;;  %v7161_v34 = vld [vmem:[#allocation57_spill] sm:$0xff]  ;;  %v7162_v37 = vld [vmem:[#allocation58_spill] sm:$0xff] }
 0x653   :  { %3099 = vmatprep.subr.bf16.mxu0 %v7152_v8  ;;  %3140 = vmatprep.subr.bf16.mxu1 %v7153_v1  ;;  %v7163_v8 = vld [vmem:[#allocation59_spill] sm:$0xff]  ;;  %v7164_v1 = vld [vmem:[#allocation60_spill] sm:$0xff] }
 0x656   :  { %3100 = vmatpush2.bf16.msra.mxu0 %v7154_v42  ;;  %3141 = vmatpush2.bf16.msra.mxu1 %v7155_v0  ;;  %v7165_v42 = vld [vmem:[#allocation61_spill] sm:$0xff]  ;;  %v7166_v0 = vld [vmem:[#allocation62_spill] sm:$0xff] }
 0x657   :  { %3101 = vmatprep.subr.bf16.mxu0 %v7156_v32  ;;  %3142 = vmatprep.subr.bf16.mxu1 %v7157_v20  ;;  %v7167_v32 = vld [vmem:[#allocation63_spill] sm:$0xff]  ;;  %v7168_v20 = vld [vmem:[#allocation64_spill] sm:$0xff] }
 0x65a   :  { %3102 = vmatpush2.bf16.msra.mxu0 %v7158_v36  ;;  %3143 = vmatpush2.bf16.msra.mxu1 %v7159_v33  ;;  %v7169_v36 = vld [vmem:[#allocation65_spill] sm:$0xff]  ;;  %v7170_v33 = vld [vmem:[#allocation66_spill] sm:$0xff] }
 0x65b   :  { %3103 = vmatprep.subr.bf16.mxu0 %v7160_v39  ;;  %3144 = vmatprep.subr.bf16.mxu1 %v7161_v34  ;;  %v7171_v39 = vld [vmem:[#allocation67_spill] sm:$0xff]  ;;  %v7172_v34 = vld [vmem:[#allocation68_spill] sm:$0xff] }
 0x65e   :  { %3104 = vmatpush2.bf16.msra.mxu0 %v7162_v37  ;;  %3145 = vmatpush2.bf16.msra.mxu1 %v7163_v8  ;;  %v7173_v37 = vld [vmem:[#allocation69_spill] sm:$0xff]  ;;  %v7174_v8 = vld [vmem:[#allocation70_spill] sm:$0xff] }
 0x65f   :  { %3105 = vmatprep.subr.bf16.mxu0 %v7164_v1  ;;  %3146 = vmatprep.subr.bf16.mxu1 %v7165_v42  ;;  %v7175_v1 = vld [vmem:[#allocation71_spill] sm:$0xff]  ;;  %v7176_v42 = vld [vmem:[#allocation72_spill] sm:$0xff] }
 0x662   :  { %3106 = vmatpush2.bf16.msra.mxu0 %v7166_v0  ;;  %3147 = vmatpush2.bf16.msra.mxu1 %v7167_v32  ;;  %v7177_v0 = vld [vmem:[#allocation73_spill] sm:$0xff]  ;;  %v7178_v32 = vld [vmem:[#allocation74_spill] sm:$0xff] }
 0x663   :  { %3107 = vmatprep.subr.bf16.mxu0 %v7168_v20  ;;  %3148 = vmatprep.subr.bf16.mxu1 %v7169_v36  ;;  %v7179_v20 = vld [vmem:[#allocation75_spill] sm:$0xff]  ;;  %v7180_v36 = vld [vmem:[#allocation76_spill] sm:$0xff] }
 0x666   :  { %3108 = vmatpush2.bf16.msra.mxu0 %v7170_v33  ;;  %3149 = vmatpush2.bf16.msra.mxu1 %v7171_v39  ;;  %v7181_v33 = vld [vmem:[#allocation77_spill] sm:$0xff]  ;;  %v7182_v39 = vld [vmem:[#allocation78_spill] sm:$0xff] }
 0x667   :  { %3109 = vmatprep.subr.bf16.mxu0 %v7172_v34  ;;  %3150 = vmatprep.subr.bf16.mxu1 %v7173_v37  ;;  %v7183_v34 = vld [vmem:[#allocation79_spill] sm:$0xff]  ;;  %v7184_v37 = vld [vmem:[#allocation80_spill] sm:$0xff] }
 0x66a   :  { %3110 = vmatpush2.bf16.msra.mxu0 %v7174_v8  ;;  %3151 = vmatpush2.bf16.msra.mxu1 %v7175_v1  ;;  %v7185_v8 = vld [vmem:[#allocation81_spill] sm:$0xff]  ;;  %v484_v1 = vpop.permute.xlu1 %483 }
 0x66b   :  { %3111 = vmatprep.subr.bf16.mxu0 %v7176_v42  ;;  %3152 = vmatprep.subr.bf16.mxu1 %v7177_v0  ;;  %v7186_v42 = vld [vmem:[#allocation95_spill] sm:$0xff] }
 0x66c   :  { %v554_v35 = vmul.f32 %v7186_v42, %v484_v1  ;;  %v7187_v0 = vld [vmem:[#allocation87_spill] sm:$0xff] }
 0x66d   :  { %v555_v17 = vmul.f32 %v7187_v0, %v484_v1 }
 0x66e   :  { %3112 = vmatpush2.bf16.msra.mxu0 %v7178_v32  ;;  %3153 = vmatpush2.bf16.msra.mxu1 %v7179_v20  ;;  %v7188_v32 = vld [vmem:[#allocation96_spill] sm:$0xff]  ;;  %v752_v62 = vpop.permute.xlu1 %751 }
 0x66f   :  { %3113 = vmatprep.subr.bf16.mxu0 %v7180_v36  ;;  %3154 = vmatprep.subr.bf16.mxu1 %v7181_v33  ;;  %v556_v40 = vmul.f32 %v7188_v32, %v484_v1  ;;  %v7189_v20 = vld [vmem:[#allocation88_spill] sm:$0xff]  ;;  %v620_v36 = vpop.permute.xlu0 %619  ;;  %v7190_v33 = vld [vmem:[#allocation94_spill] sm:$0xff]  ;;  %v587_v42 = vadd.f32 %v555_v17, %v7195_v5 }
 0x670   :  { %v557_v26 = vmul.f32 %v7189_v20, %v484_v1  ;;  %v686_v45 = vmul.f32 %v7190_v33, %v620_v36  ;;  %v7197_v33 = vld [vmem:[#allocation98_spill] sm:$0xff] }
 0x671   :  { %v588_v0 = vadd.f32 %v556_v40, %v7075_v28  ;;  %v818_v23 = vmul.f32 %v7197_v33, %v752_v62 }
 0x672   :  { %3114 = vmatpush2.bf16.msra.mxu0 %v7182_v39  ;;  %3155 = vmatpush2.bf16.msra.mxu1 %v7183_v34  ;;  %v7191_v39 = vld [vmem:[#allocation91_spill] sm:$0xff]  ;;  %v7192_v34 = vld [vmem:[#allocation93_spill] sm:$0xff]  ;;  %v589_v32 = vadd.f32 %v557_v26, %v7196_v27  ;;  %v884_v44 = vpop.permute.xlu1 %883 }
 0x673   :  { %3165 = vmatprep.subr.bf16.mxu0 %v7184_v37  ;;  %3206 = vmatprep.subr.bf16.mxu1 %v7185_v8  ;;  %v687_v2 = vmul.f32 %v7191_v39, %v620_v36  ;;  %v688_v6 = vmul.f32 %v7192_v34, %v620_v36  ;;  %v7193_v37 = vld [vmem:[#allocation92_spill] sm:$0xff]  ;;  %v7194_v8 = vld [vmem:[#allocation101_spill] sm:$0xff]  ;;  %v951_v17 = vmul.f32 %v6959_v25, %v884_v44 }
 0x674   :  { %v689_v61 = vmul.f32 %v7193_v37, %v620_v36  ;;  %v586_v31 = vadd.f32 %v554_v35, %v7194_v8  ;;  %v7198_v39 = vld [vmem:[#allocation85_spill] sm:$0xff]  ;;  %v821_v36 = vmul.f32 %v7080_v29, %v752_v62  ;;  %v950_v35 = vmul.f32 %v6958_v46, %v884_v44 }
 0x675   :  { %v719_v1 = vadd.f32 %v687_v2, %v587_v42  ;;  %v720_v20 = vadd.f32 %v688_v6, %v588_v0  ;;  %v819_v48 = vmul.f32 %v7198_v39, %v752_v62  ;;  %v7199_v34 = vld [vmem:[#allocation97_spill] sm:$0xff]  ;;  %v952_v40 = vmul.f32 %v6960_v57, %v884_v44 }
 0x676   :  { %v718_v4 = vadd.f32 %v686_v45, %v586_v31  ;;  %v721_v11 = vadd.f32 %v689_v61, %v589_v32  ;;  %v820_v16 = vmul.f32 %v7199_v34, %v752_v62  ;;  %v953_v31 = vmul.f32 %v4775_v54, %v884_v44 }
 0x677   :  { %v851_v6 = vadd.f32 %v819_v48, %v719_v1 }
 0x678   :  { %v850_v2 = vadd.f32 %v818_v23, %v718_v4  ;;  %v852_v61 = vadd.f32 %v820_v16, %v720_v20  ;;  %v853_v45 = vadd.f32 %v821_v36, %v721_v11 }
 0x679   :  { %v983_v0 = vadd.f32 %v951_v17, %v851_v6 }
 0x67a   :  { %v982_v26 = vadd.f32 %v950_v35, %v850_v2  ;;  %v984_v32 = vadd.f32 %v952_v40, %v852_v61  ;;  %v985_v42 = vadd.f32 %v953_v31, %v853_v45 }
 0x67c   :  { %v1112_v39 = vcombine.low %v982_v26, %v983_v0  ;;  %v1113_v34 = vcombine.low %v984_v32, %v985_v42 }
 0x67e   :  { %v1120_v62 = vrot.slane %v1112_v39, %v4873_v24  ;;  %v1127_v46 = vrot.slane %v1113_v34, %v4873_v24 }
 0x680   :  { %v1128_v29 = vcombine.low %v1120_v62, %v1127_v46  ;;  %v3881_v35 = vcombine.low %v1127_v46, %v1127_v46 }
 0x682   :  { %v3011_v25 = vrot.slane %v1128_v29, %v4873_v24  ;;  %v3018_v34 = vrot.slane %v3881_v35, %v4873_v24 }
 0x684   :  { %v3019_v23 = vcombine.high %v3011_v25, %v3011_v25  ;;  %v3020_v40 = vcombine.high %v3018_v34, %v3018_v34 }
 0x6b5   :  { %v2871_v57 = vpop.f32.mrf.mxu0  ;;  %v2912_v33 = vpop.f32.mrf.mxu1 }
 0x6b6   :  { %v3025_v44 = vadd.f32 %v3011_v25, %v2871_v57  ;;  %v3027_v35 = vadd.f32 %v3018_v34, %v2912_v33 }
 0x6b7   :  { %v2873_v48 = vpop.f32.mrf.mxu0  ;;  %v2914_v16 = vpop.f32.mrf.mxu1 }
 0x6b8   :  { %v3856_v11 = vmul.f32 -1.442695, %v3025_v44  ;;  %v3026_v4 = vadd.f32 %v3019_v23, %v2873_v48  ;;  %v3028_v29 = vadd.f32 %v3020_v40, %v2914_v16 }
 0x6b9   :  { %v2875_v20 = vpop.f32.mrf.mxu0  ;;  %v2916_v1 = vpop.f32.mrf.mxu1 }
 0x6ba   :  { %4069 = vpow2.f32 %v3856_v11  ;;  %v3857_v36 = vmul.f32 -1.442695, %v3026_v4 }
 0x6bb   :  { %v2876_v17 = vpop.f32.mrf.mxu0  ;;  %v2917_v39 = vpop.f32.mrf.mxu1 }
 0x6bc   :  { %4071 = vpow2.f32 %v3857_v36  ;;  %v3858_v17 = vmul.f32 -1.442695, %v3027_v35  ;;  %v7203_v35 = vld [vmem:[#allocation114_spill] sm:$0xff] }
 0x6bd   :  { %4073 = vtanh.f32 %v3028_v29 }
 0x6c7   :  { %v4070_v31 = vpop.eup %4069 }
 0x6c8   :  { %v3038_v2 = vadd.f32 1.0, %v4070_v31 }
 0x6c9   :  { %v4072_v57 = vpop.eup %4071 }
 0x6ca   :  { %4075 = vrcp.f32 %v3038_v2  ;;  %v3039_v25 = vadd.f32 1.0, %v4072_v57  ;;  %v4074_v6 = vpop.eup %4073 }
 0x6cc   :  { %4077 = vrcp.f32 %v3039_v25 }
 0x6d7   :  { %v4076_v61 = vpop.eup %4075 }
 0x6d8   :  { %v3049_v45 = vmul.f32 %v4076_v61, %v4074_v6 }
 0x6d9   :  { %v4078_v26 = vpop.eup %4077 }
 0x6da   :  { %v3048_v46 = vmul.f32 %v4078_v26, %v5682_v14 }
 0x6dc   :  { %v5852_v0 = vadd.f32 %v3049_v45, %v3048_v46 }
 0x6f5   :  { %v2953_v32 = vpop.f32.mrf.mxu0  ;;  %v2994_v42 = vpop.f32.mrf.mxu1 }
 0x6f6   :  { %v3053_v62 = vadd.f32 %v2953_v32, %v5164_v7  ;;  %v3055_v14 = vadd.f32 %v2994_v42, %v5172_v18 }
 0x6f7   :  { %v2955_v44 = vpop.f32.mrf.mxu0  ;;  %v2996_v23 = vpop.f32.mrf.mxu1 }
 0x6f8   :  { %v3859_v48 = vmul.f32 -1.442695, %v3053_v62  ;;  %v3054_v16 = vadd.f32 %v2955_v44, %v5167_v41  ;;  %v3861_v39 = vmul.f32 -1.442695, %v3055_v14  ;;  %v3056_v29 = vadd.f32 %v2996_v23, %v5176_v21  ;;  %v7204_v14 = vld [vmem:[#allocation115_spill] sm:$0xff] }
 0x6f9   :  { %v2957_v11 = vpop.f32.mrf.mxu0  ;;  %v2998_v4 = vpop.f32.mrf.mxu1 }
 0x6fa   :  { %4079 = vpow2.f32 %v3859_v48  ;;  %v3860_v20 = vmul.f32 -1.442695, %v3054_v16 }
 0x6fb   :  { %v2958_v1 = vpop.f32.mrf.mxu0  ;;  %v2999_v36 = vpop.f32.mrf.mxu1 }
 0x6fc   :  { %4081 = vpow2.f32 %v3860_v20  ;;  %v7201_v1 = vld [vmem:[#allocation112_spill] sm:$0xff]  ;;  %v7202_v36 = vld [vmem:[#allocation113_spill] sm:$0xff] }
 0x6fd   :  { %4083 = vpow2.f32 %v3858_v17  ;;  %v7205_v17 = vld [vmem:[#allocation116_spill] sm:$0xff] }
 0x6fe   :  { %4085 = vpow2.f32 %v3861_v39  ;;  %v7206_v39 = vld [vmem:[#allocation117_spill] sm:$0xff] }
 0x707   :  { %v4080_v40 = vpop.eup %4079 }
 0x708   :  { %v3066_v31 = vadd.f32 1.0, %v4080_v40  ;;  %v7207_v40 = vld [vmem:[#allocation118_spill] sm:$0xff] }
 0x709   :  { %v4082_v2 = vpop.eup %4081 }
 0x70a   :  { %4087 = vrcp.f32 %v3066_v31  ;;  %v3067_v57 = vadd.f32 1.0, %v4082_v2  ;;  %v4084_v25 = vpop.eup %4083  ;;  %v7209_v31 = vld [vmem:[#allocation120_spill] sm:$0xff]  ;;  %v7210_v2 = vld [vmem:[#allocation121_spill] sm:$0xff] }
 0x70b   :  { %4089 = vtanh.f32 %v3056_v29  ;;  %v4086_v6 = vpop.eup %4085  ;;  %v3040_v33 = vadd.f32 1.0, %v4084_v25  ;;  %v7208_v29 = vld [vmem:[#allocation119_spill] sm:$0xff] }
 0x70c   :  { %4091 = vrcp.f32 %v3067_v57  ;;  %v3068_v26 = vadd.f32 1.0, %v4086_v6  ;;  %v7211_v57 = vld [vmem:[#allocation122_spill] sm:$0xff]  ;;  %v7212_v25 = vld [vmem:[#allocation123_spill] sm:$0xff]  ;;  %v7213_v6 = vld [vmem:[#allocation124_spill] sm:$0xff] }
 0x70d   :  { %4093 = vtanh.f32 %v5852_v0 }
 0x70e   :  { %4095 = vrcp.f32 %v3040_v33  ;;  %v7216_v33 = vld [vmem:[#allocation127_spill] sm:$0xff] }
 0x70f   :  { %4097 = vrcp.f32 %v3068_v26  ;;  %v7218_v26 = vld [vmem:[#allocation129_spill] sm:$0xff] }
 0x717   :  { %v4088_v61 = vpop.eup %4087 }
 0x718   :  { %v4090_v45 = vpop.eup %4089 }
 0x719   :  { %v4092_v34 = vpop.eup %4091  ;;  %v3077_v32 = vmul.f32 %v4090_v45, %v4088_v61  ;;  %v7214_v61 = vld [vmem:[#allocation125_spill] sm:$0xff]  ;;  %v7215_v45 = vld [vmem:[#allocation126_spill] sm:$0xff] }
 0x71a   :  { %v3076_v46 = vmul.f32 %v4092_v34, %v5690_v50  ;;  %v4094_v62 = vpop.eup %4093  ;;  %v7200_v50 = vld [vmem:[#allocation111_spill] sm:$0xff]  ;;  %v7217_v34 = vld [vmem:[#allocation128_spill] sm:$0xff] }
 0x71b   :  { %v4096_v44 = vpop.eup %4095 }
 0x71c   :  { %v5860_v42 = vadd.f32 %v3077_v32, %v3076_v46  ;;  %v4098_v23 = vpop.eup %4097  ;;  %v3052_v16 = vmul.f32 %v4096_v44, %v4094_v62  ;;  %v7219_v46 = vld [vmem:[#allocation130_spill] sm:$0xff]  ;;  %v7220_v32 = vld [vmem:[#allocation131_spill] sm:$0xff]  ;;  %v7221_v62 = vld [vmem:[#allocation132_spill] sm:$0xff] }
 0x71d   :  { %v7222_v44 = vld [vmem:[#allocation133_spill] sm:$0xff] }
 0x71e   :  { %4099 = vtanh.f32 %v5860_v42  ;;  %v5863_v20 = vpack.c.bf16 %v3052_v16, %v3052_v16  ;;  %v7225_v16 = vld [vmem:[#allocation136_spill] sm:$0xff] }
 0x72b   :  { %v4100_v48 = vpop.eup %4099 }
 0x72c   :  { %v3080_v11 = vmul.f32 %v4100_v48, %v4098_v23  ;;  %v7223_v23 = vld [vmem:[#allocation134_spill] sm:$0xff]  ;;  %v7224_v48 = vld [vmem:[#allocation135_spill] sm:$0xff] }
 0x72e   :  { %v3082_v4 = vpack.c.bf16 %v3080_v11, %v3080_v11  ;;  %v7226_v11 = vld [vmem:[#allocation137_spill] sm:$0xff] }
 0x730   :  { %3115 = vmatprep.mubr.bf16.mxu0 %v3082_v4  ;;  %3156 = vmatprep.mubr.bf16.mxu1 %v3082_v4 }
 0x731   :  { %3116 = vmatmul.mubr.bf16.vlgmr.msra.gmra.mxu0 %v5863_v20  ;;  %3157 = vmatmul.mubr.bf16.vlgmr.msra.gmra.mxu1 %v5863_v20 }
 0x732   :  { %3166 = vmatpush1.bf16.msra.mxu0 %v4604_v58  ;;  %3207 = vmatpush1.bf16.msra.mxu1 %v4612_v49 }
 0x733   :  { %3197 = vmatprep.mubr.bf16.mxu0 %v3082_v4  ;;  %3238 = vmatprep.mubr.bf16.mxu1 %v3082_v4  ;;  %v7227_v4 = vld [vmem:[#allocation138_spill] sm:$0xff] }
 0x734   :  { %3167 = vmatprep.subr.bf16.mxu0 %v4882_v3  ;;  %3208 = vmatprep.subr.bf16.mxu1 %v4884_v12 }
 0x736   :  { %3168 = vmatpush1.bf16.msra.mxu0 %v4890_v22  ;;  %3209 = vmatpush1.bf16.msra.mxu1 %v4892_v38 }
 0x737   :  { %3169 = vmatprep.subr.bf16.mxu0 %v4896_v47  ;;  %3210 = vmatprep.subr.bf16.mxu1 %v4898_v52 }
 0x73a   :  { %3170 = vmatpush1.bf16.msra.mxu0 %v4904_v51  ;;  %3211 = vmatpush1.bf16.msra.mxu1 %v4906_v15 }
 0x73b   :  { %3171 = vmatprep.subr.bf16.mxu0 %v4910_v30  ;;  %3212 = vmatprep.subr.bf16.mxu1 %v4912_v19 }
 0x73e   :  { %3172 = vmatpush1.bf16.msra.mxu0 %v4916_v9  ;;  %3213 = vmatpush1.bf16.msra.mxu1 %v4918_v43 }
 0x73f   :  { %3173 = vmatprep.subr.bf16.mxu0 %v4922_v53  ;;  %3214 = vmatprep.subr.bf16.mxu1 %v4924_v59 }
 0x742   :  { %3174 = vmatpush1.bf16.msra.mxu0 %v4928_v56  ;;  %3215 = vmatpush1.bf16.msra.mxu1 %v6726_v60 }
 0x743   :  { %3175 = vmatprep.subr.bf16.mxu0 %v6727_v13  ;;  %3216 = vmatprep.subr.bf16.mxu1 %v6728_v10 }
 0x746   :  { %3176 = vmatpush1.bf16.msra.mxu0 %v6729_v63  ;;  %3217 = vmatpush1.bf16.msra.mxu1 %v6730_v55 }
 0x747   :  { %3177 = vmatprep.subr.bf16.mxu0 %v7200_v50  ;;  %3218 = vmatprep.subr.bf16.mxu1 %v7201_v1 }
 0x74a   :  { %3178 = vmatpush1.bf16.msra.mxu0 %v7202_v36  ;;  %3219 = vmatpush1.bf16.msra.mxu1 %v7203_v35 }
 0x74b   :  { %3179 = vmatprep.subr.bf16.mxu0 %v7204_v14  ;;  %3220 = vmatprep.subr.bf16.mxu1 %v7205_v17 }
 0x74e   :  { %3180 = vmatpush1.bf16.msra.mxu0 %v7206_v39  ;;  %3221 = vmatpush1.bf16.msra.mxu1 %v7207_v40  ;;  %v7315_v40 = vld [vmem:[#allocation97_spill] sm:$0xff]  ;;  %v7316_v39 = vld [vmem:[#allocation86_spill] sm:$0xff] }
 0x74f   :  { %3181 = vmatprep.subr.bf16.mxu0 %v7208_v29  ;;  %3222 = vmatprep.subr.bf16.mxu1 %v7209_v31 }
 0x752   :  { %3182 = vmatpush2.bf16.msra.mxu0 %v7210_v2  ;;  %3223 = vmatpush2.bf16.msra.mxu1 %v7211_v57 }
 0x753   :  { %3183 = vmatprep.subr.bf16.mxu0 %v7212_v25  ;;  %3224 = vmatprep.subr.bf16.mxu1 %v7213_v6 }
 0x756   :  { %3184 = vmatpush2.bf16.msra.mxu0 %v7214_v61  ;;  %3225 = vmatpush2.bf16.msra.mxu1 %v7215_v45  ;;  %v7308_v45 = vld [vmem:[#allocation96_spill] sm:$0xff] }
 0x757   :  { %3185 = vmatprep.subr.bf16.mxu0 %v7216_v33  ;;  %3226 = vmatprep.subr.bf16.mxu1 %v7217_v34  ;;  %v7228_v34 = vld [vmem:[#allocation139_spill] sm:$0xff]  ;;  %v7309_v61 = vld [vmem:[#allocation88_spill] sm:$0xff] }
 0x758   :  { %v7307_v33 = vld [vmem:[#allocation87_spill] sm:$0xff] }
 0x75a   :  { %3186 = vmatpush2.bf16.msra.mxu0 %v7218_v26  ;;  %3227 = vmatpush2.bf16.msra.mxu1 %v7219_v46  ;;  %v7229_v26 = vld [vmem:[#allocation140_spill] sm:$0xff]  ;;  %v7230_v46 = vld [vmem:[#allocation141_spill] sm:$0xff] }
 0x75b   :  { %3187 = vmatprep.subr.bf16.mxu0 %v7220_v32  ;;  %3228 = vmatprep.subr.bf16.mxu1 %v7221_v62  ;;  %v7231_v32 = vld [vmem:[#allocation142_spill] sm:$0xff]  ;;  %v7232_v62 = vld [vmem:[#allocation143_spill] sm:$0xff] }
 0x75e   :  { %3188 = vmatpush2.bf16.msra.mxu0 %v7222_v44  ;;  %3229 = vmatpush2.bf16.msra.mxu1 %v7223_v23  ;;  %v7233_v44 = vld [vmem:[#allocation144_spill] sm:$0xff]  ;;  %v7234_v23 = vld [vmem:[#allocation145_spill] sm:$0xff] }
 0x75f   :  { %3189 = vmatprep.subr.bf16.mxu0 %v7224_v48  ;;  %3230 = vmatprep.subr.bf16.mxu1 %v7225_v16  ;;  %v7235_v48 = vld [vmem:[#allocation146_spill] sm:$0xff]  ;;  %v7236_v16 = vld [vmem:[#allocation147_spill] sm:$0xff] }
 0x762   :  { %3190 = vmatpush2.bf16.msra.mxu0 %v7226_v11  ;;  %3231 = vmatpush2.bf16.msra.mxu1 %v7227_v4  ;;  %v7237_v11 = vld [vmem:[#allocation148_spill] sm:$0xff]  ;;  %v7238_v4 = vld [vmem:[#allocation149_spill] sm:$0xff] }
 0x763   :  { %3191 = vmatprep.subr.bf16.mxu0 %v7228_v34  ;;  %3232 = vmatprep.subr.bf16.mxu1 %v7229_v26  ;;  %v7239_v34 = vld [vmem:[#allocation150_spill] sm:$0xff]  ;;  %v7240_v26 = vld [vmem:[#allocation16_spill] sm:$0xff] }
 0x766   :  { %3192 = vmatpush2.bf16.msra.mxu0 %v7230_v46  ;;  %3233 = vmatpush2.bf16.msra.mxu1 %v7231_v32  ;;  %v7241_v46 = vld [vmem:[#allocation17_spill] sm:$0xff]  ;;  %v7306_v32 = vld [vmem:[#allocation95_spill] sm:$0xff] }
 0x767   :  { %3193 = vmatprep.subr.bf16.mxu0 %v7232_v62  ;;  %3234 = vmatprep.subr.bf16.mxu1 %v7233_v44  ;;  %v7242_v44 = vld [vmem:[#allocation18_spill] sm:$0xff]  ;;  %v7251_v62 = vld [vmem:[#allocation27_spill] sm:$0xff] }
 0x76a   :  { %3194 = vmatpush2.bf16.msra.mxu0 %v7234_v23  ;;  %3235 = vmatpush2.bf16.msra.mxu1 %v7235_v48  ;;  %v7243_v23 = vld [vmem:[#allocation19_spill] sm:$0xff]  ;;  %v7244_v48 = vld [vmem:[#allocation20_spill] sm:$0xff] }
 0x76b   :  { %3195 = vmatprep.subr.bf16.mxu0 %v7236_v16  ;;  %3236 = vmatprep.subr.bf16.mxu1 %v7237_v11  ;;  %v7245_v16 = vld [vmem:[#allocation21_spill] sm:$0xff]  ;;  %v7246_v11 = vld [vmem:[#allocation22_spill] sm:$0xff] }
 0x76e   :  { %3196 = vmatpush2.bf16.msra.mxu0 %v7238_v4  ;;  %3237 = vmatpush2.bf16.msra.mxu1 %v7239_v34  ;;  %v7247_v4 = vld [vmem:[#allocation23_spill] sm:$0xff]  ;;  %v7248_v34 = vld [vmem:[#allocation24_spill] sm:$0xff] }
 0x76f   :  { %3329 = vmatprep.subr.bf16.mxu0 %v7240_v26  ;;  %3370 = vmatprep.subr.bf16.mxu1 %v7241_v46  ;;  %v7249_v26 = vld [vmem:[#allocation25_spill] sm:$0xff]  ;;  %v7250_v46 = vld [vmem:[#allocation26_spill] sm:$0xff] }
 0x771   :  { %3198 = vmatmul.mubr.bf16.vlgmr.msra.gmra.mxu0 %v5863_v20  ;;  %3239 = vmatmul.mubr.bf16.vlgmr.msra.gmra.mxu1 %v5863_v20  ;;  %v7252_v20 = vld [vmem:[#allocation28_spill] sm:$0xff] }
 0x772   :  { %3330 = vmatpush1.bf16.msra.mxu0 %v7242_v44  ;;  %3371 = vmatpush1.bf16.msra.mxu1 %v7243_v23  ;;  %v7253_v44 = vld [vmem:[#allocation29_spill] sm:$0xff]  ;;  %v7254_v23 = vld [vmem:[#allocation30_spill] sm:$0xff] }
 0x773   :  { %3331 = vmatprep.subr.bf16.mxu0 %v7244_v48  ;;  %3372 = vmatprep.subr.bf16.mxu1 %v7245_v16  ;;  %v7255_v48 = vld [vmem:[#allocation31_spill] sm:$0xff]  ;;  %v7256_v16 = vld [vmem:[#allocation32_spill] sm:$0xff] }
 0x776   :  { %3332 = vmatpush1.bf16.msra.mxu0 %v7246_v11  ;;  %3373 = vmatpush1.bf16.msra.mxu1 %v7247_v4  ;;  %v7257_v11 = vld [vmem:[#allocation33_spill] sm:$0xff]  ;;  %v7258_v4 = vld [vmem:[#allocation34_spill] sm:$0xff] }
 0x777   :  { %3333 = vmatprep.subr.bf16.mxu0 %v7248_v34  ;;  %3374 = vmatprep.subr.bf16.mxu1 %v7249_v26  ;;  %v7259_v34 = vld [vmem:[#allocation35_spill] sm:$0xff]  ;;  %v7260_v26 = vld [vmem:[#allocation36_spill] sm:$0xff] }
 0x77a   :  { %3334 = vmatpush1.bf16.msra.mxu0 %v7250_v46  ;;  %3375 = vmatpush1.bf16.msra.mxu1 %v7251_v62  ;;  %v7261_v46 = vld [vmem:[#allocation37_spill] sm:$0xff]  ;;  %v7262_v62 = vld [vmem:[#allocation38_spill] sm:$0xff] }
 0x77b   :  { %3335 = vmatprep.subr.bf16.mxu0 %v7252_v20  ;;  %3376 = vmatprep.subr.bf16.mxu1 %v7253_v44  ;;  %v7263_v20 = vld [vmem:[#allocation39_spill] sm:$0xff]  ;;  %v7264_v44 = vld [vmem:[#allocation40_spill] sm:$0xff] }
 0x77e   :  { %3336 = vmatpush1.bf16.msra.mxu0 %v7254_v23  ;;  %3377 = vmatpush1.bf16.msra.mxu1 %v7255_v48  ;;  %v7265_v23 = vld [vmem:[#allocation41_spill] sm:$0xff]  ;;  %v7266_v48 = vld [vmem:[#allocation42_spill] sm:$0xff] }
 0x77f   :  { %3337 = vmatprep.subr.bf16.mxu0 %v7256_v16  ;;  %3378 = vmatprep.subr.bf16.mxu1 %v7257_v11  ;;  %v7267_v16 = vld [vmem:[#allocation43_spill] sm:$0xff]  ;;  %v7268_v11 = vld [vmem:[#allocation44_spill] sm:$0xff] }
 0x782   :  { %3338 = vmatpush1.bf16.msra.mxu0 %v7258_v4  ;;  %3379 = vmatpush1.bf16.msra.mxu1 %v7259_v34  ;;  %v7269_v4 = vld [vmem:[#allocation45_spill] sm:$0xff]  ;;  %v7270_v34 = vld [vmem:[#allocation46_spill] sm:$0xff] }
 0x783   :  { %3339 = vmatprep.subr.bf16.mxu0 %v7260_v26  ;;  %3380 = vmatprep.subr.bf16.mxu1 %v7261_v46  ;;  %v7271_v26 = vld [vmem:[#allocation47_spill] sm:$0xff]  ;;  %v7272_v46 = vld [vmem:[#allocation48_spill] sm:$0xff] }
 0x786   :  { %3340 = vmatpush1.bf16.msra.mxu0 %v7262_v62  ;;  %3381 = vmatpush1.bf16.msra.mxu1 %v7263_v20  ;;  %v7273_v62 = vld [vmem:[#allocation49_spill] sm:$0xff]  ;;  %v7274_v20 = vld [vmem:[#allocation50_spill] sm:$0xff] }
 0x787   :  { %3341 = vmatprep.subr.bf16.mxu0 %v7264_v44  ;;  %3382 = vmatprep.subr.bf16.mxu1 %v7265_v23  ;;  %v7275_v44 = vld [vmem:[#allocation51_spill] sm:$0xff]  ;;  %v7276_v23 = vld [vmem:[#allocation52_spill] sm:$0xff] }
 0x78a   :  { %3342 = vmatpush1.bf16.msra.mxu0 %v7266_v48  ;;  %3383 = vmatpush1.bf16.msra.mxu1 %v7267_v16  ;;  %v7277_v48 = vld [vmem:[#allocation53_spill] sm:$0xff]  ;;  %v7278_v16 = vld [vmem:[#allocation54_spill] sm:$0xff] }
 0x78b   :  { %3343 = vmatprep.subr.bf16.mxu0 %v7268_v11  ;;  %3384 = vmatprep.subr.bf16.mxu1 %v7269_v4  ;;  %v7279_v11 = vld [vmem:[#allocation55_spill] sm:$0xff]  ;;  %v7280_v4 = vld [vmem:[#allocation56_spill] sm:$0xff] }
 0x78e   :  { %3344 = vmatpush1.bf16.msra.mxu0 %v7270_v34  ;;  %3385 = vmatpush1.bf16.msra.mxu1 %v7271_v26  ;;  %v7281_v34 = vld [vmem:[#allocation57_spill] sm:$0xff]  ;;  %v7282_v26 = vld [vmem:[#allocation58_spill] sm:$0xff] }
 0x78f   :  { %3345 = vmatprep.subr.bf16.mxu0 %v7272_v46  ;;  %3386 = vmatprep.subr.bf16.mxu1 %v7273_v62  ;;  %v7283_v46 = vld [vmem:[#allocation59_spill] sm:$0xff]  ;;  %v7284_v62 = vld [vmem:[#allocation60_spill] sm:$0xff] }
 0x792   :  { %3346 = vmatpush2.bf16.msra.mxu0 %v7274_v20  ;;  %3387 = vmatpush2.bf16.msra.mxu1 %v7275_v44  ;;  %v7285_v20 = vld [vmem:[#allocation61_spill] sm:$0xff]  ;;  %v7286_v44 = vld [vmem:[#allocation62_spill] sm:$0xff] }
 0x793   :  { %3347 = vmatprep.subr.bf16.mxu0 %v7276_v23  ;;  %3388 = vmatprep.subr.bf16.mxu1 %v7277_v48  ;;  %v7287_v23 = vld [vmem:[#allocation63_spill] sm:$0xff]  ;;  %v7288_v48 = vld [vmem:[#allocation64_spill] sm:$0xff] }
 0x796   :  { %3348 = vmatpush2.bf16.msra.mxu0 %v7278_v16  ;;  %3389 = vmatpush2.bf16.msra.mxu1 %v7279_v11  ;;  %v7289_v16 = vld [vmem:[#allocation65_spill] sm:$0xff]  ;;  %v7290_v11 = vld [vmem:[#allocation66_spill] sm:$0xff] }
 0x797   :  { %3349 = vmatprep.subr.bf16.mxu0 %v7280_v4  ;;  %3390 = vmatprep.subr.bf16.mxu1 %v7281_v34  ;;  %v7291_v4 = vld [vmem:[#allocation67_spill] sm:$0xff]  ;;  %v7292_v34 = vld [vmem:[#allocation68_spill] sm:$0xff] }
 0x79a   :  { %3350 = vmatpush2.bf16.msra.mxu0 %v7282_v26  ;;  %3391 = vmatpush2.bf16.msra.mxu1 %v7283_v46  ;;  %v7293_v26 = vld [vmem:[#allocation69_spill] sm:$0xff]  ;;  %v7294_v46 = vld [vmem:[#allocation70_spill] sm:$0xff] }
 0x79b   :  { %3351 = vmatprep.subr.bf16.mxu0 %v7284_v62  ;;  %3392 = vmatprep.subr.bf16.mxu1 %v7285_v20  ;;  %v7295_v62 = vld [vmem:[#allocation71_spill] sm:$0xff]  ;;  %v7296_v20 = vld [vmem:[#allocation72_spill] sm:$0xff] }
 0x79e   :  { %3352 = vmatpush2.bf16.msra.mxu0 %v7286_v44  ;;  %3393 = vmatpush2.bf16.msra.mxu1 %v7287_v23  ;;  %v7297_v44 = vld [vmem:[#allocation73_spill] sm:$0xff]  ;;  %v7298_v23 = vld [vmem:[#allocation74_spill] sm:$0xff] }
 0x79f   :  { %3353 = vmatprep.subr.bf16.mxu0 %v7288_v48  ;;  %3394 = vmatprep.subr.bf16.mxu1 %v7289_v16  ;;  %v7299_v48 = vld [vmem:[#allocation75_spill] sm:$0xff]  ;;  %v7300_v16 = vld [vmem:[#allocation76_spill] sm:$0xff] }
 0x7a2   :  { %3354 = vmatpush2.bf16.msra.mxu0 %v7290_v11  ;;  %3395 = vmatpush2.bf16.msra.mxu1 %v7291_v4  ;;  %v7301_v11 = vld [vmem:[#allocation77_spill] sm:$0xff]  ;;  %v7302_v4 = vld [vmem:[#allocation78_spill] sm:$0xff] }
 0x7a3   :  { %3355 = vmatprep.subr.bf16.mxu0 %v7292_v34  ;;  %3396 = vmatprep.subr.bf16.mxu1 %v7293_v26  ;;  %v7303_v34 = vld [vmem:[#allocation79_spill] sm:$0xff]  ;;  %v7304_v26 = vld [vmem:[#allocation80_spill] sm:$0xff] }
 0x7a6   :  { %3356 = vmatpush2.bf16.msra.mxu0 %v7294_v46  ;;  %3397 = vmatpush2.bf16.msra.mxu1 %v7295_v62  ;;  %v7305_v46 = vld [vmem:[#allocation81_spill] sm:$0xff]  ;;  %v624_v62 = vpop.permute.xlu1 %623 }
 0x7a7   :  { %3357 = vmatprep.subr.bf16.mxu0 %v7296_v20  ;;  %3398 = vmatprep.subr.bf16.mxu1 %v7297_v44  ;;  %v489_v20 = vpop.permute.xlu0 %488 }
 0x7a8   :  { %v558_v44 = vmul.f32 %v7306_v32, %v489_v20 }
 0x7aa   :  { %3358 = vmatpush2.bf16.msra.mxu0 %v7298_v23  ;;  %3399 = vmatpush2.bf16.msra.mxu1 %v7299_v48  ;;  %v559_v23 = vmul.f32 %v7307_v33, %v489_v20  ;;  %v560_v48 = vmul.f32 %v7308_v45, %v489_v20  ;;  %v756_v6 = vpop.permute.xlu1 %755  ;;  %v7313_v45 = vld [vmem:[#allocation98_spill] sm:$0xff] }
 0x7ab   :  { %3359 = vmatprep.subr.bf16.mxu0 %v7300_v16  ;;  %3400 = vmatprep.subr.bf16.mxu1 %v7301_v11  ;;  %v561_v16 = vmul.f32 %v7309_v61, %v489_v20  ;;  %v7310_v11 = vld [vmem:[#allocation94_spill] sm:$0xff]  ;;  %v822_v29 = vmul.f32 %v7313_v45, %v756_v6  ;;  %v7314_v20 = vld [vmem:[#allocation85_spill] sm:$0xff]  ;;  %v888_v17 = vpop.permute.xlu0 %887 }
 0x7ac   :  { %v690_v25 = vmul.f32 %v7310_v11, %v624_v62  ;;  %v591_v31 = vadd.f32 %v559_v23, %v7195_v5  ;;  %v592_v32 = vadd.f32 %v560_v48, %v7075_v28  ;;  %v823_v61 = vmul.f32 %v7314_v20, %v756_v6  ;;  %v7318_v23 = vld [vmem:[#allocation89_spill] sm:$0xff]  ;;  %v7319_v48 = vld [vmem:[#allocation100_spill] sm:$0xff] }
 0x7ad   :  { %v593_v33 = vadd.f32 %v561_v16, %v7196_v27  ;;  %v824_v11 = vmul.f32 %v7315_v40, %v756_v6  ;;  %v955_v5 = vmul.f32 %v7318_v23, %v888_v17  ;;  %v956_v28 = vmul.f32 %v7319_v48, %v888_v17  ;;  %v7358_v48 = vld [vmem:[#allocation149_spill] sm:$0xff]  ;;  %v7359_v23 = vld [vmem:[#allocation150_spill] sm:$0xff] }
 0x7ae   :  { %3360 = vmatpush2.bf16.msra.mxu0 %v7302_v4  ;;  %3401 = vmatpush2.bf16.msra.mxu1 %v7303_v34  ;;  %v7311_v4 = vld [vmem:[#allocation91_spill] sm:$0xff]  ;;  %v7312_v34 = vld [vmem:[#allocation93_spill] sm:$0xff]  ;;  %v957_v16 = vmul.f32 %v4775_v54, %v888_v17  ;;  %v7357_v54 = vld [vmem:[#allocation148_spill] sm:$0xff] }
 0x7af   :  { %3411 = vmatprep.subr.bf16.mxu0 %v7304_v26  ;;  %3452 = vmatprep.subr.bf16.mxu1 %v7305_v46  ;;  %v691_v57 = vmul.f32 %v7311_v4, %v624_v62  ;;  %v692_v2 = vmul.f32 %v7312_v34, %v624_v62  ;;  %v693_v26 = vmul.f32 %v7193_v37, %v624_v62 }
 0x7b0   :  { %v590_v46 = vadd.f32 %v558_v44, %v7194_v8  ;;  %v825_v4 = vmul.f32 %v7316_v39, %v756_v6  ;;  %v7317_v44 = vld [vmem:[#allocation99_spill] sm:$0xff] }
 0x7b1   :  { %v723_v14 = vadd.f32 %v691_v57, %v591_v31  ;;  %v724_v62 = vadd.f32 %v692_v2, %v592_v32  ;;  %v725_v37 = vadd.f32 %v693_v26, %v593_v33  ;;  %v954_v8 = vmul.f32 %v7317_v44, %v888_v17  ;;  %v7360_v44 = vld [vmem:[#allocation80_spill] sm:$0xff] }
 0x7b2   :  { %v722_v34 = vadd.f32 %v690_v25, %v590_v46 }
 0x7b3   :  { %v855_v27 = vadd.f32 %v823_v61, %v723_v14  ;;  %v856_v20 = vadd.f32 %v824_v11, %v724_v62  ;;  %v857_v35 = vadd.f32 %v825_v4, %v725_v37 }
 0x7b4   :  { %v854_v45 = vadd.f32 %v822_v29, %v722_v34 }
 0x7b5   :  { %v987_v36 = vadd.f32 %v955_v5, %v855_v27  ;;  %v988_v6 = vadd.f32 %v956_v28, %v856_v20  ;;  %v989_v39 = vadd.f32 %v957_v16, %v857_v35 }
 0x7b6   :  { %v986_v40 = vadd.f32 %v954_v8, %v854_v45 }
 0x7b7   :  { %v1130_v31 = vcombine.low %v988_v6, %v989_v39 }
 0x7b8   :  { %v1129_v25 = vcombine.low %v986_v40, %v987_v36 }
 0x7b9   :  { %v1144_v57 = vrot.slane %v1130_v31, %v4873_v24 }
 0x7ba   :  { %v1137_v2 = vrot.slane %v1129_v25, %v4873_v24 }
 0x7bb   :  { %v3882_v36 = vcombine.low %v1144_v57, %v1144_v57 }
 0x7bc   :  { %v1145_v33 = vcombine.low %v1137_v2, %v1144_v57 }
 0x7bd   :  { %v3264_v40 = vrot.slane %v3882_v36, %v4873_v24 }
 0x7be   :  { %v3257_v32 = vrot.slane %v1145_v33, %v4873_v24  ;;  %v7356_v24 = vld [vmem:[#allocation147_spill] sm:$0xff] }
 0x7bf   :  { %v3266_v45 = vcombine.high %v3264_v40, %v3264_v40 }
 0x7c0   :  { %v3265_v29 = vcombine.high %v3257_v32, %v3257_v32 }
 0x7f1   :  { %v3117_v26 = vpop.f32.mrf.mxu0  ;;  %v3158_v46 = vpop.f32.mrf.mxu1 }
 0x7f2   :  { %v3271_v17 = vadd.f32 %v3257_v32, %v3117_v26  ;;  %v3273_v36 = vadd.f32 %v3264_v40, %v3158_v46 }
 0x7f3   :  { %v3119_v14 = vpop.f32.mrf.mxu0  ;;  %v3160_v61 = vpop.f32.mrf.mxu1 }
 0x7f4   :  { %v3862_v37 = vmul.f32 -1.442695, %v3271_v17  ;;  %v3272_v8 = vadd.f32 %v3265_v29, %v3119_v14  ;;  %v3274_v11 = vadd.f32 %v3266_v45, %v3160_v61 }
 0x7f5   :  { %v3121_v27 = vpop.f32.mrf.mxu0  ;;  %v3162_v28 = vpop.f32.mrf.mxu1 }
 0x7f6   :  { %4101 = vpow2.f32 %v3862_v37  ;;  %v3863_v5 = vmul.f32 -1.442695, %v3272_v8 }
 0x7f7   :  { %v3122_v35 = vpop.f32.mrf.mxu0  ;;  %v3163_v39 = vpop.f32.mrf.mxu1 }
 0x7f8   :  { %4103 = vpow2.f32 %v3863_v5  ;;  %v3864_v35 = vmul.f32 -1.442695, %v3273_v36  ;;  %v7325_v36 = vld [vmem:[#allocation116_spill] sm:$0xff] }
 0x7f9   :  { %4105 = vtanh.f32 %v3274_v11 }
 0x803   :  { %v4102_v4 = vpop.eup %4101 }
 0x804   :  { %v3284_v34 = vadd.f32 1.0, %v4102_v4 }
 0x805   :  { %v4104_v20 = vpop.eup %4103 }
 0x806   :  { %4107 = vrcp.f32 %v3284_v34  ;;  %v3285_v62 = vadd.f32 1.0, %v4104_v20  ;;  %v4106_v16 = vpop.eup %4105 }
 0x808   :  { %4109 = vrcp.f32 %v3285_v62 }
 0x813   :  { %v4108_v6 = vpop.eup %4107 }
 0x814   :  { %v3295_v25 = vmul.f32 %v4108_v6, %v4106_v16 }
 0x815   :  { %v4110_v31 = vpop.eup %4109 }
 0x816   :  { %v3294_v2 = vmul.f32 %v4110_v31, %v5852_v0 }
 0x818   :  { %v6022_v57 = vadd.f32 %v3295_v25, %v3294_v2 }
 0x81a   :  { %7320 = vst [vmem:[#allocation106_spill] sm:$0xff] %v6022_v57 }
 0x831   :  { %v3199_v33 = vpop.f32.mrf.mxu0  ;;  %v3240_v32 = vpop.f32.mrf.mxu1 }
 0x832   :  { %v3299_v26 = vadd.f32 %v3199_v33, %v5164_v7  ;;  %v3301_v0 = vadd.f32 %v3240_v32, %v5172_v18  ;;  %v7352_v18 = vld [vmem:[#allocation143_spill] sm:$0xff]  ;;  %v7354_v7 = vld [vmem:[#allocation145_spill] sm:$0xff] }
 0x833   :  { %v3201_v17 = vpop.f32.mrf.mxu0  ;;  %v3242_v29 = vpop.f32.mrf.mxu1 }
 0x834   :  { %v3865_v14 = vmul.f32 -1.442695, %v3299_v26  ;;  %v3300_v61 = vadd.f32 %v3201_v17, %v5167_v41  ;;  %v3867_v39 = vmul.f32 -1.442695, %v3301_v0  ;;  %v3302_v11 = vadd.f32 %v3242_v29, %v5176_v21  ;;  %v7326_v0 = vld [vmem:[#allocation117_spill] sm:$0xff]  ;;  %v7351_v21 = vld [vmem:[#allocation142_spill] sm:$0xff] }
 0x835   :  { %v3203_v37 = vpop.f32.mrf.mxu0  ;;  %v3244_v8 = vpop.f32.mrf.mxu1  ;;  %v7353_v41 = vld [vmem:[#allocation144_spill] sm:$0xff] }
 0x836   :  { %4111 = vpow2.f32 %v3865_v14  ;;  %v3866_v27 = vmul.f32 -1.442695, %v3300_v61 }
 0x837   :  { %v3204_v28 = vpop.f32.mrf.mxu0  ;;  %v3245_v5 = vpop.f32.mrf.mxu1 }
 0x838   :  { %4113 = vpow2.f32 %v3866_v27  ;;  %v7323_v28 = vld [vmem:[#allocation114_spill] sm:$0xff]  ;;  %v7324_v5 = vld [vmem:[#allocation115_spill] sm:$0xff] }
 0x839   :  { %4115 = vpow2.f32 %v3864_v35  ;;  %v7327_v35 = vld [vmem:[#allocation118_spill] sm:$0xff] }
 0x83a   :  { %4117 = vpow2.f32 %v3867_v39  ;;  %v7328_v39 = vld [vmem:[#allocation119_spill] sm:$0xff] }
 0x843   :  { %v4112_v45 = vpop.eup %4111 }
 0x844   :  { %v3312_v4 = vadd.f32 1.0, %v4112_v45  ;;  %v7329_v45 = vld [vmem:[#allocation120_spill] sm:$0xff] }
 0x845   :  { %v4114_v34 = vpop.eup %4113 }
 0x846   :  { %4119 = vrcp.f32 %v3312_v4  ;;  %v3313_v20 = vadd.f32 1.0, %v4114_v34  ;;  %v4116_v62 = vpop.eup %4115  ;;  %v7331_v4 = vld [vmem:[#allocation122_spill] sm:$0xff]  ;;  %v7332_v34 = vld [vmem:[#allocation123_spill] sm:$0xff] }
 0x847   :  { %4121 = vtanh.f32 %v3302_v11  ;;  %v4118_v16 = vpop.eup %4117  ;;  %v3286_v46 = vadd.f32 1.0, %v4116_v62  ;;  %v7330_v11 = vld [vmem:[#allocation121_spill] sm:$0xff] }
 0x848   :  { %4123 = vrcp.f32 %v3313_v20  ;;  %v3314_v31 = vadd.f32 1.0, %v4118_v16  ;;  %v7333_v20 = vld [vmem:[#allocation124_spill] sm:$0xff]  ;;  %v7334_v62 = vld [vmem:[#allocation125_spill] sm:$0xff]  ;;  %v7335_v16 = vld [vmem:[#allocation126_spill] sm:$0xff] }
 0x849   :  { %4125 = vtanh.f32 %v6022_v57  ;;  %v7355_v57 = vld [vmem:[#allocation146_spill] sm:$0xff] }
 0x84a   :  { %4127 = vrcp.f32 %v3286_v46  ;;  %v7338_v46 = vld [vmem:[#allocation129_spill] sm:$0xff] }
 0x84b   :  { %4129 = vrcp.f32 %v3314_v31  ;;  %v7340_v31 = vld [vmem:[#allocation131_spill] sm:$0xff] }
 0x853   :  { %v4120_v6 = vpop.eup %4119 }
 0x854   :  { %v4122_v25 = vpop.eup %4121 }
 0x855   :  { %v4124_v40 = vpop.eup %4123  ;;  %v3323_v33 = vmul.f32 %v4122_v25, %v4120_v6  ;;  %v7336_v6 = vld [vmem:[#allocation127_spill] sm:$0xff]  ;;  %v7337_v25 = vld [vmem:[#allocation128_spill] sm:$0xff] }
 0x856   :  { %v3322_v2 = vmul.f32 %v4124_v40, %v5860_v42  ;;  %v4126_v26 = vpop.eup %4125  ;;  %v7322_v42 = vld [vmem:[#allocation113_spill] sm:$0xff]  ;;  %v7339_v40 = vld [vmem:[#allocation130_spill] sm:$0xff] }
 0x857   :  { %v4128_v17 = vpop.eup %4127 }
 0x858   :  { %v6030_v32 = vadd.f32 %v3323_v33, %v3322_v2  ;;  %v4130_v29 = vpop.eup %4129  ;;  %v3298_v61 = vmul.f32 %v4128_v17, %v4126_v26  ;;  %v7341_v2 = vld [vmem:[#allocation132_spill] sm:$0xff]  ;;  %v7342_v33 = vld [vmem:[#allocation133_spill] sm:$0xff]  ;;  %v7343_v26 = vld [vmem:[#allocation134_spill] sm:$0xff] }
 0x859   :  { %v7344_v17 = vld [vmem:[#allocation135_spill] sm:$0xff] }
 0x85a   :  { %7321 = vst [vmem:[#allocation107_spill] sm:$0xff] %v6030_v32  ;;  %4131 = vtanh.f32 %v6030_v32  ;;  %v6033_v27 = vpack.c.bf16 %v3298_v61, %v3298_v61  ;;  %v7347_v61 = vld [vmem:[#allocation138_spill] sm:$0xff]  ;;  %v7350_v32 = vld [vmem:[#allocation141_spill] sm:$0xff] }
 0x867   :  { %v4132_v14 = vpop.eup %4131 }
 0x868   :  { %v3326_v37 = vmul.f32 %v4132_v14, %v4130_v29  ;;  %v7345_v29 = vld [vmem:[#allocation136_spill] sm:$0xff]  ;;  %v7346_v14 = vld [vmem:[#allocation137_spill] sm:$0xff] }
 0x86a   :  { %v3328_v8 = vpack.c.bf16 %v3326_v37, %v3326_v37  ;;  %v7348_v37 = vld [vmem:[#allocation139_spill] sm:$0xff] }
 0x86c   :  { %3361 = vmatprep.mubr.bf16.mxu0 %v3328_v8  ;;  %3402 = vmatprep.mubr.bf16.mxu1 %v3328_v8 }
 0x86d   :  { %3362 = vmatmul.mubr.bf16.vlgmr.msra.gmra.mxu0 %v6033_v27  ;;  %3403 = vmatmul.mubr.bf16.vlgmr.msra.gmra.mxu1 %v6033_v27 }
 0x86e   :  { %3412 = vmatpush1.bf16.msra.mxu0 %v4604_v58  ;;  %3453 = vmatpush1.bf16.msra.mxu1 %v4612_v49 }
 0x86f   :  { %3443 = vmatprep.mubr.bf16.mxu0 %v3328_v8  ;;  %3484 = vmatprep.mubr.bf16.mxu1 %v3328_v8  ;;  %v7349_v8 = vld [vmem:[#allocation140_spill] sm:$0xff] }
 0x870   :  { %3413 = vmatprep.subr.bf16.mxu0 %v4882_v3  ;;  %3454 = vmatprep.subr.bf16.mxu1 %v4884_v12 }
 0x872   :  { %3414 = vmatpush1.bf16.msra.mxu0 %v4890_v22  ;;  %3455 = vmatpush1.bf16.msra.mxu1 %v4892_v38 }
 0x873   :  { %3415 = vmatprep.subr.bf16.mxu0 %v4896_v47  ;;  %3456 = vmatprep.subr.bf16.mxu1 %v4898_v52 }
 0x876   :  { %3416 = vmatpush1.bf16.msra.mxu0 %v4904_v51  ;;  %3457 = vmatpush1.bf16.msra.mxu1 %v4906_v15 }
 0x877   :  { %3417 = vmatprep.subr.bf16.mxu0 %v4910_v30  ;;  %3458 = vmatprep.subr.bf16.mxu1 %v4912_v19 }
 0x87a   :  { %3418 = vmatpush1.bf16.msra.mxu0 %v4916_v9  ;;  %3459 = vmatpush1.bf16.msra.mxu1 %v4918_v43 }
 0x87b   :  { %3419 = vmatprep.subr.bf16.mxu0 %v4922_v53  ;;  %3460 = vmatprep.subr.bf16.mxu1 %v4924_v59 }
 0x87e   :  { %3420 = vmatpush1.bf16.msra.mxu0 %v4928_v56  ;;  %3461 = vmatpush1.bf16.msra.mxu1 %v6726_v60 }
 0x87f   :  { %3421 = vmatprep.subr.bf16.mxu0 %v6727_v13  ;;  %3462 = vmatprep.subr.bf16.mxu1 %v6728_v10 }
 0x882   :  { %3422 = vmatpush1.bf16.msra.mxu0 %v6729_v63  ;;  %3463 = vmatpush1.bf16.msra.mxu1 %v6730_v55 }
 0x883   :  { %3423 = vmatprep.subr.bf16.mxu0 %v7200_v50  ;;  %3464 = vmatprep.subr.bf16.mxu1 %v7201_v1 }
 0x886   :  { %3424 = vmatpush1.bf16.msra.mxu0 %v7322_v42  ;;  %3465 = vmatpush1.bf16.msra.mxu1 %v7323_v28 }
 0x887   :  { %3425 = vmatprep.subr.bf16.mxu0 %v7324_v5  ;;  %3466 = vmatprep.subr.bf16.mxu1 %v7325_v36 }
 0x88a   :  { %3426 = vmatpush1.bf16.msra.mxu0 %v7326_v0  ;;  %3467 = vmatpush1.bf16.msra.mxu1 %v7327_v35 }
 0x88b   :  { %3427 = vmatprep.subr.bf16.mxu0 %v7328_v39  ;;  %3468 = vmatprep.subr.bf16.mxu1 %v7329_v45 }
 0x88e   :  { %3428 = vmatpush2.bf16.msra.mxu0 %v7330_v11  ;;  %3469 = vmatpush2.bf16.msra.mxu1 %v7331_v4 }
 0x88f   :  { %3429 = vmatprep.subr.bf16.mxu0 %v7332_v34  ;;  %3470 = vmatprep.subr.bf16.mxu1 %v7333_v20 }
 0x892   :  { %3430 = vmatpush2.bf16.msra.mxu0 %v7334_v62  ;;  %3471 = vmatpush2.bf16.msra.mxu1 %v7335_v16 }
 0x893   :  { %3431 = vmatprep.subr.bf16.mxu0 %v7336_v6  ;;  %3472 = vmatprep.subr.bf16.mxu1 %v7337_v25 }
 0x896   :  { %3432 = vmatpush2.bf16.msra.mxu0 %v7338_v46  ;;  %3473 = vmatpush2.bf16.msra.mxu1 %v7339_v40 }
 0x897   :  { %3433 = vmatprep.subr.bf16.mxu0 %v7340_v31  ;;  %3474 = vmatprep.subr.bf16.mxu1 %v7341_v2 }
 0x89a   :  { %3434 = vmatpush2.bf16.msra.mxu0 %v7342_v33  ;;  %3475 = vmatpush2.bf16.msra.mxu1 %v7343_v26 }
 0x89b   :  { %3435 = vmatprep.subr.bf16.mxu0 %v7344_v17  ;;  %3476 = vmatprep.subr.bf16.mxu1 %v7345_v29 }
 0x89e   :  { %3436 = vmatpush2.bf16.msra.mxu0 %v7346_v14  ;;  %3477 = vmatpush2.bf16.msra.mxu1 %v7347_v61 }
 0x89f   :  { %3437 = vmatprep.subr.bf16.mxu0 %v7348_v37  ;;  %3478 = vmatprep.subr.bf16.mxu1 %v7349_v8 }
 0x8a2   :  { %3438 = vmatpush2.bf16.msra.mxu0 %v7350_v32  ;;  %3479 = vmatpush2.bf16.msra.mxu1 %v7351_v21  ;;  %v7361_v32 = vld [vmem:[#allocation81_spill] sm:$0xff] }
 0x8a3   :  { %3439 = vmatprep.subr.bf16.mxu0 %v7352_v18  ;;  %3480 = vmatprep.subr.bf16.mxu1 %v7353_v41 }
 0x8a6   :  { %3440 = vmatpush2.bf16.msra.mxu0 %v7354_v7  ;;  %3481 = vmatpush2.bf16.msra.mxu1 %v7355_v57 }
 0x8a7   :  { %3441 = vmatprep.subr.bf16.mxu0 %v7356_v24  ;;  %3482 = vmatprep.subr.bf16.mxu1 %v7357_v54 }
 0x8aa   :  { %3442 = vmatpush2.bf16.msra.mxu0 %v7358_v48  ;;  %3483 = vmatpush2.bf16.msra.mxu1 %v7359_v23 }
 0x8ab   :  { %3575 = vmatprep.subr.bf16.mxu0 %v7360_v44  ;;  %3616 = vmatprep.subr.bf16.mxu1 %v7361_v32  ;;  %v7376_v44 = vld [vmem:[#allocation85_spill] sm:$0xff]  ;;  %v7378_v32 = vld [vmem:[#allocation86_spill] sm:$0xff] }
 0x8ad   :  { %3444 = vmatmul.mubr.bf16.vlgmr.msra.gmra.mxu0 %v6033_v27  ;;  %3485 = vmatmul.mubr.bf16.vlgmr.msra.gmra.mxu1 %v6033_v27 }
 0x8ae   :  { %3576 = vmatpush1.bf16.msra.mxu0 %v4604_v58  ;;  %3617 = vmatpush1.bf16.msra.mxu1 %v4612_v49  ;;  %v7362_v49 = vld [vmem:[#allocation141_spill] sm:$0xff]  ;;  %v494_v58 = vpop.permute.xlu1 %493 }
 0x8af   :  { %3577 = vmatprep.subr.bf16.mxu0 %v4882_v3  ;;  %3618 = vmatprep.subr.bf16.mxu1 %v4884_v12  ;;  %v7363_v12 = vld [vmem:[#allocation95_spill] sm:$0xff] }
 0x8b2   :  { %3578 = vmatpush1.bf16.msra.mxu0 %v4890_v22  ;;  %3619 = vmatpush1.bf16.msra.mxu1 %v4892_v38  ;;  %v628_v3 = vpop.permute.xlu1 %627  ;;  %v562_v22 = vmul.f32 %v7363_v12, %v494_v58  ;;  %v7364_v38 = vld [vmem:[#allocation87_spill] sm:$0xff] }
 0x8b3   :  { %3579 = vmatprep.subr.bf16.mxu0 %v4896_v47  ;;  %3620 = vmatprep.subr.bf16.mxu1 %v4898_v52  ;;  %v563_v47 = vmul.f32 %v7364_v38, %v494_v58  ;;  %v7365_v52 = vld [vmem:[#allocation96_spill] sm:$0xff] }
 0x8b6   :  { %3580 = vmatpush1.bf16.msra.mxu0 %v4904_v51  ;;  %3621 = vmatpush1.bf16.msra.mxu1 %v4906_v15  ;;  %v564_v51 = vmul.f32 %v7365_v52, %v494_v58  ;;  %v7366_v15 = vld [vmem:[#allocation88_spill] sm:$0xff] }
 0x8b7   :  { %3581 = vmatprep.subr.bf16.mxu0 %v4910_v30  ;;  %3622 = vmatprep.subr.bf16.mxu1 %v4912_v19  ;;  %v565_v30 = vmul.f32 %v7366_v15, %v494_v58  ;;  %v7367_v19 = vld [vmem:[#allocation94_spill] sm:$0xff] }
 0x8ba   :  { %3582 = vmatpush1.bf16.msra.mxu0 %v4916_v9  ;;  %3623 = vmatpush1.bf16.msra.mxu1 %v4918_v43  ;;  %v694_v9 = vmul.f32 %v7367_v19, %v628_v3  ;;  %v7368_v43 = vld [vmem:[#allocation91_spill] sm:$0xff] }
 0x8bb   :  { %3583 = vmatprep.subr.bf16.mxu0 %v4922_v53  ;;  %3624 = vmatprep.subr.bf16.mxu1 %v4924_v59  ;;  %v7369_v53 = vld [vmem:[#allocation93_spill] sm:$0xff]  ;;  %v7370_v59 = vld [vmem:[#allocation92_spill] sm:$0xff] }
 0x8be   :  { %3584 = vmatpush1.bf16.msra.mxu0 %v4928_v56  ;;  %3625 = vmatpush1.bf16.msra.mxu1 %v6726_v60  ;;  %v697_v56 = vmul.f32 %v7370_v59, %v628_v3 }
 0x8bf   :  { %3585 = vmatprep.subr.bf16.mxu0 %v6727_v13  ;;  %3626 = vmatprep.subr.bf16.mxu1 %v6728_v10  ;;  %v7373_v13 = vld [vmem:[#allocation103_spill] sm:$0xff] }
 0x8c0   :  { %v596_v10 = vadd.f32 %v564_v51, %v7373_v13 }
 0x8c2   :  { %3586 = vmatpush1.bf16.msra.mxu0 %v6729_v63  ;;  %3627 = vmatpush1.bf16.msra.mxu1 %v6730_v55  ;;  %v7374_v63 = vld [vmem:[#allocation104_spill] sm:$0xff] }
 0x8c3   :  { %3587 = vmatprep.subr.bf16.mxu0 %v7200_v50  ;;  %3628 = vmatprep.subr.bf16.mxu1 %v7201_v1  ;;  %v597_v55 = vadd.f32 %v565_v30, %v7374_v63  ;;  %v7375_v50 = vld [vmem:[#allocation98_spill] sm:$0xff] }
 0x8c6   :  { %3588 = vmatpush1.bf16.msra.mxu0 %v7322_v42  ;;  %3629 = vmatpush1.bf16.msra.mxu1 %v7323_v28 }
 0x8c7   :  { %3589 = vmatprep.subr.bf16.mxu0 %v7324_v5  ;;  %3630 = vmatprep.subr.bf16.mxu1 %v7325_v36  ;;  %v729_v36 = vadd.f32 %v697_v56, %v597_v55 }
 0x8ca   :  { %3590 = vmatpush1.bf16.msra.mxu0 %v7326_v0  ;;  %3631 = vmatpush1.bf16.msra.mxu1 %v7327_v35  ;;  %v892_v0 = vpop.permute.xlu1 %891 }
 0x8cb   :  { %3591 = vmatprep.subr.bf16.mxu0 %v7328_v39  ;;  %3632 = vmatprep.subr.bf16.mxu1 %v7329_v45 }
 0x8ce   :  { %3592 = vmatpush2.bf16.msra.mxu0 %v7330_v11  ;;  %3633 = vmatpush2.bf16.msra.mxu1 %v7331_v4  ;;  %v7379_v4 = vld [vmem:[#allocation99_spill] sm:$0xff] }
 0x8cf   :  { %3593 = vmatprep.subr.bf16.mxu0 %v7332_v34  ;;  %3634 = vmatprep.subr.bf16.mxu1 %v7333_v20  ;;  %v958_v34 = vmul.f32 %v7379_v4, %v892_v0  ;;  %v7380_v20 = vld [vmem:[#allocation89_spill] sm:$0xff] }
 0x8d2   :  { %3594 = vmatpush2.bf16.msra.mxu0 %v7334_v62  ;;  %3635 = vmatpush2.bf16.msra.mxu1 %v7335_v16  ;;  %v959_v62 = vmul.f32 %v7380_v20, %v892_v0  ;;  %v7381_v16 = vld [vmem:[#allocation100_spill] sm:$0xff] }
 0x8d3   :  { %3595 = vmatprep.subr.bf16.mxu0 %v7336_v6  ;;  %3636 = vmatprep.subr.bf16.mxu1 %v7337_v25  ;;  %v960_v6 = vmul.f32 %v7381_v16, %v892_v0  ;;  %v7382_v25 = vld [vmem:[#allocation90_spill] sm:$0xff] }
 0x8d4   :  { %v7387_v16 = vld [vmem:[#allocation82_spill] sm:$0xff] }
 0x8d6   :  { %3596 = vmatpush2.bf16.msra.mxu0 %v7338_v46  ;;  %3637 = vmatpush2.bf16.msra.mxu1 %v7339_v40  ;;  %v961_v46 = vmul.f32 %v7382_v25, %v892_v0 }
 0x8d7   :  { %3597 = vmatprep.subr.bf16.mxu0 %v7340_v31  ;;  %3638 = vmatprep.subr.bf16.mxu1 %v7341_v2 }
 0x8da   :  { %3598 = vmatpush2.bf16.msra.mxu0 %v7342_v33  ;;  %3639 = vmatpush2.bf16.msra.mxu1 %v7343_v26 }
 0x8db   :  { %3599 = vmatprep.subr.bf16.mxu0 %v7344_v17  ;;  %3640 = vmatprep.subr.bf16.mxu1 %v7345_v29  ;;  %v7383_v29 = vld [vmem:[#allocation105_spill] sm:$0xff] }
 0x8de   :  { %3600 = vmatpush2.bf16.msra.mxu0 %v7346_v14  ;;  %3641 = vmatpush2.bf16.msra.mxu1 %v7347_v61 }
 0x8df   :  { %3601 = vmatprep.subr.bf16.mxu0 %v7348_v37  ;;  %3642 = vmatprep.subr.bf16.mxu1 %v7349_v8 }
 0x8e2   :  { %3602 = vmatpush2.bf16.msra.mxu0 %v7362_v49  ;;  %3643 = vmatpush2.bf16.msra.mxu1 %v7351_v21  ;;  %v7372_v21 = vld [vmem:[#allocation102_spill] sm:$0xff] }
 0x8e3   :  { %3603 = vmatprep.subr.bf16.mxu0 %v7352_v18  ;;  %3644 = vmatprep.subr.bf16.mxu1 %v7353_v41  ;;  %v7371_v41 = vld [vmem:[#allocation101_spill] sm:$0xff]  ;;  %v595_v60 = vadd.f32 %v563_v47, %v7372_v21 }
 0x8e4   :  { %v594_v18 = vadd.f32 %v562_v22, %v7371_v41 }
 0x8e6   :  { %3604 = vmatpush2.bf16.msra.mxu0 %v7354_v7  ;;  %3645 = vmatpush2.bf16.msra.mxu1 %v7355_v57  ;;  %v760_v7 = vpop.permute.xlu0 %759  ;;  %v726_v42 = vadd.f32 %v694_v9, %v594_v18 }
 0x8e7   :  { %3605 = vmatprep.subr.bf16.mxu0 %v7356_v24  ;;  %3646 = vmatprep.subr.bf16.mxu1 %v7357_v54  ;;  %v695_v24 = vmul.f32 %v7368_v43, %v628_v3  ;;  %v696_v54 = vmul.f32 %v7369_v53, %v628_v3  ;;  %v826_v1 = vmul.f32 %v7375_v50, %v760_v7 }
 0x8e8   :  { %v829_v27 = vmul.f32 %v7378_v32, %v760_v7 }
 0x8e9   :  { %v727_v28 = vadd.f32 %v695_v24, %v595_v60  ;;  %v728_v5 = vadd.f32 %v696_v54, %v596_v10  ;;  %v858_v35 = vadd.f32 %v826_v1, %v726_v42  ;;  %v7384_v1 = vld [vmem:[#allocation106_spill] sm:$0xff] }
 0x8ea   :  { %3606 = vmatpush2.bf16.msra.mxu0 %v7358_v48  ;;  %3647 = vmatpush2.bf16.msra.mxu1 %v7359_v23  ;;  %v827_v23 = vmul.f32 %v7376_v44, %v760_v7  ;;  %v7377_v48 = vld [vmem:[#allocation97_spill] sm:$0xff]  ;;  %v861_v11 = vadd.f32 %v829_v27, %v729_v36 }
 0x8eb   :  { %v828_v57 = vmul.f32 %v7377_v48, %v760_v7  ;;  %v990_v40 = vadd.f32 %v958_v34, %v858_v35 }
 0x8ec   :  { %v859_v39 = vadd.f32 %v827_v23, %v727_v28  ;;  %v993_v33 = vadd.f32 %v961_v46, %v861_v11  ;;  %v7385_v28 = vld [vmem:[#allocation151_spill] sm:$0xff] }
 0x8ed   :  { %v860_v45 = vadd.f32 %v828_v57, %v728_v5 }
 0x8ee   :  { %v991_v31 = vadd.f32 %v959_v62, %v859_v39  ;;  %v7386_v39 = vld [vmem:[#allocation83_spill] sm:$0xff] }
 0x8ef   :  { %v992_v2 = vadd.f32 %v960_v6, %v860_v45 }
 0x8f0   :  { %v1146_v26 = vcombine.low %v990_v40, %v991_v31  ;;  %v7388_v40 = vld [vmem:[#allocation84_spill] sm:$0xff] }
 0x8f1   :  { %v1147_v17 = vcombine.low %v992_v2, %v993_v33 }
 0x8f2   :  { %v1154_v14 = vrot.slane %v1146_v26, %v7383_v29 }
 0x8f3   :  { %v1161_v61 = vrot.slane %v1147_v17, %v7383_v29 }
 0x8f5   :  { %v1162_v37 = vcombine.low %v1154_v14, %v1161_v61  ;;  %v3883_v30 = vcombine.low %v1161_v61, %v1161_v61 }
 0x8f7   :  { %v3503_v8 = vrot.slane %v1162_v37, %v7383_v29  ;;  %v3510_v24 = vrot.slane %v3883_v30, %v7383_v29 }
 0x8f9   :  { %v3511_v12 = vcombine.high %v3503_v8, %v3503_v8  ;;  %v3512_v54 = vcombine.high %v3510_v24, %v3510_v24 }
 0x92d   :  { %v3363_v49 = vpop.f32.mrf.mxu0  ;;  %v3404_v58 = vpop.f32.mrf.mxu1 }
 0x92e   :  { %v3517_v3 = vadd.f32 %v3503_v8, %v3363_v49  ;;  %v3519_v53 = vadd.f32 %v3510_v24, %v3404_v58  ;;  %v7389_v8 = vld [vmem:[#allocation107_spill] sm:$0xff] }
 0x92f   :  { %v3365_v22 = vpop.f32.mrf.mxu0  ;;  %v3406_v38 = vpop.f32.mrf.mxu1 }
 0x930   :  { %v3868_v47 = vmul.f32 -1.442695, %v3517_v3  ;;  %v3518_v52 = vadd.f32 %v3511_v12, %v3365_v22  ;;  %v3870_v59 = vmul.f32 -1.442695, %v3519_v53  ;;  %v3520_v56 = vadd.f32 %v3512_v54, %v3406_v38 }
 0x931   :  { %v3367_v51 = vpop.f32.mrf.mxu0  ;;  %v3408_v15 = vpop.f32.mrf.mxu1 }
 0x932   :  { %4133 = vpow2.f32 %v3868_v47  ;;  %v3869_v19 = vmul.f32 -1.442695, %v3518_v52 }
 0x933   :  { %v3368_v9 = vpop.f32.mrf.mxu0  ;;  %v3409_v43 = vpop.f32.mrf.mxu1 }
 0x934   :  { %4135 = vpow2.f32 %v3869_v19 }
 0x935   :  { %4137 = vpow2.f32 %v3870_v59 }
 0x936   :  { %4139 = vtanh.f32 %v3520_v56 }
 0x93f   :  { %v4134_v7 = vpop.eup %4133 }
 0x940   :  { %v3530_v41 = vadd.f32 1.0, %v4134_v7 }
 0x941   :  { %v4136_v18 = vpop.eup %4135 }
 0x942   :  { %4141 = vrcp.f32 %v3530_v41  ;;  %v3531_v21 = vadd.f32 1.0, %v4136_v18  ;;  %v4138_v60 = vpop.eup %4137 }
 0x943   :  { %v4140_v13 = vpop.eup %4139  ;;  %v3532_v50 = vadd.f32 1.0, %v4138_v60 }
 0x944   :  { %4143 = vrcp.f32 %v3531_v21 }
 0x945   :  { %4145 = vrcp.f32 %v3532_v50 }
 0x94f   :  { %v4142_v10 = vpop.eup %4141 }
 0x950   :  { %v3541_v63 = vmul.f32 %v4142_v10, %v4140_v13 }
 0x951   :  { %v4144_v55 = vpop.eup %4143 }
 0x952   :  { %v3540_v44 = vmul.f32 %v4144_v55, %v7384_v1  ;;  %v4146_v48 = vpop.eup %4145 }
 0x954   :  { %v3542_v23 = vadd.f32 %v3541_v63, %v3540_v44 }
 0x956   :  { %4147 = vtanh.f32 %v3542_v23 }
 0x963   :  { %v4148_v57 = vpop.eup %4147 }
 0x964   :  { %v3544_v32 = vmul.f32 %v4148_v57, %v4146_v48 }
 0x966   :  { %v3573_v52 = vpack.c.bf16 %v3544_v32, %v3544_v32 }
 0x96d   :  { %v3445_v27 = vpop.f32.mrf.mxu0  ;;  %v3486_v42 = vpop.f32.mrf.mxu1 }
 0x96e   :  { %v3545_v5 = vadd.f32 %v3445_v27, %v7385_v28  ;;  %v3547_v6 = vadd.f32 %v3486_v42, %v7387_v16 }
 0x96f   :  { %v3447_v36 = vpop.f32.mrf.mxu0  ;;  %v3488_v0 = vpop.f32.mrf.mxu1 }
 0x970   :  { %v3871_v35 = vmul.f32 -1.442695, %v3545_v5  ;;  %v3546_v45 = vadd.f32 %v3447_v36, %v7386_v39  ;;  %v3873_v25 = vmul.f32 -1.442695, %v3547_v6  ;;  %v3548_v31 = vadd.f32 %v3488_v0, %v7388_v40 }
 0x971   :  { %v3449_v11 = vpop.f32.mrf.mxu0  ;;  %v3490_v4 = vpop.f32.mrf.mxu1 }
 0x972   :  { %4149 = vpow2.f32 %v3871_v35  ;;  %v3872_v34 = vmul.f32 -1.442695, %v3546_v45 }
 0x973   :  { %v3450_v20 = vpop.f32.mrf.mxu0  ;;  %v3491_v62 = vpop.f32.mrf.mxu1 }
 0x974   :  { %4151 = vpow2.f32 %v3872_v34 }
 0x975   :  { %4153 = vpow2.f32 %v3873_v25 }
 0x97f   :  { %v4150_v46 = vpop.eup %4149 }
 0x980   :  { %v3558_v2 = vadd.f32 1.0, %v4150_v46 }
 0x981   :  { %v4152_v33 = vpop.eup %4151 }
 0x982   :  { %4155 = vrcp.f32 %v3558_v2  ;;  %v3559_v26 = vadd.f32 1.0, %v4152_v33  ;;  %v4154_v17 = vpop.eup %4153 }
 0x983   :  { %4157 = vtanh.f32 %v3548_v31  ;;  %v3560_v37 = vadd.f32 1.0, %v4154_v17 }
 0x984   :  { %4159 = vrcp.f32 %v3559_v26 }
 0x985   :  { %4161 = vrcp.f32 %v3560_v37 }
 0x98f   :  { %v4156_v29 = vpop.eup %4155 }
 0x990   :  { %v4158_v14 = vpop.eup %4157 }
 0x991   :  { %v4160_v61 = vpop.eup %4159  ;;  %v3569_v58 = vmul.f32 %v4158_v14, %v4156_v29 }
 0x992   :  { %v3568_v49 = vmul.f32 %v4160_v61, %v7389_v8  ;;  %v4162_v12 = vpop.eup %4161 }
 0x994   :  { %v3570_v3 = vadd.f32 %v3569_v58, %v3568_v49 }
 0x996   :  { %4163 = vtanh.f32 %v3570_v3 }
 0x9a3   :  { %v4164_v22 = vpop.eup %4163 }
 0x9a4   :  { %v3572_v38 = vmul.f32 %v4164_v22, %v4162_v12 }
 0x9a6   :  { %v3574_v47 = vpack.c.bf16 %v3572_v38, %v3572_v38 }
 0x9a8   :  { %3607 = vmatprep.mubr.bf16.mxu0 %v3574_v47  ;;  %3648 = vmatprep.mubr.bf16.mxu1 %v3574_v47 }
 0x9a9   :  { %3608 = vmatmul.mubr.bf16.vlgmr.msra.gmra.mxu0 %v3573_v52  ;;  %3649 = vmatmul.mubr.bf16.vlgmr.msra.gmra.mxu1 %v3573_v52 }
 0xa69   :  { %v3609_v51 = vpop.f32.mrf.mxu0  ;;  %v3650_v15 = vpop.f32.mrf.mxu1 }
 0xa6a   :  { %v3657_v30 = vadd.f32 %v3609_v51, %v7385_v28  ;;  %v3659_v41 = vadd.f32 %v3650_v15, %v7387_v16 }
 0xa6b   :  { %v3611_v19 = vpop.f32.mrf.mxu0  ;;  %v3652_v9 = vpop.f32.mrf.mxu1 }
 0xa6c   :  { %v3874_v43 = vmul.f32 -1.442695, %v3657_v30  ;;  %v3658_v24 = vadd.f32 %v3611_v19, %v7386_v39  ;;  %v3876_v18 = vmul.f32 -1.442695, %v3659_v41  ;;  %v3660_v60 = vadd.f32 %v3652_v9, %v7388_v40 }
 0xa6d   :  { %v3613_v53 = vpop.f32.mrf.mxu0  ;;  %v3654_v54 = vpop.f32.mrf.mxu1 }
 0xa6e   :  { %4165 = vpow2.f32 %v3874_v43  ;;  %v3875_v59 = vmul.f32 -1.442695, %v3658_v24 }
 0xa6f   :  { %v3614_v56 = vpop.f32.mrf.mxu0  ;;  %v3655_v7 = vpop.f32.mrf.mxu1 }
 0xa70   :  { %4167 = vpow2.f32 %v3875_v59 }
 0xa71   :  { %4169 = vpow2.f32 %v3876_v18 }
 0xa7b   :  { %v4166_v21 = vpop.eup %4165 }
 0xa7c   :  { %v3670_v13 = vadd.f32 1.0, %v4166_v21 }
 0xa7d   :  { %v4168_v10 = vpop.eup %4167 }
 0xa7e   :  { %4171 = vrcp.f32 %v3670_v13  ;;  %v3671_v63 = vadd.f32 1.0, %v4168_v10  ;;  %v4170_v55 = vpop.eup %4169 }
 0xa7f   :  { %4173 = vtanh.f32 %v3660_v60  ;;  %v3672_v23 = vadd.f32 1.0, %v4170_v55 }
 0xa80   :  { %4175 = vrcp.f32 %v3671_v63 }
 0xa81   :  { %4177 = vrcp.f32 %v3672_v23 }
 0xa8b   :  { %v4172_v50 = vpop.eup %4171 }
 0xa8c   :  { %v4174_v1 = vpop.eup %4173 }
 0xa8d   :  { %v4176_v44 = vpop.eup %4175  ;;  %v3681_v57 = vmul.f32 %v4174_v1, %v4172_v50 }
 0xa8e   :  { %v3680_v48 = vmul.f32 %v4176_v44, %v3570_v3  ;;  %v4178_v27 = vpop.eup %4177 }
 0xa90   :  { %v3682_v32 = vadd.f32 %v3681_v57, %v3680_v48 }
 0xa92   :  { %4179 = vtanh.f32 %v3682_v32 }
 0xa9f   :  { %v4180_v42 = vpop.eup %4179 }
 0xaa0   :  { %v3684_v28 = vmul.f32 %v4180_v42, %v4178_v27 }
 0xaa2   :  { %3685 = vst [vmem:[#allocation11] sm:$0x3] %v3684_v28 }
 0xaa3   :  { %4272 = shalt.err (!%p4269_p10)
}
 0xaa4   :  { %3695 = dma.vmem_to_hbm [thread:$0]  %s3693_s3, 32, %s6209_s7, [#allocation5]  }
 0xaa5   :  { %4287 = dma.done.wait [#allocation5], 32  }
 0xaa6   :  { %4288 = vsyncadd [#allocation5], 4294967264 }
 0xaa7   :  { %3699 = vsyncpa [#allocation4], 1 }
 0xaa8   :  { %3700 = vsyncpa [#allocation7], 1 }
 0xaa9   :  { %3701 = vsyncpa [#allocation10], 1 }
 0xaaa   :  { %3702 = vsyncpa [#allocation5], 1 }

</bundles_post_ra>
